<compile_context>
chip_gen: v7x
topology: tpu7x:2x2x1
jax: 0.10.0
libtpu: 0.0.40
codegen_flags: <defaults>
</compile_context>

<pallas_src>
import numpy as np
import jax
import jax.numpy as jnp
from jax import lax
from jax.experimental import pallas as pl
from jax.experimental.pallas import tpu as pltpu

N_OBJ = 25                 # RNLayer hard-codes d=5 -> 25 objects
N_PAIR = N_OBJ * N_OBJ     # 625 ordered pairs
OBJ_DIM = 26               # 24 conv channels + 2 coords
OBJQ_DIM = 36              # obj + 10-dim question
N_CLS = 10

# Shared (625, 25) one-hot pair-expansion matrices (batch independent, host
# constants, ~31 KB each in bf16). Pair row r = p*25 + q selects object p via
# E_P (the [obj, ques] / W1[26:] path) and object q via E_Q (the W1[:26] path).
_pair = np.arange(N_PAIR)
_obj = np.arange(N_OBJ)
E_P = jnp.asarray((_pair[:, None] // N_OBJ) == _obj[None, :], dtype=jnp.bfloat16)
E_Q = jnp.asarray((_pair[:, None] % N_OBJ) == _obj[None, :], dtype=jnp.bfloat16)


# ----------------------------- Pallas kernel ------------------------------ #

def rn_head_kernel(obj_ref, objq_ref, ep_ref, eq_ref,
                   w1a_ref, w1b_ref, b1_ref,
                   w2_ref, b2_ref, w3_ref, b3_ref, w4_ref, b4_ref,
                   wf1_ref, bf1_ref, wf2_ref, bf2_ref, wo_ref, bo_ref,
                   out_ref):
    """Fused RN head for `bt` batch elements: decomposed g_fc1, shared one-hot
    pair expansion, g_fc2..4, per-example pair sum, f_phi, output FC,
    log_softmax. Everything stays 3-D/batched so no relayout-heavy reshapes."""
    f32, bf16 = jnp.float32, jnp.bfloat16
    bt = obj_ref.shape[0]

    def bmm(x3, w2d):
        """(bt, M, K)bf16 @ (K, N)bf16 on the MXU with f32 accumulation."""
        w3 = jnp.broadcast_to(w2d, (bt,) + w2d.shape)
        return jnp.einsum("bmk,bkn->bmn", x3, w3, preferred_element_type=f32)

    # ---- g_theta layer 1, decomposed (only 25 rows per example) -----------
    a3 = bmm(obj_ref[...], w1a_ref[...]).astype(bf16)                    # (bt, 25, 256)
    c3 = (bmm(objq_ref[...], w1b_ref[...]) + b1_ref[...]).astype(bf16)   # (bt, 25, 256)

    # ---- expand 25 objects -> 625 ordered pairs ----------------------------
    # Batched small-K matmuls against the shared (625, 25) one-hots: no
    # bt^2-sized block-diagonal zero work, constant-size operands.
    ep_b = jnp.broadcast_to(ep_ref[...], (bt, N_PAIR, N_OBJ))
    eq_b = jnp.broadcast_to(eq_ref[...], (bt, N_PAIR, N_OBJ))
    h = (jnp.einsum("bpm,bmf->bpf", ep_b, c3, preferred_element_type=f32)
         + jnp.einsum("bpm,bmf->bpf", eq_b, a3, preferred_element_type=f32))
    h = jnp.maximum(h.astype(bf16), 0)                                   # (bt, 625, 256)

    # ---- g_theta layers 2..3 (bias + ReLU in bf16: fewer VPU passes) -------
    def g_layer(x_bf, w_ref, b_ref):
        y = bmm(x_bf, w_ref[...])
        return jnp.maximum(y.astype(bf16) + b_ref[...].astype(bf16), 0)

    h = g_layer(h, w2_ref, b2_ref)
    h = g_layer(h, w3_ref, b3_ref)

    # ---- g_theta layer 4 + per-example sum over the 625 pairs (f32) --------
    y4 = jnp.maximum(bmm(h, w4_ref[...]) + b4_ref[...], 0.0)             # (bt, 625, 256) f32
    g = jnp.sum(y4, axis=1)                                              # (bt, 256) f32

    # ---- f_phi (tiny 2-D matmuls) -------------------------------------------
    def dense(x_bf, w_ref, b_ref):
        return jnp.dot(x_bf, w_ref[...], preferred_element_type=f32) + b_ref[...]

    f = jnp.maximum(dense(g.astype(bf16), wf1_ref, bf1_ref), 0.0)
    f = jnp.maximum(dense(f.astype(bf16), wf2_ref, bf2_ref), 0.0)
    # TODO(synk): F.dropout(p=0.5, training=True) is stochastic; identity here.
    logits = dense(f.astype(bf16), wo_ref, bo_ref)                       # (bt, 10)

    # ---- log_softmax --------------------------------------------------------
    m = jnp.max(logits, axis=-1, keepdims=True)
    lse = jnp.log(jnp.sum(jnp.exp(logits - m), axis=-1, keepdims=True)) + m
    out_ref[:, 0, :] = logits - lse


def _pick_bt(B):
    """Batch rows fused per grid step. Prefer a large tile (amortizes the
    ~0.35us/step pipeline cost, v6e/v5e), keep >=2 grid steps whenever possible
    so the 'parallel' grid axis can split across v7x's two TensorCores, and cap
    at 16 so the live (bt, 625, 256) activations stay well inside VMEM (v7x has
    64 MiB per core)."""
    for cand in (16, 8, 4, 2, 1):
        if B % cand == 0 and B // cand >= 2:
            return cand
    return B  # B == 1


def rn_head_pallas(obj, objq, head):
    """obj: (B, 25, 26) f32, objq: (B, 25, 36) f32 -> (B, 10) log-probs."""
    B = obj.shape[0]
    bt = _pick_bt(B)
    grid = (B // bt,)

    obj_bf = obj.astype(jnp.bfloat16)
    objq_bf = objq.astype(jnp.bfloat16)

    # Grid-invariant operands (weights, biases, one-hots): constant index maps
    # mean Pallas keeps them resident across steps. They total <1 MB after the
    # bt^2 expansion matrices were removed, so the default double buffer on
    # them is negligible (explicit pl.Buffered(1) not needed).
    def const_spec(arr):
        nd = arr.ndim
        return pl.BlockSpec(arr.shape, lambda step, _nd=nd: (0,) * _nd)

    out = pl.pallas_call(
        rn_head_kernel,
        out_shape=jax.ShapeDtypeStruct((B, 1, N_CLS), jnp.float32),
        grid=grid,
        in_specs=[pl.BlockSpec((bt, N_OBJ, OBJ_DIM), lambda step: (step, 0, 0)),
                  pl.BlockSpec((bt, N_OBJ, OBJQ_DIM), lambda step: (step, 0, 0)),
                  const_spec(E_P), const_spec(E_Q)]
                 + [const_spec(a) for a in head],
        out_specs=pl.BlockSpec((bt, 1, N_CLS), lambda step: (step, 0, 0)),
        compiler_params=pltpu.CompilerParams(
            dimension_semantics=("parallel",),
            vmem_limit_bytes=48 * 1024 * 1024),
    )(obj_bf, objq_bf, E_P, E_Q, *head)
    return out[:, 0, :]


# ----------------------------- JAX glue ----------------------------------- #

def conv_relu_bn(x, w, b, gamma, beta):
    """Conv2d(stride=2, pad=1, k=3) -> ReLU -> BatchNorm2d (training-mode batch stats)."""
    y = lax.conv_general_dilated(
        x, w, window_strides=(2, 2), padding=((1, 1), (1, 1)),
        dimension_numbers=("NCHW", "OIHW", "NCHW"))
    y = y + b[None, :, None, None]
    y = jnp.maximum(y, 0.0)
    mean = jnp.mean(y, axis=(0, 2, 3), keepdims=True)
    var = jnp.mean(jnp.square(y - mean), axis=(0, 2, 3), keepdims=True)
    y = (y - mean) / jnp.sqrt(var + 1e-5)
    y = y * gamma[None, :, None, None] + beta[None, :, None, None]
    return y


def build_objects(x, ques):
    """x: (B, 24, d, d) conv features, ques: (B, 10)
       -> obj (B, 25, 26) coord-tagged objects, objq (B, 25, 36) = [obj, ques]."""
    B, C, d, _ = x.shape
    coords = jnp.linspace(-d / 2.0, d / 2.0, d, dtype=jnp.float32)
    cx = jnp.broadcast_to(coords[None, :], (d, d))   # varies along columns
    cy = jnp.broadcast_to(coords[:, None], (d, d))   # varies along rows
    ct = jnp.stack([cx, cy], axis=0)                 # (2, d, d)
    x_tagged = jnp.concatenate(
        [x, jnp.broadcast_to(ct[None], (B, 2, d, d))], axis=1)       # (B, 26, d, d)
    obj = x_tagged.reshape(B, C + 2, d * d).transpose(0, 2, 1)       # (B, 25, 26)
    objq = jnp.concatenate(
        [obj, jnp.broadcast_to(ques[:, None, :], (B, d * d, ques.shape[-1]))],
        axis=-1)                                                     # (B, 25, 36)
    return obj, objq


def rn_model_forward(params, head, img, ques):
    x = img
    for name in ("conv1", "conv2", "conv3", "conv4"):
        w, b = params[name]
        gamma, beta = params[name + "_bn"]
        x = conv_relu_bn(x, w, b, gamma, beta)
    assert x.shape[2] == 5 and x.shape[3] == 5, "RNLayer hard-codes d=5 (25 objects)"
    obj, objq = build_objects(x, ques)
    return rn_head_pallas(obj, objq, head)


# ----------------------------- Parameters --------------------------------- #

def init_params(key):
    keys = jax.random.split(key, 24)
    it = iter(range(24))

    def lin(fan_in, fan_out):
        bound = 1.0 / jnp.sqrt(fan_in)
        kw, kb = keys[next(it)], keys[next(it)]
        w = jax.random.uniform(kw, (fan_in, fan_out), jnp.float32, -bound, bound)
        b = jax.random.uniform(kb, (1, fan_out), jnp.float32, -bound, bound)
        return w, b

    def conv(cin, cout):
        fan_in = cin * 9
        bound = 1.0 / jnp.sqrt(fan_in)
        kw, kb = keys[next(it)], keys[next(it)]
        w = jax.random.uniform(kw, (cout, cin, 3, 3), jnp.float32, -bound, bound)
        b = jax.random.uniform(kb, (cout,), jnp.float32, -bound, bound)
        return w, b

    p = {}
    p["conv1"] = conv(3, 24)
    p["conv2"] = conv(24, 24)
    p["conv3"] = conv(24, 24)
    p["conv4"] = conv(24, 24)
    for i in range(1, 5):  # BatchNorm affine params (PyTorch default init)
        p[f"conv{i}_bn"] = (jnp.ones((24,), jnp.float32), jnp.zeros((24,), jnp.float32))
    p["g_fc1"] = lin(62, 256)
    p["g_fc2"] = lin(256, 256)
    p["g_fc3"] = lin(256, 256)
    p["g_fc4"] = lin(256, 256)
    p["f_fc1"] = lin(256, 256)
    p["f_fc2"] = lin(256, 256)
    p["f_out"] = lin(256, 10)
    return p


def prepare_head_params(params):
    """One-time (outside jit) prep of the Pallas head operands: split g_fc1's
    weight for the decomposed layer 1 and pre-cast all weights to bf16 so no
    per-call cast ops run before the kernel. Order matches the kernel args."""
    b16 = lambda w: w.astype(jnp.bfloat16)
    w1, b1 = params["g_fc1"]
    w2, b2 = params["g_fc2"]
    w3, b3 = params["g_fc3"]
    w4, b4 = params["g_fc4"]
    wf1, bf1 = params["f_fc1"]
    wf2, bf2 = params["f_fc2"]
    wo, bo = params["f_out"]
    return (b16(w1[:OBJ_DIM]),      # applied to obj_q  (the x_i path)
            b16(w1[OBJ_DIM:]),      # applied to [obj_p, ques]  (the x_j path)
            b1,
            b16(w2), b2, b16(w3), b3, b16(w4), b4,
            b16(wf1), bf1, b16(wf2), bf2, b16(wo), bo)


# ------------------------------- Main -------------------------------------- #

if __name__ == "__main__":
    key = jax.random.PRNGKey(0)
    k_param, k_img, k_ques = jax.random.split(key, 3)

    params = init_params(k_param)
    head = prepare_head_params(params)   # hoisted bf16 casts / W1 split

    # 80x80 images -> four stride-2 convs -> 5x5 feature map (d=5, 25 objects)
    img = jax.random.normal(k_img, (2, 3, 80, 80), dtype=jnp.float32)
    ques = jax.random.normal(k_ques, (2, 10), dtype=jnp.float32)

    out = jax.jit(rn_model_forward)(params, head, img, ques)
    out = jax.block_until_ready(out)

    assert out.shape == (2, 10)
    assert bool(jnp.all(jnp.isfinite(out)))
    print("KERNEL_OK")
</pallas_src>

<mosaic_0001>
module attributes {stable_mosaic.version = 11 : i64} {
  func.func @rn_head_kernel(%arg0: i32, %arg1: memref<1x25x26xbf16, #tpu.memory_space<vmem>>, %arg2: memref<1x25x36xbf16, #tpu.memory_space<vmem>>, %arg3: memref<625x25xbf16, #tpu.memory_space<vmem>>, %arg4: memref<625x25xbf16, #tpu.memory_space<vmem>>, %arg5: memref<26x256xbf16, #tpu.memory_space<vmem>>, %arg6: memref<36x256xbf16, #tpu.memory_space<vmem>>, %arg7: memref<1x256xf32, #tpu.memory_space<vmem>>, %arg8: memref<256x256xbf16, #tpu.memory_space<vmem>>, %arg9: memref<1x256xf32, #tpu.memory_space<vmem>>, %arg10: memref<256x256xbf16, #tpu.memory_space<vmem>>, %arg11: memref<1x256xf32, #tpu.memory_space<vmem>>, %arg12: memref<256x256xbf16, #tpu.memory_space<vmem>>, %arg13: memref<1x256xf32, #tpu.memory_space<vmem>>, %arg14: memref<256x256xbf16, #tpu.memory_space<vmem>>, %arg15: memref<1x256xf32, #tpu.memory_space<vmem>>, %arg16: memref<256x256xbf16, #tpu.memory_space<vmem>>, %arg17: memref<1x256xf32, #tpu.memory_space<vmem>>, %arg18: memref<256x10xbf16, #tpu.memory_space<vmem>>, %arg19: memref<1x10xf32, #tpu.memory_space<vmem>>, %arg20: memref<1x1x10xf32, #tpu.memory_space<vmem>>) attributes {dimension_semantics = [#tpu.dimension_semantics<parallel>], iteration_bounds = array<i64: 2>, scalar_prefetch = 0 : i64, scratch_operands = 0 : i64, tpu.core_type = #tpu.core_type<tc>, window_params = [{transform_indices = @transform_0, window_bounds = array<i64: 1, 25, 26>}, {transform_indices = @transform_1, window_bounds = array<i64: 1, 25, 36>}, {pipeline_mode = #tpu.pipeline_mode<synchronous>, transform_indices = @transform_2, window_bounds = array<i64: 625, 25>}, {pipeline_mode = #tpu.pipeline_mode<synchronous>, transform_indices = @transform_3, window_bounds = array<i64: 625, 25>}, {pipeline_mode = #tpu.pipeline_mode<synchronous>, transform_indices = @transform_4, window_bounds = array<i64: 26, 256>}, {pipeline_mode = #tpu.pipeline_mode<synchronous>, transform_indices = @transform_5, window_bounds = array<i64: 36, 256>}, {pipeline_mode = #tpu.pipeline_mode<synchronous>, transform_indices = @transform_6, window_bounds = array<i64: 1, 256>}, {pipeline_mode = #tpu.pipeline_mode<synchronous>, transform_indices = @transform_7, window_bounds = array<i64: 256, 256>}, {pipeline_mode = #tpu.pipeline_mode<synchronous>, transform_indices = @transform_8, window_bounds = array<i64: 1, 256>}, {pipeline_mode = #tpu.pipeline_mode<synchronous>, transform_indices = @transform_9, window_bounds = array<i64: 256, 256>}, {pipeline_mode = #tpu.pipeline_mode<synchronous>, transform_indices = @transform_10, window_bounds = array<i64: 1, 256>}, {pipeline_mode = #tpu.pipeline_mode<synchronous>, transform_indices = @transform_11, window_bounds = array<i64: 256, 256>}, {pipeline_mode = #tpu.pipeline_mode<synchronous>, transform_indices = @transform_12, window_bounds = array<i64: 1, 256>}, {pipeline_mode = #tpu.pipeline_mode<synchronous>, transform_indices = @transform_13, window_bounds = array<i64: 256, 256>}, {pipeline_mode = #tpu.pipeline_mode<synchronous>, transform_indices = @transform_14, window_bounds = array<i64: 1, 256>}, {pipeline_mode = #tpu.pipeline_mode<synchronous>, transform_indices = @transform_15, window_bounds = array<i64: 256, 256>}, {pipeline_mode = #tpu.pipeline_mode<synchronous>, transform_indices = @transform_16, window_bounds = array<i64: 1, 256>}, {pipeline_mode = #tpu.pipeline_mode<synchronous>, transform_indices = @transform_17, window_bounds = array<i64: 256, 10>}, {pipeline_mode = #tpu.pipeline_mode<synchronous>, transform_indices = @transform_18, window_bounds = array<i64: 1, 10>}, {transform_indices = @transform_19, window_bounds = array<i64: 1, 1, 10>}]} {
    %c0 = arith.constant 0 : index
    %c0_0 = arith.constant 0 : index
    %c0_1 = arith.constant 0 : index
    %0 = vector.load %arg1[%c0, %c0_0, %c0_1] : memref<1x25x26xbf16, #tpu.memory_space<vmem>>, vector<1x25x26xbf16>
    %c0_2 = arith.constant 0 : index
    %c0_3 = arith.constant 0 : index
    %1 = vector.load %arg5[%c0_2, %c0_3] : memref<26x256xbf16, #tpu.memory_space<vmem>>, vector<26x256xbf16>
    %2 = vector.shape_cast %1 : vector<26x256xbf16> to vector<1x26x256xbf16>
    "tpu.trace_start"() <{level = 10 : i32, message = "bmk,bkn->bmn"}> : () -> ()
    %cst = arith.constant dense<0.000000e+00> : vector<1x25x256xf32>
    %3 = tpu.matmul %0, %2, %cst {dimension_numbers = #tpu.dot_dimension_numbers<[2], [1], [1], [2], [0, 0, 0, 1, 1, 2], [0], [0]>} : vector<1x25x26xbf16>, vector<1x26x256xbf16>, vector<1x25x256xf32> -> vector<1x25x256xf32>
    "tpu.trace_stop"() : () -> ()
    %4 = arith.truncf %3 : vector<1x25x256xf32> to vector<1x25x256xbf16>
    %c0_4 = arith.constant 0 : index
    %c0_5 = arith.constant 0 : index
    %c0_6 = arith.constant 0 : index
    %5 = vector.load %arg2[%c0_4, %c0_5, %c0_6] : memref<1x25x36xbf16, #tpu.memory_space<vmem>>, vector<1x25x36xbf16>
    %c0_7 = arith.constant 0 : index
    %c0_8 = arith.constant 0 : index
    %6 = vector.load %arg6[%c0_7, %c0_8] : memref<36x256xbf16, #tpu.memory_space<vmem>>, vector<36x256xbf16>
    %7 = vector.shape_cast %6 : vector<36x256xbf16> to vector<1x36x256xbf16>
    "tpu.trace_start"() <{level = 10 : i32, message = "bmk,bkn->bmn"}> : () -> ()
    %cst_9 = arith.constant dense<0.000000e+00> : vector<1x25x256xf32>
    %8 = tpu.matmul %5, %7, %cst_9 {dimension_numbers = #tpu.dot_dimension_numbers<[2], [1], [1], [2], [0, 0, 0, 1, 1, 2], [0], [0]>} : vector<1x25x36xbf16>, vector<1x36x256xbf16>, vector<1x25x256xf32> -> vector<1x25x256xf32>
    "tpu.trace_stop"() : () -> ()
    %c0_10 = arith.constant 0 : index
    %c0_11 = arith.constant 0 : index
    %9 = vector.load %arg7[%c0_10, %c0_11] : memref<1x256xf32, #tpu.memory_space<vmem>>, vector<1x256xf32>
    %10 = vector.shape_cast %9 : vector<1x256xf32> to vector<1x1x256xf32>
    %11 = vector.broadcast %10 : vector<1x1x256xf32> to vector<1x25x256xf32>
    %12 = arith.addf %8, %11 : vector<1x25x256xf32>
    %13 = arith.truncf %12 : vector<1x25x256xf32> to vector<1x25x256xbf16>
    %c0_12 = arith.constant 0 : index
    %c0_13 = arith.constant 0 : index
    %14 = vector.load %arg3[%c0_12, %c0_13] : memref<625x25xbf16, #tpu.memory_space<vmem>>, vector<625x25xbf16>
    %15 = vector.shape_cast %14 : vector<625x25xbf16> to vector<1x625x25xbf16>
    %c0_14 = arith.constant 0 : index
    %c0_15 = arith.constant 0 : index
    %16 = vector.load %arg4[%c0_14, %c0_15] : memref<625x25xbf16, #tpu.memory_space<vmem>>, vector<625x25xbf16>
    %17 = vector.shape_cast %16 : vector<625x25xbf16> to vector<1x625x25xbf16>
    "tpu.trace_start"() <{level = 10 : i32, message = "bpm,bmf->bpf"}> : () -> ()
    %cst_16 = arith.constant dense<0.000000e+00> : vector<1x625x256xf32>
    %18 = tpu.matmul %15, %13, %cst_16 {dimension_numbers = #tpu.dot_dimension_numbers<[2], [1], [1], [2], [0, 0, 0, 1, 1, 2], [0], [0]>} : vector<1x625x25xbf16>, vector<1x25x256xbf16>, vector<1x625x256xf32> -> vector<1x625x256xf32>
    %cst_17 = arith.constant dense<0.000000e+00> : vector<1x625x256xf32>
    %19 = tpu.matmul %17, %4, %cst_17 {dimension_numbers = #tpu.dot_dimension_numbers<[2], [1], [1], [2], [0, 0, 0, 1, 1, 2], [0], [0]>} : vector<1x625x25xbf16>, vector<1x25x256xbf16>, vector<1x625x256xf32> -> vector<1x625x256xf32>
    "tpu.trace_stop"() : () -> ()
    %20 = arith.addf %18, %19 : vector<1x625x256xf32>
    %21 = arith.truncf %20 : vector<1x625x256xf32> to vector<1x625x256xbf16>
    %cst_18 = arith.constant 0.000000e+00 : bf16
    %22 = vector.broadcast %cst_18 : bf16 to vector<1x625x256xbf16>
    %23 = arith.maximumf %21, %22 : vector<1x625x256xbf16>
    %c0_19 = arith.constant 0 : index
    %c0_20 = arith.constant 0 : index
    %24 = vector.load %arg8[%c0_19, %c0_20] : memref<256x256xbf16, #tpu.memory_space<vmem>>, vector<256x256xbf16>
    %25 = vector.shape_cast %24 : vector<256x256xbf16> to vector<1x256x256xbf16>
    "tpu.trace_start"() <{level = 10 : i32, message = "bmk,bkn->bmn"}> : () -> ()
    %cst_21 = arith.constant dense<0.000000e+00> : vector<1x625x256xf32>
    %26 = tpu.matmul %23, %25, %cst_21 {dimension_numbers = #tpu.dot_dimension_numbers<[2], [1], [1], [2], [0, 0, 0, 1, 1, 2], [0], [0]>} : vector<1x625x256xbf16>, vector<1x256x256xbf16>, vector<1x625x256xf32> -> vector<1x625x256xf32>
    "tpu.trace_stop"() : () -> ()
    %27 = arith.truncf %26 : vector<1x625x256xf32> to vector<1x625x256xbf16>
    %c0_22 = arith.constant 0 : index
    %c0_23 = arith.constant 0 : index
    %28 = vector.load %arg9[%c0_22, %c0_23] : memref<1x256xf32, #tpu.memory_space<vmem>>, vector<1x256xf32>
    %29 = arith.truncf %28 : vector<1x256xf32> to vector<1x256xbf16>
    %30 = vector.shape_cast %29 : vector<1x256xbf16> to vector<1x1x256xbf16>
    %31 = vector.broadcast %30 : vector<1x1x256xbf16> to vector<1x625x256xbf16>
    %32 = arith.addf %27, %31 : vector<1x625x256xbf16>
    %cst_24 = arith.constant 0.000000e+00 : bf16
    %33 = vector.broadcast %cst_24 : bf16 to vector<1x625x256xbf16>
    %34 = arith.maximumf %32, %33 : vector<1x625x256xbf16>
    %c0_25 = arith.constant 0 : index
    %c0_26 = arith.constant 0 : index
    %35 = vector.load %arg10[%c0_25, %c0_26] : memref<256x256xbf16, #tpu.memory_space<vmem>>, vector<256x256xbf16>
    %36 = vector.shape_cast %35 : vector<256x256xbf16> to vector<1x256x256xbf16>
    "tpu.trace_start"() <{level = 10 : i32, message = "bmk,bkn->bmn"}> : () -> ()
    %cst_27 = arith.constant dense<0.000000e+00> : vector<1x625x256xf32>
    %37 = tpu.matmul %34, %36, %cst_27 {dimension_numbers = #tpu.dot_dimension_numbers<[2], [1], [1], [2], [0, 0, 0, 1, 1, 2], [0], [0]>} : vector<1x625x256xbf16>, vector<1x256x256xbf16>, vector<1x625x256xf32> -> vector<1x625x256xf32>
    "tpu.trace_stop"() : () -> ()
    %38 = arith.truncf %37 : vector<1x625x256xf32> to vector<1x625x256xbf16>
    %c0_28 = arith.constant 0 : index
    %c0_29 = arith.constant 0 : index
    %39 = vector.load %arg11[%c0_28, %c0_29] : memref<1x256xf32, #tpu.memory_space<vmem>>, vector<1x256xf32>
    %40 = arith.truncf %39 : vector<1x256xf32> to vector<1x256xbf16>
    %41 = vector.shape_cast %40 : vector<1x256xbf16> to vector<1x1x256xbf16>
    %42 = vector.broadcast %41 : vector<1x1x256xbf16> to vector<1x625x256xbf16>
    %43 = arith.addf %38, %42 : vector<1x625x256xbf16>
    %cst_30 = arith.constant 0.000000e+00 : bf16
    %44 = vector.broadcast %cst_30 : bf16 to vector<1x625x256xbf16>
    %45 = arith.maximumf %43, %44 : vector<1x625x256xbf16>
    %c0_31 = arith.constant 0 : index
    %c0_32 = arith.constant 0 : index
    %46 = vector.load %arg12[%c0_31, %c0_32] : memref<256x256xbf16, #tpu.memory_space<vmem>>, vector<256x256xbf16>
    %47 = vector.shape_cast %46 : vector<256x256xbf16> to vector<1x256x256xbf16>
    "tpu.trace_start"() <{level = 10 : i32, message = "bmk,bkn->bmn"}> : () -> ()
    %cst_33 = arith.constant dense<0.000000e+00> : vector<1x625x256xf32>
    %48 = tpu.matmul %45, %47, %cst_33 {dimension_numbers = #tpu.dot_dimension_numbers<[2], [1], [1], [2], [0, 0, 0, 1, 1, 2], [0], [0]>} : vector<1x625x256xbf16>, vector<1x256x256xbf16>, vector<1x625x256xf32> -> vector<1x625x256xf32>
    "tpu.trace_stop"() : () -> ()
    %c0_34 = arith.constant 0 : index
    %c0_35 = arith.constant 0 : index
    %49 = vector.load %arg13[%c0_34, %c0_35] : memref<1x256xf32, #tpu.memory_space<vmem>>, vector<1x256xf32>
    %50 = vector.shape_cast %49 : vector<1x256xf32> to vector<1x1x256xf32>
    %51 = vector.broadcast %50 : vector<1x1x256xf32> to vector<1x625x256xf32>
    %52 = arith.addf %48, %51 : vector<1x625x256xf32>
    %cst_36 = arith.constant 0.000000e+00 : f32
    %53 = vector.broadcast %cst_36 : f32 to vector<1x625x256xf32>
    %54 = arith.maximumf %52, %53 : vector<1x625x256xf32>
    %cst_37 = arith.constant dense<0.000000e+00> : vector<1x256xf32>
    %55 = vector.multi_reduction <add>, %54, %cst_37 [1] : vector<1x625x256xf32> to vector<1x256xf32>
    %56 = arith.truncf %55 : vector<1x256xf32> to vector<1x256xbf16>
    %c0_38 = arith.constant 0 : index
    %c0_39 = arith.constant 0 : index
    %57 = vector.load %arg14[%c0_38, %c0_39] : memref<256x256xbf16, #tpu.memory_space<vmem>>, vector<256x256xbf16>
    %cst_40 = arith.constant dense<0.000000e+00> : vector<1x256xf32>
    %58 = tpu.matmul %56, %57, %cst_40 {dimension_numbers = #tpu.dot_dimension_numbers<[1], [0], [0], [1], [0, 0, 1, 1], [], []>} : vector<1x256xbf16>, vector<256x256xbf16>, vector<1x256xf32> -> vector<1x256xf32>
    %c0_41 = arith.constant 0 : index
    %c0_42 = arith.constant 0 : index
    %59 = vector.load %arg15[%c0_41, %c0_42] : memref<1x256xf32, #tpu.memory_space<vmem>>, vector<1x256xf32>
    %60 = arith.addf %58, %59 : vector<1x256xf32>
    %cst_43 = arith.constant 0.000000e+00 : f32
    %61 = vector.broadcast %cst_43 : f32 to vector<1x256xf32>
    %62 = arith.maximumf %60, %61 : vector<1x256xf32>
    %63 = arith.truncf %62 : vector<1x256xf32> to vector<1x256xbf16>
    %c0_44 = arith.constant 0 : index
    %c0_45 = arith.constant 0 : index
    %64 = vector.load %arg16[%c0_44, %c0_45] : memref<256x256xbf16, #tpu.memory_space<vmem>>, vector<256x256xbf16>
    %cst_46 = arith.constant dense<0.000000e+00> : vector<1x256xf32>
    %65 = tpu.matmul %63, %64, %cst_46 {dimension_numbers = #tpu.dot_dimension_numbers<[1], [0], [0], [1], [0, 0, 1, 1], [], []>} : vector<1x256xbf16>, vector<256x256xbf16>, vector<1x256xf32> -> vector<1x256xf32>
    %c0_47 = arith.constant 0 : index
    %c0_48 = arith.constant 0 : index
    %66 = vector.load %arg17[%c0_47, %c0_48] : memref<1x256xf32, #tpu.memory_space<vmem>>, vector<1x256xf32>
    %67 = arith.addf %65, %66 : vector<1x256xf32>
    %cst_49 = arith.constant 0.000000e+00 : f32
    %68 = vector.broadcast %cst_49 : f32 to vector<1x256xf32>
    %69 = arith.maximumf %67, %68 : vector<1x256xf32>
    %70 = arith.truncf %69 : vector<1x256xf32> to vector<1x256xbf16>
    %c0_50 = arith.constant 0 : index
    %c0_51 = arith.constant 0 : index
    %71 = vector.load %arg18[%c0_50, %c0_51] : memref<256x10xbf16, #tpu.memory_space<vmem>>, vector<256x10xbf16>
    %cst_52 = arith.constant dense<0.000000e+00> : vector<1x10xf32>
    %72 = tpu.matmul %70, %71, %cst_52 {dimension_numbers = #tpu.dot_dimension_numbers<[1], [0], [0], [1], [0, 0, 1, 1], [], []>} : vector<1x256xbf16>, vector<256x10xbf16>, vector<1x10xf32> -> vector<1x10xf32>
    %c0_53 = arith.constant 0 : index
    %c0_54 = arith.constant 0 : index
    %73 = vector.load %arg19[%c0_53, %c0_54] : memref<1x10xf32, #tpu.memory_space<vmem>>, vector<1x10xf32>
    %74 = arith.addf %72, %73 : vector<1x10xf32>
    %cst_55 = arith.constant dense<0xFF800000> : vector<1xf32>
    %75 = vector.multi_reduction <maximumf>, %74, %cst_55 [1] : vector<1x10xf32> to vector<1xf32>
    %76 = vector.shape_cast %75 : vector<1xf32> to vector<1x1xf32>
    %77 = vector.broadcast %76 : vector<1x1xf32> to vector<1x10xf32>
    %78 = arith.subf %74, %77 : vector<1x10xf32>
    %79 = math.exp %78 : vector<1x10xf32>
    %cst_56 = arith.constant dense<0.000000e+00> : vector<1xf32>
    %80 = vector.multi_reduction <add>, %79, %cst_56 [1] : vector<1x10xf32> to vector<1xf32>
    %81 = vector.shape_cast %80 : vector<1xf32> to vector<1x1xf32>
    %82 = math.log %81 : vector<1x1xf32>
    %83 = arith.addf %82, %76 : vector<1x1xf32>
    %84 = vector.broadcast %83 : vector<1x1xf32> to vector<1x10xf32>
    %85 = arith.subf %74, %84 : vector<1x10xf32>
    %c0_57 = arith.constant 0 : index
    %c0_58 = arith.constant 0 : index
    %c0_59 = arith.constant 0 : index
    %86 = vector.load %arg20[%c0_57, %c0_58, %c0_59] : memref<1x1x10xf32, #tpu.memory_space<vmem>>, vector<1x1x10xf32>
    %87 = vector.shape_cast %86 : vector<1x1x10xf32> to vector<1x10xf32>
    %88 = vector.shape_cast %85 : vector<1x10xf32> to vector<1x1x10xf32>
    tpu.vector_store %arg20[%c0_57, %c0_58, %c0_59], %88 {strides = array<i32>} : memref<1x1x10xf32, #tpu.memory_space<vmem>>, vector<1x1x10xf32>,
    return
  }
  func.func @transform_0(%arg0: i32) -> (i32, i32, i32) {
    %c0_i32 = arith.constant 0 : i32
    %c0_i32_0 = arith.constant 0 : i32
    %c0_i32_1 = arith.constant 0 : i32
    return %arg0, %c0_i32, %c0_i32_0 : i32, i32, i32
  }
  func.func @transform_1(%arg0: i32) -> (i32, i32, i32) {
    %c0_i32 = arith.constant 0 : i32
    %c0_i32_0 = arith.constant 0 : i32
    %c0_i32_1 = arith.constant 0 : i32
    return %arg0, %c0_i32, %c0_i32_0 : i32, i32, i32
  }
  func.func @transform_2(%arg0: i32) -> (i32, i32) {
    %c0_i32 = arith.constant 0 : i32
    %c0_i32_0 = arith.constant 0 : i32
    %c0_i32_1 = arith.constant 0 : i32
    return %c0_i32, %c0_i32_0 : i32, i32
  }
  func.func @transform_3(%arg0: i32) -> (i32, i32) {
    %c0_i32 = arith.constant 0 : i32
    %c0_i32_0 = arith.constant 0 : i32
    %c0_i32_1 = arith.constant 0 : i32
    return %c0_i32, %c0_i32_0 : i32, i32
  }
  func.func @transform_4(%arg0: i32) -> (i32, i32) {
    %c0_i32 = arith.constant 0 : i32
    %c0_i32_0 = arith.constant 0 : i32
    %c0_i32_1 = arith.constant 0 : i32
    return %c0_i32, %c0_i32_0 : i32, i32
  }
  func.func @transform_5(%arg0: i32) -> (i32, i32) {
    %c0_i32 = arith.constant 0 : i32
    %c0_i32_0 = arith.constant 0 : i32
    %c0_i32_1 = arith.constant 0 : i32
    return %c0_i32, %c0_i32_0 : i32, i32
  }
  func.func @transform_6(%arg0: i32) -> (i32, i32) {
    %c0_i32 = arith.constant 0 : i32
    %c0_i32_0 = arith.constant 0 : i32
    %c0_i32_1 = arith.constant 0 : i32
    return %c0_i32, %c0_i32_0 : i32, i32
  }
  func.func @transform_7(%arg0: i32) -> (i32, i32) {
    %c0_i32 = arith.constant 0 : i32
    %c0_i32_0 = arith.constant 0 : i32
    %c0_i32_1 = arith.constant 0 : i32
    return %c0_i32, %c0_i32_0 : i32, i32
  }
  func.func @transform_8(%arg0: i32) -> (i32, i32) {
    %c0_i32 = arith.constant 0 : i32
    %c0_i32_0 = arith.constant 0 : i32
    %c0_i32_1 = arith.constant 0 : i32
    return %c0_i32, %c0_i32_0 : i32, i32
  }
  func.func @transform_9(%arg0: i32) -> (i32, i32) {
    %c0_i32 = arith.constant 0 : i32
    %c0_i32_0 = arith.constant 0 : i32
    %c0_i32_1 = arith.constant 0 : i32
    return %c0_i32, %c0_i32_0 : i32, i32
  }
  func.func @transform_10(%arg0: i32) -> (i32, i32) {
    %c0_i32 = arith.constant 0 : i32
    %c0_i32_0 = arith.constant 0 : i32
    %c0_i32_1 = arith.constant 0 : i32
    return %c0_i32, %c0_i32_0 : i32, i32
  }
  func.func @transform_11(%arg0: i32) -> (i32, i32) {
    %c0_i32 = arith.constant 0 : i32
    %c0_i32_0 = arith.constant 0 : i32
    %c0_i32_1 = arith.constant 0 : i32
    return %c0_i32, %c0_i32_0 : i32, i32
  }
  func.func @transform_12(%arg0: i32) -> (i32, i32) {
    %c0_i32 = arith.constant 0 : i32
    %c0_i32_0 = arith.constant 0 : i32
    %c0_i32_1 = arith.constant 0 : i32
    return %c0_i32, %c0_i32_0 : i32, i32
  }
  func.func @transform_13(%arg0: i32) -> (i32, i32) {
    %c0_i32 = arith.constant 0 : i32
    %c0_i32_0 = arith.constant 0 : i32
    %c0_i32_1 = arith.constant 0 : i32
    return %c0_i32, %c0_i32_0 : i32, i32
  }
  func.func @transform_14(%arg0: i32) -> (i32, i32) {
    %c0_i32 = arith.constant 0 : i32
    %c0_i32_0 = arith.constant 0 : i32
    %c0_i32_1 = arith.constant 0 : i32
    return %c0_i32, %c0_i32_0 : i32, i32
  }
  func.func @transform_15(%arg0: i32) -> (i32, i32) {
    %c0_i32 = arith.constant 0 : i32
    %c0_i32_0 = arith.constant 0 : i32
    %c0_i32_1 = arith.constant 0 : i32
    return %c0_i32, %c0_i32_0 : i32, i32
  }
  func.func @transform_16(%arg0: i32) -> (i32, i32) {
    %c0_i32 = arith.constant 0 : i32
    %c0_i32_0 = arith.constant 0 : i32
    %c0_i32_1 = arith.constant 0 : i32
    return %c0_i32, %c0_i32_0 : i32, i32
  }
  func.func @transform_17(%arg0: i32) -> (i32, i32) {
    %c0_i32 = arith.constant 0 : i32
    %c0_i32_0 = arith.constant 0 : i32
    %c0_i32_1 = arith.constant 0 : i32
    return %c0_i32, %c0_i32_0 : i32, i32
  }
  func.func @transform_18(%arg0: i32) -> (i32, i32) {
    %c0_i32 = arith.constant 0 : i32
    %c0_i32_0 = arith.constant 0 : i32
    %c0_i32_1 = arith.constant 0 : i32
    return %c0_i32, %c0_i32_0 : i32, i32
  }
  func.func @transform_19(%arg0: i32) -> (i32, i32, i32) {
    %c0_i32 = arith.constant 0 : i32
    %c0_i32_0 = arith.constant 0 : i32
    %c0_i32_1 = arith.constant 0 : i32
    return %arg0, %c0_i32, %c0_i32_0 : i32, i32, i32
  }
}

</mosaic_0001>

<bundles_post_ra>
// kernel: rn_model_forward.1
= control target key start
LH: loop header
LB: loop body
LE: loop exit
PB: predicated region body
PF: predicated region fallthrough
CT: control target
= control target key end

     0   :  { %s9857_s0 = inlined_call_operand.vmem [shape: bf16[2,25,26], index: 0, kind: input, shape index: {}]   ;;  %s9858_s1 = inlined_call_operand.vmem [shape: bf16[2,25,36], index: 1, kind: input, shape index: {}]   ;;  %s9859_s2 = inlined_call_operand.vmem [shape: bf16[625,25], index: 2, kind: input, shape index: {}]   ;;  %s9860_s3 = inlined_call_operand.vmem [shape: bf16[625,25], index: 3, kind: input, shape index: {}]   ;;  %s9861_s4 = inlined_call_operand.vmem [shape: bf16[26,256], index: 4, kind: input, shape index: {}]   ;;  %s9862_s5 = inlined_call_operand.vmem [shape: bf16[36,256], index: 5, kind: input, shape index: {}]   ;;  %s9863_s6 = inlined_call_operand.vmem [shape: f32[1,256], index: 6, kind: input, shape index: {}]   ;;  %s9864_s7 = inlined_call_operand.vmem [shape: bf16[256,256], index: 7, kind: input, shape index: {}]   ;;  %s9865_s8 = inlined_call_operand.vmem [shape: f32[1,256], index: 8, kind: input, shape index: {}]   ;;  %s9866_s9 = inlined_call_operand.vmem [shape: bf16[256,256], index: 9, kind: input, shape index: {}]   ;;  %s9867_s10 = inlined_call_operand.vmem [shape: f32[1,256], index: 10, kind: input, shape index: {}]   ;;  %s9868_s11 = inlined_call_operand.vmem [shape: bf16[256,256], index: 11, kind: input, shape index: {}]   ;;  %s9869_s12 = inlined_call_operand.vmem [shape: f32[1,256], index: 12, kind: input, shape index: {}]   ;;  %s9870_s13 = inlined_call_operand.vmem [shape: bf16[256,256], index: 13, kind: input, shape index: {}]   ;;  %s9871_s14 = inlined_call_operand.vmem [shape: f32[1,256], index: 14, kind: input, shape index: {}]   ;;  %s9872_s15 = inlined_call_operand.vmem [shape: bf16[256,256], index: 15, kind: input, shape index: {}]   ;;  %s9873_s16 = inlined_call_operand.vmem [shape: f32[1,256], index: 16, kind: input, shape index: {}]   ;;  %s9874_s17 = inlined_call_operand.vmem [shape: bf16[256,10], index: 17, kind: input, shape index: {}]   ;;  %s9875_s18 = inlined_call_operand.vmem [shape: f32[1,10], index: 18, kind: input, shape index: {}]   ;;  %s9876_s19 = inlined_call_operand.hbm [shape: f32[2,1,10], index: 19, kind: output, shape index: {}]  }
   0x1   :  { %9900 = sst [smem:[#allocation20_spill]] %s9857_s0 }
   0x2   :  { %9901 = sst [smem:[#allocation21_spill]] %s9858_s1 }
   0x3   :  { %9902 = sst [smem:[#allocation22_spill]] %s9859_s2 }
   0x4   :  { %9903 = sst [smem:[#allocation23_spill]] %s9860_s3 }
   0x5   :  { %9904 = sst [smem:[#allocation24_spill]] %s9861_s4 }
   0x6   :  { %9905 = sst [smem:[#allocation25_spill]] %s9862_s5 }
   0x7   :  { %24 = vsyncpa [#allocation3], 0 }
   0x8   :  { %26 = vsyncpa [#allocation3 + $0x1], 0  ;;  %s7316_s0 = smov 0   ;;  %s7318_s30 = smov 0  }
   0x9   :  { %s7320_s20 = smov 0   ;;  %s7322_s21 = smov 0  }
   0xa LB: > { %9906 = sst [smem:[#allocation5_spill]] %s7199_s0  ;;  %s7337_s1 = sadd.s32 4294967295, %s7211_s21   ;;  %s7211_s21 = sphi %s7322_s21, %s10036_s21   ;;  %s7207_s20 = sphi %s7320_s20, %s10038_s20   ;;  %s7203_s30 = sphi %s7318_s30, %s10040_s30   ;;  %s7199_s0 = sphi %s7316_s0, %s10039_s0  }
   0xb   : > { %9907 = sst [smem:[#allocation6_spill]] %s7207_s20  ;;  %s6197_s22 = sadd.s32 4294967294, %s7211_s21  }
   0xc   : > { %s7341_s2 = sadd.s32 1, %s7211_s21   ;;  %s448_s23 = sadd.s32 1, %s7207_s20 }
   0xd   : > { %9908 = sst [smem:[#allocation7_spill]] %s7341_s2  ;;  %s445_s24 = ssub.s32 %s7211_s21, %s7341_s2 }
   0xe   : > { %p458_p0 = scmp.ne.s32.totalorder %s7207_s20, %s7203_s30  ;;  %p446_p1 = scmp.eq.s32.totalorder %s445_s24, 0 }
   0xf   : > { %p459_p2 = scmp.eq.s32.totalorder %s7337_s1, 1  ;;  %p464_p3 = scmp.ne.s32.totalorder %s7203_s30, %s7199_s0 }
  0x10   : > { %p465_p4 = scmp.eq.s32.totalorder %s6197_s22, 1  ;;  %p6200_p7 = scmp.ge.s32.totalorder %s7211_s21, 1 }
  0x11   : > { %s7352_s25 = scalar_select %p446_p1, %s7207_s20, %s448_s23  }
  0x12   : > { %p7354_p5 = por %p459_p2, %p458_p0  ;;  %p7358_p6 = por %p465_p4, %p464_p3 }
  0x13   : > { %9909 = sst [smem:[#allocation8_spill]] %s7352_s25  ;;  %p550_p8 = scmp.lt.s32.totalorder %s7211_s21, 3 }
  0x14   : > { %s9911_s26 = scalar_select %p7358_p6, 1, 0 }
  0x15   : > { %p551_p9 = pnand %p6200_p7, %p550_p8 }
  0x16   : > { %9912 = sst [smem:[#allocation9_spill]] %s9911_s26 }
  0x17   : > { %554 = sbr.rel (%p551_p9) target bundleno = 2792 (0xae8), region = 96 }
  0x1e   : > { %s9913_s4 = sld [smem:[#allocation24_spill]]  ;;  %vm664_vm0 = vcmask 1044480   ;;  %p610_p10 = scmp.lt.s32.totalorder %s7337_s1, 1  ;;  %v9893_v4 = vmov 0   ;;  %vm657_vm1 = vcmask 211968   ;;  %vm791_vm2 = vcmask 1041408  }
  0x1f   : > { %703 = vmatprep.mubr.bf16.mxu0 %v9893_v4  ;;  %s9914_s5 = sld [smem:[#allocation25_spill]]  ;;  %830 = vmatprep.mubr.bf16.mxu1 %v9893_v4  ;;  %s9915_s26 = sld [smem:[#allocation20_spill]]  ;;  %vm784_vm3 = vcmask 293888   ;;  %v739_v18 = vlaneseq  ;;  %v737_v24 = vld [vmem:[%s9863_s6] sm:$0x3]  ;;  %vm1332_vm4 = vcmask 1043456  }
  0x20   : > { %s611_s27 = scalar_select %p610_p10, %s7337_s1, 1  ;;  %v7214_v31 = vmov 65535   ;;  %vm1211_vm5 = vcmask 203776   ;;  %vm5339_vm6 = vcmask 1040384   ;;  %vm6102_vm7 = vcmask 73728  }
  0x21   : > { %s9916_s25 = sld [smem:[#allocation21_spill]]  ;;  %v740_v19 = vshrl.u32 %v739_v18, 7  ;;  %v1333_v32 = vsel %vm1332_vm4, 4294967295, %v7214_v31  ;;  %s9919_s28 = sld [smem:[#allocation23_spill]]  ;;  %v6853_v31 = vld [vmem:[%s9864_s7] ss:$8 sps:$4 sm:$0xff]  }
  0x22   : > { %s6564_s23 = sshll.u32 %s611_s27, 4  ;;  %v1334_v38 = vsel %vm664_vm0, %v1333_v32, 0  ;;  %v6855_v32 = vld [vmem:[%s9864_s7 + $0x4] ss:$8 sps:$4 sm:$0xff]  }
  0x23   : > { %v7409_v22 = vsub.s32 0, %v740_v19  ;;  %v7414_v25 = vsub.s32 1, %v740_v19 }
  0x24   : > { %v6791_v0 = vld [vmem:[%s9913_s4 + $0x4] ss:$8 sps:$4 sm:$0xff]   ;;  %v6793_v1 = vld [vmem:[%s9913_s4] ss:$8 sps:$4 sm:$0xff]  }
  0x25   : > { %671 = vmatprep.subr.bf16.mxu0 %v6791_v0  ;;  %v6794_v2 = vld [vmem:[%s9913_s4 + $0x14] ss:$8 sps:$4 sm:$0x1f]   ;;  %v6796_v3 = vld [vmem:[%s9913_s4 + $0x10] ss:$8 sps:$4 sm:$0x1f]   ;;  %s614_s0 = scalar_lea.vmem %s9915_s26, %s6564_s23  ;;  %v742_v29 = vrot.slane %v737_v24, %v7409_v22  ;;  %v746_v30 = vrot.slane %v737_v24, %v7414_v25 }
  0x26   : > { %672 = vmatpush1.bf16.msra.mxu0 %v6793_v1  ;;  %v6798_v5 = vld [vmem:[%s9914_s5 + $0x4] ss:$8 sps:$4 sm:$0xff]   ;;  %v6800_v6 = vld [vmem:[%s9914_s5] ss:$8 sps:$4 sm:$0xff]   ;;  %v666_v7 = vsel %vm664_vm0, %v6796_v3, 0  ;;  %9917 = vst [vmem:[#allocation10_spill] sm:$0xff] %v7409_v22 }
  0x27   : > { %6211 = vmatprep.subr.msk.bf16.mxu0 %vm664_vm0, %v6794_v2  ;;  %v6801_v8 = vld [vmem:[%s9914_s5 + $0x14] ss:$8 sps:$4 sm:$0xff]   ;;  %798 = vmatprep.subr.bf16.mxu1 %v6798_v5  ;;  %v6803_v9 = vld [vmem:[%s9914_s5 + $0x10] ss:$8 sps:$4 sm:$0xff]   ;;  %v736_v10 = vld [vmem:[%s9914_s5 + $0x20] sm:$0x33]  ;;  %s619_s4 = scalar_lea.vmem %s9916_s25, %s6564_s23 }
  0x28   : > { %799 = vmatpush1.bf16.msra.mxu1 %v6800_v6  ;;  %v6220_v11 = vcombine.low %v736_v10, %v736_v10  ;;  %v6797_v12 = vld [vmem:[%s614_s0] sm:$0xff]   ;;  %v6221_v13 = vcombine.high %v736_v10, %v736_v10  ;;  %v6804_v15 = vld [vmem:[%s614_s0 + $0x8] sm:$0x1f]   ;;  %9918 = vst [vmem:[#allocation11_spill] sm:$0xff] %v7414_v25  ;;  %v6811_v2 = vld [vmem:[%s9919_s28 + $0x10] sm:$0xff]   ;;  %s9920_s0 = sld [smem:[#allocation22_spill]] }
  0x29   : > { %800 = vmatprep.subr.bf16.mxu1 %v6801_v8  ;;  %v6807_v16 = vld [vmem:[%s619_s4] sm:$0xff]   ;;  %v6808_v17 = vld [vmem:[%s619_s4 + $0x8] sm:$0x1f]   ;;  %v6812_v3 = vld [vmem:[%s9919_s28 + $0x18] sm:$0xff]   ;;  %s608_s4 = sand.u32 1, %s7203_s30  }
  0x2a   : > { %674 = vmatpush1.bf16.msra.mxu0 %v666_v7  ;;  %v793_v14 = vsel %vm791_vm2, %v6220_v11, 0  ;;  %v6809_v52 = vld [vmem:[%s9919_s28] sm:$0xff]   ;;  %v6810_v0 = vld [vmem:[%s9919_s28 + $0x8] sm:$0xff]   ;;  %v6815_v7 = vld [vmem:[%s9919_s28 + $0x30] sm:$0xff]   ;;  %s609_s23 = scalar_lea.vmem [#allocation2], %s608_s4  ;;  %s6118_s22 = scalar_lea.sflag [#allocation3], %s608_s4 }
  0x2b   : > { %v6813_v5 = vld [vmem:[%s9919_s28 + $0x20] sm:$0xff]   ;;  %v6814_v6 = vld [vmem:[%s9919_s28 + $0x28] sm:$0xff]   ;;  %v6816_v8 = vld [vmem:[%s9919_s28 + $0x38] sm:$0xff]   ;;  %s6130_s5 = sshll.u32 %s609_s23, 4  ;;  %s9816_s5 = int_to_ptr.vmem [resolvable:$true] %s6130_s5 }
  0x2c   : > { %801 = vmatpush1.bf16.msra.mxu1 %v6803_v9  ;;  %v6817_v9 = vld [vmem:[%s9919_s28 + $0x40] sm:$0xff]   ;;  %v6818_v10 = vld [vmem:[%s9919_s28 + $0x48] sm:$0xff]   ;;  %v6819_v11 = vld [vmem:[%s9919_s28 + $0x50] sm:$0xff]   ;;  %s7149_s27 = scalar_lea.vmem %s9816_s5, 16 }
  0x2d   : > { %6212 = vmatmul.mubr.msk.bf16.vlgmr.msra.gmra.mrb[0].mxu0 %vm657_vm1, %v6797_v12  ;;  %6222 = vmatprep.subr.msk.bf16.mxu1 %vm791_vm2, %v6221_v13  ;;  %v6820_v12 = vld [vmem:[%s9919_s28 + $0x58] sm:$0xff]   ;;  %v6821_v13 = vld [vmem:[%s9919_s28 + $0x60] sm:$0xff]   ;;  %v6826_v18 = vld [vmem:[%s9919_s28 + $0x88] sm:$0xff]   ;;  %p7150_p11 = scmp.ne.s32.totalorder %s9816_s5, %s7149_s27 }
  0x2e   : > { %713 = vmatprep.mubr.bf16.mxu0 %v9893_v4  ;;  %v6827_v19 = vld [vmem:[%s9919_s28 + $0x90] sm:$0xff]   ;;  %s9921_s26 = smov %s9920_s0 }
  0x2f   : > { %v6831_v24 = vld [vmem:[%s9919_s28 + $0xb0] sm:$0xff]   ;;  %p7151_p12 = pnand %p7150_p11, %p7354_p5 }
  0x30   : > { %803 = vmatpush1.bf16.msra.mxu1 %v793_v14  ;;  %v6822_v14 = vld [vmem:[%s9919_s28 + $0x68] sm:$0xff]  }
  0x31   : > { %p7152_p13 = pneg %p7151_p12 }
  0x33   : > { %6223 = vmatmul.mubr.msk.bf16.vlgmr.msra.gmra.mrb[0].mxu1 %vm784_vm3, %v6807_v16  ;;  %v6824_v16 = vld [vmem:[%s9919_s28 + $0x78] sm:$0xff]  }
  0x34   : > { %840 = vmatprep.mubr.bf16.mxu1 %v9893_v4 }
  0x35   : > { %6213 = vmatmul.mubr.msk.bf16.gmra.mrb[4].mxu0 %vm657_vm1, %v6804_v15  ;;  %v6823_v15 = vld [vmem:[%s9919_s28 + $0x70] sm:$0xff]  }
  0x36   : > { %1373 = vmatprep.mubr.bf16.mxu0 %v9893_v4 }
  0x3b   : > { %6224 = vmatmul.mubr.msk.bf16.gmra.mrb[4].mxu1 %vm784_vm3, %v6808_v17  ;;  %v6825_v17 = vld [vmem:[%s9919_s28 + $0x80] sm:$0xff]  }
  0x3c   : > { %1643 = vmatprep.mubr.bf16.mxu1 %v9893_v4 }
 0x100   : > { %v705_v20 = vpop.f32.mrb[0].mxu0 }
 0x101   : > { %v707_v21 = vpop.f32.mrb[1].mxu0 }
 0x102   : > { %v709_v23 = vpop.f32.mrb[2].mxu0 }
 0x103   : > { %v724_v26 = vpack.c.bf16 %v709_v23, %v705_v20  ;;  %v711_v27 = vpop.f32.mrb[3].mxu0  ;;  %v6828_v20 = vld [vmem:[%s9919_s28 + $0x98] sm:$0xff]   ;;  %v6830_v23 = vld [vmem:[%s9919_s28 + $0xa8] sm:$0xff]  }
 0x104   : > { %v725_v28 = vpack.c.bf16 %v711_v27, %v707_v21  ;;  %v6829_v21 = vld [vmem:[%s9919_s28 + $0xa0] sm:$0xff]  }
 0x105   : > { %v6833_v27 = vld [vmem:[%s9919_s28 + $0xc0] sm:$0xff]  }
 0x106   : > { %1341 = vmatprep.subr.bf16.mxu0 %v725_v28  ;;  %6588 = vmatprep.subr.bf16.mxu1 %v725_v28  ;;  %v832_v34 = vpop.f32.mrb[0].mxu1  ;;  %v6834_v28 = vld [vmem:[%s9919_s28 + $0xc8] sm:$0xff]  }
 0x107   : > { %1342 = vmatpush1.bf16.msra.mxu0 %v724_v26  ;;  %6590 = vmatpush1.bf16.msra.mxu1 %v724_v26  ;;  %v833_v36 = vadd.f32 %v832_v34, %v742_v29  ;;  %v834_v37 = vpop.f32.mrb[1].mxu1  ;;  %v6832_v26 = vld [vmem:[%s9919_s28 + $0xb8] sm:$0xff]   ;;  %v6836_v34 = vld [vmem:[%s9920_s0] sm:$0xff]   ;;  %s6561_s0 = sshll.u32 %s7337_s1, 4  ;;  %s7215_s1 = smov [#allocation2]  }
 0x108   : > { %v715_v33 = vpop.f32.mrb[4].mxu0  ;;  %v835_v40 = vadd.f32 %v834_v37, %v746_v30  ;;  %v836_v41 = vpop.f32.mrb[2].mxu1  ;;  %v6861_v37 = vld [vmem:[%s9919_s28 + $0xe8] sm:$0xff]   ;;  %s9814_s2 = scalar_lea.hbm %s9876_s19, %s6561_s0  ;;  %s7153_s20 = sshll.u32 %s7215_s1, 4  ;;  %s7154_s20 = int_to_ptr.vmem [resolvable:$false] %s7153_s20 }
 0x109   : > { %v717_v35 = vpop.f32.mrb[5].mxu0  ;;  %v837_v44 = vadd.f32 %v836_v41, %v742_v29  ;;  %v838_v45 = vpop.f32.mrb[3].mxu1  ;;  %v6866_v41 = vld [vmem:[%s9919_s28 + $0xf0] sm:$0xff]   ;;  %s7155_s25 = scalar_lea.vmem %s7154_s20, 32  ;;  %p7156_p0 = scmp.lt.s32.totalorder %s9816_s5, %s7154_s20 }
 0x10a   : > { %v719_v39 = vpop.f32.mrb[6].mxu0  ;;  %v839_v47 = vadd.f32 %v838_v45, %v746_v30  ;;  %v6871_v45 = vld [vmem:[%s9919_s28 + $0xf8] sm:$0xff]   ;;  %p7157_p1 = scmp.lt.s32.totalorder %s7155_s25, %s7149_s27 }
 0x10b   : > { %v726_v42 = vpack.c.bf16 %v719_v39, %v715_v33  ;;  %v721_v43 = vpop.f32.mrb[7].mxu0  ;;  %v851_v49 = vpack.c.bf16 %v837_v44, %v833_v36  ;;  %v6856_v33 = vld [vmem:[%s9919_s28 + $0xe0] sm:$0xff]   ;;  %v6860_v36 = vld [vmem:[%s9864_s7 + $0x14] ss:$8 sps:$4 sm:$0xff]  }
 0x10c   : > { %v727_v46 = vpack.c.bf16 %v721_v43, %v717_v35  ;;  %v852_v51 = vpack.c.bf16 %v839_v47, %v835_v40  ;;  %v6858_v35 = vld [vmem:[%s9864_s7 + $0x10] ss:$8 sps:$4 sm:$0xff]   ;;  %v6862_v39 = vld [vmem:[%s9864_s7 + $0x20] ss:$8 sps:$4 sm:$0xff]   ;;  %v6869_v43 = vld [vmem:[%s9864_s7 + $0x34] ss:$8 sps:$4 sm:$0xff]   ;;  %p7158_p2 = por %p7157_p1, %p7156_p0 }
 0x10d   : > { %v1336_v48 = vand.u32 %v1334_v38, %v726_v42  ;;  %v6837_v40 = vld [vmem:[%s9921_s26 + $0x8] sm:$0xff]   ;;  %v6867_v42 = vld [vmem:[%s9864_s7 + $0x30] ss:$8 sps:$4 sm:$0xff]  }
 0x10e   : > { %v1339_v50 = vand.u32 %v1334_v38, %v727_v46  ;;  %v842_v53 = vpop.f32.mrb[4].mxu1  ;;  %v6838_v44 = vld [vmem:[%s9921_s26 + $0x10] sm:$0xff]   ;;  %v6872_v46 = vld [vmem:[%s9864_s7 + $0x40] ss:$8 sps:$4 sm:$0xff]   ;;  %v6874_v47 = vld [vmem:[%s9864_s7 + $0x44] ss:$8 sps:$4 sm:$0xff]   ;;  %p7159_p3 = pnand %p7158_p2, %p7152_p13 }
 0x10f   : > { %v843_v54 = vadd.f32 %v842_v53, %v742_v29  ;;  %v844_v55 = vpop.f32.mrb[5].mxu1  ;;  %v6881_v53 = vld [vmem:[%s9864_s7 + $0x60] ss:$8 sps:$4 sm:$0xff]  }
 0x110   : > { %1343 = vmatprep.subr.bf16.mxu0 %v1339_v50  ;;  %6589 = vmatprep.subr.bf16.mxu1 %v1339_v50  ;;  %v845_v56 = vadd.f32 %v844_v55, %v746_v30  ;;  %v846_v57 = vpop.f32.mrb[6].mxu1  ;;  %v6878_v50 = vld [vmem:[%s9864_s7 + $0x54] ss:$8 sps:$4 sm:$0xff]   ;;  %v6884_v55 = vld [vmem:[%s9919_s28 + $0x108] sm:$0xff]  }
 0x111   : > { %1344 = vmatpush1.bf16.msra.mxu0 %v1336_v48  ;;  %6591 = vmatpush1.bf16.msra.mxu1 %v1336_v48  ;;  %v847_v58 = vadd.f32 %v846_v57, %v742_v29  ;;  %v848_v59 = vpop.f32.mrb[7].mxu1  ;;  %v6851_v29 = vld [vmem:[%s9919_s28 + $0xd8] sm:$0xff]  }
 0x112   : > { %2096 = vmatprep.subr.bf16.mxu0 %v852_v51  ;;  %v849_v60 = vadd.f32 %v848_v59, %v746_v30  ;;  %v6835_v30 = vld [vmem:[%s9919_s28 + $0xd0] sm:$0xff]   ;;  %2879 = vmatprep.subr.bf16.mxu1 %v6855_v32  ;;  %v6839_v48 = vld [vmem:[%s9921_s26 + $0x18] sm:$0xff]   ;;  %v6879_v51 = vld [vmem:[%s9919_s28 + $0x100] sm:$0xff]  }
 0x113   : > { %v853_v61 = vpack.c.bf16 %v847_v58, %v843_v54  ;;  %v6883_v54 = vld [vmem:[%s9864_s7 + $0x64] ss:$8 sps:$4 sm:$0xff]   ;;  %v6886_v57 = vld [vmem:[%s9864_s7 + $0x70] ss:$8 sps:$4 sm:$0xff]   ;;  %v6888_v58 = vld [vmem:[%s9864_s7 + $0x74] ss:$8 sps:$4 sm:$0xff]  }
 0x114   : > { %6265 = vmatmul.mubr.msk.bf16.vlgmr.msra.gmra.mrb[8].mxu0 %vm1211_vm5, %v6809_v52  ;;  %v854_v62 = vpack.c.bf16 %v849_v60, %v845_v56  ;;  %6292 = vmatmul.mubr.msk.bf16.vlgmr.msra.gmra.mrb[8].mxu1 %vm1211_vm5, %v6851_v29  ;;  %v6840_v52 = vld [vmem:[%s9921_s26 + $0x20] sm:$0xff]   ;;  %v6841_v56 = vld [vmem:[%s9921_s26 + $0x28] sm:$0xff]   ;;  %v6889_v59 = vld [vmem:[%s9919_s28 + $0x110] sm:$0xff]  }
 0x115   : > { %2097 = vmatpush1.bf16.msra.mxu0 %v851_v49  ;;  %1383 = vmatprep.mubr.bf16.mxu0 %v9893_v4  ;;  %v2091_v63 = vand.u32 %v1334_v38, %v853_v61  ;;  %v6876_v49 = vld [vmem:[%s9864_s7 + $0x50] ss:$8 sps:$4 sm:$0xff]   ;;  %v6892_v60 = vld [vmem:[%s9864_s7 + $0x84] ss:$8 sps:$4 sm:$0xff]   ;;  %v6890_v61 = vld [vmem:[%s9864_s7 + $0x80] ss:$8 sps:$4 sm:$0xff]  }
 0x116   : > { %v2094_v1 = vand.u32 %v1334_v38, %v854_v62  ;;  %1653 = vmatprep.mubr.bf16.mxu1 %v9893_v4  ;;  %2880 = vmatpush1.bf16.msra.mxu1 %v6853_v31  ;;  %v6864_v38 = vld [vmem:[%s9864_s7 + $0x24] ss:$8 sps:$4 sm:$0xff]   ;;  %v6842_v62 = vld [vmem:[%s9921_s26 + $0x30] sm:$0xff]  }
 0x117   : > { %2881 = vmatprep.subr.bf16.mxu1 %v6860_v36  ;;  %v6850_v29 = vld [vmem:[%s9921_s26 + $0x70] sm:$0xff]   ;;  %v6857_v31 = vld [vmem:[%s9921_s26 + $0x80] sm:$0xff]   ;;  %v6865_v32 = vld [vmem:[%s9921_s26 + $0x88] sm:$0xff]  }
 0x118   : > { %2098 = vmatprep.subr.bf16.mxu0 %v2094_v1  ;;  %v6897_v1 = vld [vmem:[%s9864_s7 + $0x94] ss:$8 sps:$4 sm:$0xff]   ;;  %v6885_v36 = vld [vmem:[%s9921_s26 + $0xa8] sm:$0xff]  }
 0x119   : > { %2099 = vmatpush1.bf16.msra.mxu0 %v2091_v63  ;;  %v6894_v63 = vld [vmem:[%s9919_s28 + $0x118] sm:$0xff]  }
 0x11a   : > { %2882 = vmatpush1.bf16.msra.mxu1 %v6858_v35  ;;  %v6880_v35 = vld [vmem:[%s9921_s26 + $0xa0] sm:$0xff]  }
 0x11b   : > { %2883 = vmatprep.subr.bf16.mxu1 %v6864_v38  ;;  %v6898_v38 = vld [vmem:[%s9921_s26 + $0xb8] sm:$0xff]  }
 0x11c   : > { %6266 = vmatmul.mubr.msk.bf16.gmra.mrb[12].mxu0 %vm1211_vm5, %v6810_v0  ;;  %6293 = vmatmul.mubr.msk.bf16.gmra.mrb[12].mxu1 %vm1211_vm5, %v6856_v33  ;;  %v6895_v0 = vld [vmem:[%s9864_s7 + $0x90] ss:$8 sps:$4 sm:$0xff]  }
 0x11d   : > { %1393 = vmatprep.mubr.bf16.mxu0 %v9893_v4  ;;  %1663 = vmatprep.mubr.bf16.mxu1 %v9893_v4  ;;  %v6870_v33 = vld [vmem:[%s9921_s26 + $0x90] sm:$0xff]  }
 0x11e   : > { %2884 = vmatpush1.bf16.msra.mxu1 %v6862_v39  ;;  %v6903_v39 = vld [vmem:[%s9921_s26 + $0xc0] sm:$0xff]  }
 0x11f   : > { %2885 = vmatprep.subr.bf16.mxu1 %v6869_v43 }
 0x122   : > { %2886 = vmatpush1.bf16.msra.mxu1 %v6867_v42 }
 0x123   : > { %2887 = vmatprep.subr.bf16.mxu1 %v6874_v47 }
 0x124   : > { %6267 = vmatmul.mubr.msk.bf16.gmra.mrb[16].mxu0 %vm1211_vm5, %v6811_v2  ;;  %6294 = vmatmul.mubr.msk.bf16.gmra.mrb[16].mxu1 %vm1211_vm5, %v6861_v37  ;;  %v6843_v2 = vld [vmem:[%s9921_s26 + $0x38] sm:$0xff]   ;;  %v6893_v37 = vld [vmem:[%s9921_s26 + $0xb0] sm:$0xff]  }
 0x125   : > { %1403 = vmatprep.mubr.bf16.mxu0 %v9893_v4  ;;  %1673 = vmatprep.mubr.bf16.mxu1 %v9893_v4 }
 0x126   : > { %2888 = vmatpush1.bf16.msra.mxu1 %v6872_v46 }
 0x127   : > { %2889 = vmatprep.subr.bf16.mxu1 %v6878_v50 }
 0x12a   : > { %2890 = vmatpush1.bf16.msra.mxu1 %v6876_v49 }
 0x12b   : > { %2891 = vmatprep.subr.bf16.mxu1 %v6883_v54 }
 0x12c   : > { %6268 = vmatmul.mubr.msk.bf16.gmra.mrb[20].mxu0 %vm1211_vm5, %v6812_v3  ;;  %6295 = vmatmul.mubr.msk.bf16.gmra.mrb[20].mxu1 %vm1211_vm5, %v6866_v41  ;;  %v6899_v3 = vld [vmem:[%s9864_s7 + $0xa0] ss:$8 sps:$4 sm:$0xff]  }
 0x12d   : > { %1413 = vmatprep.mubr.bf16.mxu0 %v9893_v4  ;;  %1683 = vmatprep.mubr.bf16.mxu1 %v9893_v4 }
 0x12e   : > { %2892 = vmatpush1.bf16.msra.mxu1 %v6881_v53 }
 0x12f   : > { %2893 = vmatprep.subr.bf16.mxu1 %v6888_v58 }
 0x132   : > { %2894 = vmatpush1.bf16.msra.mxu1 %v6886_v57 }
 0x133   : > { %2895 = vmatprep.subr.bf16.mxu1 %v6892_v60 }
 0x134   : > { %6269 = vmatmul.mubr.msk.bf16.gmra.mrb[24].mxu0 %vm1211_vm5, %v6813_v5  ;;  %6296 = vmatmul.mubr.msk.bf16.gmra.mrb[24].mxu1 %vm1211_vm5, %v6871_v45  ;;  %v6901_v5 = vld [vmem:[%s9864_s7 + $0xa4] ss:$8 sps:$4 sm:$0xff]   ;;  %v6916_v45 = vld [vmem:[%s9921_s26 + $0xd0] sm:$0xff]  }
 0x135   : > { %1423 = vmatprep.mubr.bf16.mxu0 %v9893_v4  ;;  %1693 = vmatprep.mubr.bf16.mxu1 %v9893_v4 }
 0x136   : > { %2896 = vmatpush1.bf16.msra.mxu1 %v6890_v61  ;;  %v6926_v61 = vld [vmem:[%s9866_s9] ss:$8 sps:$4 sm:$0xff]  }
 0x137   : > { %2897 = vmatprep.subr.bf16.mxu1 %v6897_v1 }
 0x13a   : > { %2898 = vmatpush1.bf16.msra.mxu1 %v6895_v0  ;;  %v6933_v0 = vld [vmem:[%s9866_s9 + $0x14] ss:$8 sps:$4 sm:$0xff]  }
 0x13b   : > { %2899 = vmatprep.subr.bf16.mxu1 %v6901_v5 }
 0x13c   : > { %6270 = vmatmul.mubr.msk.bf16.gmra.mrb[28].mxu0 %vm1211_vm5, %v6814_v6  ;;  %6297 = vmatmul.mubr.msk.bf16.gmra.mrb[28].mxu1 %vm1211_vm5, %v6879_v51  ;;  %v6902_v6 = vld [vmem:[%s9919_s28 + $0x120] sm:$0xff]  }
 0x13d   : > { %1433 = vmatprep.mubr.bf16.mxu0 %v9893_v4  ;;  %1703 = vmatprep.mubr.bf16.mxu1 %v9893_v4 }
 0x13e   : > { %2900 = vmatpush1.bf16.msra.mxu1 %v6899_v3  ;;  %v6925_v3 = vld [vmem:[%s9921_s26 + $0xe0] sm:$0xff]  }
 0x144   : > { %6271 = vmatmul.mubr.msk.bf16.gmra.mrb[32].mxu0 %vm1211_vm5, %v6815_v7  ;;  %6298 = vmatmul.mubr.msk.bf16.gmra.mrb[32].mxu1 %vm1211_vm5, %v6884_v55  ;;  %v6844_v7 = vld [vmem:[%s9921_s26 + $0x40] sm:$0xff]  }
 0x145   : > { %1443 = vmatprep.mubr.bf16.mxu0 %v9893_v4  ;;  %1713 = vmatprep.mubr.bf16.mxu1 %v9893_v4 }
 0x14c   : > { %6272 = vmatmul.mubr.msk.bf16.gmra.mrb[36].mxu0 %vm1211_vm5, %v6816_v8  ;;  %6299 = vmatmul.mubr.msk.bf16.gmra.mrb[36].mxu1 %vm1211_vm5, %v6889_v59  ;;  %v6904_v8 = vld [vmem:[%s9864_s7 + $0xb0] ss:$8 sps:$4 sm:$0xff]  }
 0x14d   : > { %1453 = vmatprep.mubr.bf16.mxu0 %v9893_v4  ;;  %1723 = vmatprep.mubr.bf16.mxu1 %v9893_v4 }
 0x154   : > { %6273 = vmatmul.mubr.msk.bf16.gmra.mrb[40].mxu0 %vm1211_vm5, %v6817_v9  ;;  %6300 = vmatmul.mubr.msk.bf16.gmra.mrb[40].mxu1 %vm1211_vm5, %v6894_v63  ;;  %v6906_v9 = vld [vmem:[%s9864_s7 + $0xb4] ss:$8 sps:$4 sm:$0xff]  }
 0x155   : > { %1463 = vmatprep.mubr.bf16.mxu0 %v9893_v4  ;;  %1733 = vmatprep.mubr.bf16.mxu1 %v9893_v4 }
 0x156   : > { %2901 = vmatprep.subr.bf16.mxu1 %v6906_v9  ;;  %v6939_v9 = vld [vmem:[%s9866_s9 + $0x24] ss:$8 sps:$4 sm:$0xff]  }
 0x157   : > { %2902 = vmatpush1.bf16.msra.mxu1 %v6904_v8 }
 0x15c   : > { %6274 = vmatmul.mubr.msk.bf16.gmra.mrb[44].mxu0 %vm1211_vm5, %v6818_v10  ;;  %6301 = vmatmul.mubr.msk.bf16.gmra.mrb[44].mxu1 %vm1211_vm5, %v6902_v6  ;;  %v6907_v10 = vld [vmem:[%s9919_s28 + $0x128] sm:$0xff]   ;;  %v6931_v6 = vld [vmem:[%s9866_s9 + $0x10] ss:$8 sps:$4 sm:$0xff]  }
 0x15d   : > { %1473 = vmatprep.mubr.bf16.mxu0 %v9893_v4  ;;  %1743 = vmatprep.mubr.bf16.mxu1 %v9893_v4 }
 0x164   : > { %6275 = vmatmul.mubr.msk.bf16.gmra.mrb[48].mxu0 %vm1211_vm5, %v6819_v11  ;;  %6302 = vmatmul.mubr.msk.bf16.gmra.mrb[48].mxu1 %vm1211_vm5, %v6907_v10  ;;  %v6845_v11 = vld [vmem:[%s9921_s26 + $0x48] sm:$0xff]  }
 0x165   : > { %1483 = vmatprep.mubr.bf16.mxu0 %v9893_v4  ;;  %1753 = vmatprep.mubr.bf16.mxu1 %v9893_v4 }
 0x16c   : > { %6276 = vmatmul.mubr.msk.bf16.gmra.mrb[52].mxu0 %vm1211_vm5, %v6820_v12  ;;  %v6909_v12 = vld [vmem:[%s9864_s7 + $0xc0] ss:$8 sps:$4 sm:$0xff]  }
 0x16d   : > { %1493 = vmatprep.mubr.bf16.mxu0 %v9893_v4 }
 0x174   : > { %6277 = vmatmul.mubr.msk.bf16.gmra.mrb[56].mxu0 %vm1211_vm5, %v6821_v13  ;;  %v6911_v13 = vld [vmem:[%s9864_s7 + $0xc4] ss:$8 sps:$4 sm:$0xff]  }
 0x175   : > { %1503 = vmatprep.mubr.bf16.mxu0 %v9893_v4  ;;  %2903 = vmatprep.subr.bf16.mxu1 %v6911_v13 }
 0x176   : > { %2904 = vmatpush1.bf16.msra.mxu1 %v6909_v12 }
 0x17c   : > { %6278 = vmatmul.mubr.msk.bf16.gmra.mrb[60].mxu0 %vm1211_vm5, %v6822_v14  ;;  %v6912_v14 = vld [vmem:[%s9919_s28 + $0x130] sm:$0xff]  }
 0x17d   : > { %1513 = vmatprep.mubr.bf16.mxu0 %v9893_v4  ;;  %6303 = vmatmul.mubr.msk.bf16.gmra.mrb[52].mxu1 %vm1211_vm5, %v6912_v14 }
 0x17e   : > { %1763 = vmatprep.mubr.bf16.mxu1 %v9893_v4 }
 0x184   : > { %6279 = vmatmul.mubr.msk.bf16.gmra.mrb[64].mxu0 %vm1211_vm5, %v6823_v15  ;;  %v6915_v15 = vld [vmem:[%s9864_s7 + $0xd4] ss:$8 sps:$4 sm:$0xff]  }
 0x185   : > { %1523 = vmatprep.mubr.bf16.mxu0 %v9893_v4  ;;  %2905 = vmatprep.subr.bf16.mxu1 %v6915_v15  ;;  %v6937_v15 = vld [vmem:[%s9866_s9 + $0x20] ss:$8 sps:$4 sm:$0xff]  }
 0x18c   : > { %6280 = vmatmul.mubr.msk.bf16.gmra.mrb[68].mxu0 %vm1211_vm5, %v6824_v16  ;;  %v6913_v16 = vld [vmem:[%s9864_s7 + $0xd0] ss:$8 sps:$4 sm:$0xff]  }
 0x18d   : > { %1533 = vmatprep.mubr.bf16.mxu0 %v9893_v4  ;;  %2906 = vmatpush1.bf16.msra.mxu1 %v6913_v16 }
 0x194   : > { %6281 = vmatmul.mubr.msk.bf16.gmra.mrb[72].mxu0 %vm1211_vm5, %v6825_v17  ;;  %v6846_v17 = vld [vmem:[%s9921_s26 + $0x50] sm:$0xff]  }
 0x195   : > { %1543 = vmatprep.mubr.bf16.mxu0 %v9893_v4 }
 0x19c   : > { %6282 = vmatmul.mubr.msk.bf16.gmra.mrb[76].mxu0 %vm1211_vm5, %v6826_v18  ;;  %v6917_v18 = vld [vmem:[%s9919_s28 + $0x138] ss:$0 sps:$4 sm:$0x11]  }
 0x19d   : > { %1553 = vmatprep.mubr.bf16.mxu0 %v9893_v4  ;;  %6304 = vmatmul.mubr.msk.bf16.gmra.mrb[56].mxu1 %vm1211_vm5, %v6917_v18  ;;  %v6944_v18 = vld [vmem:[%s9866_s9 + $0x34] ss:$8 sps:$4 sm:$0xff]  }
 0x1a4   : > { %6283 = vmatmul.mubr.msk.bf16.gmra.mrb[80].mxu0 %vm1211_vm5, %v6827_v19  ;;  %v6920_v19 = vld [vmem:[%s9864_s7 + $0xe4] ss:$8 sps:$4 sm:$0xff]  }
 0x1a5   : > { %1563 = vmatprep.mubr.bf16.mxu0 %v9893_v4  ;;  %2907 = vmatprep.subr.bf16.mxu1 %v6920_v19 }
 0x1ac   : > { %6284 = vmatmul.mubr.msk.bf16.gmra.mrb[84].mxu0 %vm1211_vm5, %v6828_v20  ;;  %v6918_v20 = vld [vmem:[%s9864_s7 + $0xe0] ss:$8 sps:$4 sm:$0xff]  }
 0x1ad   : > { %1573 = vmatprep.mubr.bf16.mxu0 %v9893_v4  ;;  %2908 = vmatpush1.bf16.msra.mxu1 %v6918_v20 }
 0x1b4   : > { %6285 = vmatmul.mubr.msk.bf16.gmra.mrb[88].mxu0 %vm1211_vm5, %v6829_v21  ;;  %v6847_v21 = vld [vmem:[%s9921_s26 + $0x58] sm:$0xff]  }
 0x1b5   : > { %1583 = vmatprep.mubr.bf16.mxu0 %v9893_v4 }
 0x1bc   : > { %6286 = vmatmul.mubr.msk.bf16.gmra.mrb[92].mxu0 %vm1211_vm5, %v6830_v23  ;;  %v6924_v23 = vld [vmem:[%s9864_s7 + $0xf4] ss:$8 sps:$4 sm:$0xff]  }
 0x1bd   : > { %1593 = vmatprep.mubr.bf16.mxu0 %v9893_v4  ;;  %2909 = vmatprep.subr.bf16.mxu1 %v6924_v23 }
 0x1c4   : > { %6287 = vmatmul.mubr.msk.bf16.gmra.mrb[96].mxu0 %vm1211_vm5, %v6831_v24  ;;  %v6922_v24 = vld [vmem:[%s9864_s7 + $0xf0] ss:$8 sps:$4 sm:$0xff]  }
 0x1c5   : > { %1603 = vmatprep.mubr.bf16.mxu0 %v9893_v4  ;;  %2910 = vmatpush1.bf16.msra.mxu1 %v6922_v24  ;;  %v6942_v24 = vld [vmem:[%s9866_s9 + $0x30] ss:$8 sps:$4 sm:$0xff]  }
 0x1cc   : > { %6288 = vmatmul.mubr.msk.bf16.gmra.mrb[100].mxu0 %vm1211_vm5, %v6832_v26  ;;  %v6848_v26 = vld [vmem:[%s9921_s26 + $0x60] sm:$0xff]  }
 0x1cd   : > { %1613 = vmatprep.mubr.bf16.mxu0 %v9893_v4 }
 0x1d4   : > { %6289 = vmatmul.mubr.msk.bf16.gmra.mrb[104].mxu0 %vm1211_vm5, %v6833_v27  ;;  %v6928_v27 = vld [vmem:[%s9866_s9 + $0x4] ss:$8 sps:$4 sm:$0xff]  }
 0x1d5   : > { %1623 = vmatprep.mubr.bf16.mxu0 %v9893_v4  ;;  %3770 = vmatprep.subr.bf16.mxu1 %v6928_v27 }
 0x1dc   : > { %6290 = vmatmul.mubr.msk.bf16.gmra.mrb[108].mxu0 %vm1211_vm5, %v6834_v28  ;;  %v6849_v28 = vld [vmem:[%s9921_s26 + $0x68] sm:$0xff]  }
 0x1dd   : > { %1633 = vmatprep.mubr.bf16.mxu0 %v9893_v4 }
 0x1e4   : > { %6291 = vmatmul.mubr.msk.bf16.gmra.mrb[112].mxu0 %vm1211_vm5, %v6835_v30  ;;  %v6852_v30 = vld [vmem:[%s9921_s26 + $0x78] sm:$0xff]  }
 0x1e5   : > { %2128 = vmatprep.mubr.bf16.mxu0 %v9893_v4 }
 0x1e7   : > { %v7845_v41 = vpop.f32.mrb[8].mxu1 }
 0x1e8   : > { %v7847_v42 = vpop.f32.mrb[9].mxu1 }
 0x1e9   : > { %v7850_v43 = vpop.f32.mrb[10].mxu1 }
 0x1ec   : > { %6345 = vmatmul.mubr.msk.bf16.vlgmr.msra.gmra.mrb[8].mxu0 %vm1211_vm5, %v6836_v34  ;;  %v6875_v34 = vld [vmem:[%s9921_s26 + $0x98] sm:$0xff]  }
 0x1ed   : > { %2138 = vmatprep.mubr.bf16.mxu0 %v9893_v4 }
 0x1f4   : > { %6346 = vmatmul.mubr.msk.bf16.gmra.mrb[12].mxu0 %vm1211_vm5, %v6837_v40  ;;  %v6908_v40 = vld [vmem:[%s9921_s26 + $0xc8] sm:$0xff]  }
 0x1f5   : > { %2148 = vmatprep.mubr.bf16.mxu0 %v9893_v4 }
 0x1fc   : > { %6347 = vmatmul.mubr.msk.bf16.gmra.mrb[16].mxu0 %vm1211_vm5, %v6838_v44  ;;  %v7853_v44 = vpop.f32.mrb[11].mxu1 }
 0x1fd   : > { %2158 = vmatprep.mubr.bf16.mxu0 %v9893_v4  ;;  %v7858_v46 = vpop.f32.mrb[12].mxu1 }
 0x1fe   : > { %v7860_v47 = vpop.f32.mrb[13].mxu1 }
 0x204   : > { %6348 = vmatmul.mubr.msk.bf16.gmra.mrb[20].mxu0 %vm1211_vm5, %v6839_v48  ;;  %v7863_v48 = vpop.f32.mrb[14].mxu1 }
 0x205   : > { %2168 = vmatprep.mubr.bf16.mxu0 %v9893_v4  ;;  %v7866_v49 = vpop.f32.mrb[15].mxu1 }
 0x20c   : > { %6349 = vmatmul.mubr.msk.bf16.gmra.mrb[24].mxu0 %vm1211_vm5, %v6840_v52  ;;  %v6921_v52 = vld [vmem:[%s9921_s26 + $0xd8] sm:$0xff]  }
 0x20d   : > { %2178 = vmatprep.mubr.bf16.mxu0 %v9893_v4 }
 0x214   : > { %6350 = vmatmul.mubr.msk.bf16.gmra.mrb[28].mxu0 %vm1211_vm5, %v6841_v56  ;;  %v7871_v56 = vpop.f32.mrb[16].mxu1 }
 0x215   : > { %2188 = vmatprep.mubr.bf16.mxu0 %v9893_v4  ;;  %v7873_v58 = vpop.f32.mrb[17].mxu1 }
 0x216   : > { %v7876_v59 = vpop.f32.mrb[18].mxu1 }
 0x21c   : > { %6351 = vmatmul.mubr.msk.bf16.gmra.mrb[32].mxu0 %vm1211_vm5, %v6842_v62  ;;  %v7883_v62 = vpop.f32.mrb[19].mxu1 }
 0x21d   : > { %2198 = vmatprep.mubr.bf16.mxu0 %v9893_v4  ;;  %v7898_v10 = vpop.f32.mrb[20].mxu1 }
 0x21e   : > { %v7900_v12 = vpop.f32.mrb[21].mxu1 }
 0x21f   : > { %v7903_v13 = vpop.f32.mrb[22].mxu1 }
 0x220   : > { %v7910_v16 = vpop.f32.mrb[23].mxu1 }
 0x224   : > { %6352 = vmatmul.mubr.msk.bf16.gmra.mrb[36].mxu0 %vm1211_vm5, %v6843_v2 }
 0x225   : > { %2208 = vmatprep.mubr.bf16.mxu0 %v9893_v4 }
 0x22c   : > { %6353 = vmatmul.mubr.msk.bf16.gmra.mrb[40].mxu0 %vm1211_vm5, %v6844_v7 }
 0x22d   : > { %2218 = vmatprep.mubr.bf16.mxu0 %v9893_v4 }
 0x234   : > { %6354 = vmatmul.mubr.msk.bf16.gmra.mrb[44].mxu0 %vm1211_vm5, %v6845_v11 }
 0x235   : > { %2228 = vmatprep.mubr.bf16.mxu0 %v9893_v4 }
 0x23c   : > { %6355 = vmatmul.mubr.msk.bf16.gmra.mrb[48].mxu0 %vm1211_vm5, %v6846_v17 }
 0x23d   : > { %2238 = vmatprep.mubr.bf16.mxu0 %v9893_v4 }
 0x244   : > { %6356 = vmatmul.mubr.msk.bf16.gmra.mrb[52].mxu0 %vm1211_vm5, %v6847_v21  ;;  %v6929_v21 = vld [vmem:[%s9921_s26 + $0xe8] sm:$0xff]  }
 0x245   : > { %2248 = vmatprep.mubr.bf16.mxu0 %v9893_v4 }
 0x24c   : > { %6357 = vmatmul.mubr.msk.bf16.gmra.mrb[56].mxu0 %vm1211_vm5, %v6848_v26 }
 0x24d   : > { %2258 = vmatprep.mubr.bf16.mxu0 %v9893_v4 }
 0x254   : > { %6358 = vmatmul.mubr.msk.bf16.gmra.mrb[60].mxu0 %vm1211_vm5, %v6849_v28  ;;  %v6950_v28 = vld [vmem:[%s9866_s9 + $0x44] ss:$8 sps:$4 sm:$0xff]  }
 0x255   : > { %2268 = vmatprep.mubr.bf16.mxu0 %v9893_v4 }
 0x25c   : > { %6359 = vmatmul.mubr.msk.bf16.gmra.mrb[64].mxu0 %vm1211_vm5, %v6850_v29  ;;  %v7925_v29 = vpop.f32.mrb[24].mxu1 }
 0x25d   : > { %2278 = vmatprep.mubr.bf16.mxu0 %v9893_v4 }
 0x264   : > { %6360 = vmatmul.mubr.msk.bf16.gmra.mrb[68].mxu0 %vm1211_vm5, %v6852_v30 }
 0x265   : > { %2288 = vmatprep.mubr.bf16.mxu0 %v9893_v4 }
 0x26c   : > { %6361 = vmatmul.mubr.msk.bf16.gmra.mrb[72].mxu0 %vm1211_vm5, %v6857_v31  ;;  %v7927_v31 = vpop.f32.mrb[25].mxu1 }
 0x26d   : > { %2298 = vmatprep.mubr.bf16.mxu0 %v9893_v4 }
 0x274   : > { %6362 = vmatmul.mubr.msk.bf16.gmra.mrb[76].mxu0 %vm1211_vm5, %v6865_v32  ;;  %v7930_v32 = vpop.f32.mrb[26].mxu1 }
 0x275   : > { %2308 = vmatprep.mubr.bf16.mxu0 %v9893_v4 }
 0x27c   : > { %6363 = vmatmul.mubr.msk.bf16.gmra.mrb[80].mxu0 %vm1211_vm5, %v6870_v33 }
 0x27d   : > { %2318 = vmatprep.mubr.bf16.mxu0 %v9893_v4 }
 0x284   : > { %6364 = vmatmul.mubr.msk.bf16.gmra.mrb[84].mxu0 %vm1211_vm5, %v6875_v34  ;;  %v6948_v34 = vld [vmem:[%s9866_s9 + $0x40] ss:$8 sps:$4 sm:$0xff]  }
 0x285   : > { %2328 = vmatprep.mubr.bf16.mxu0 %v9893_v4 }
 0x28c   : > { %6365 = vmatmul.mubr.msk.bf16.gmra.mrb[88].mxu0 %vm1211_vm5, %v6880_v35  ;;  %v7937_v35 = vpop.f32.mrb[27].mxu1 }
 0x28d   : > { %2338 = vmatprep.mubr.bf16.mxu0 %v9893_v4 }
 0x294   : > { %6366 = vmatmul.mubr.msk.bf16.gmra.mrb[92].mxu0 %vm1211_vm5, %v6885_v36 }
 0x295   : > { %2348 = vmatprep.mubr.bf16.mxu0 %v9893_v4 }
 0x29c   : > { %6367 = vmatmul.mubr.msk.bf16.gmra.mrb[96].mxu0 %vm1211_vm5, %v6893_v37  ;;  %v6954_v37 = vld [vmem:[%s9866_s9 + $0x54] ss:$8 sps:$4 sm:$0xff]  }
 0x29d   : > { %2358 = vmatprep.mubr.bf16.mxu0 %v9893_v4 }
 0x2a4   : > { %6368 = vmatmul.mubr.msk.bf16.gmra.mrb[100].mxu0 %vm1211_vm5, %v6898_v38 }
 0x2a5   : > { %2368 = vmatprep.mubr.bf16.mxu0 %v9893_v4 }
 0x2ac   : > { %6369 = vmatmul.mubr.msk.bf16.gmra.mrb[104].mxu0 %vm1211_vm5, %v6903_v39 }
 0x2ad   : > { %2378 = vmatprep.mubr.bf16.mxu0 %v9893_v4 }
 0x2b4   : > { %6370 = vmatmul.mubr.msk.bf16.gmra.mrb[108].mxu0 %vm1211_vm5, %v6908_v40  ;;  %v6930_v40 = vld [vmem:[%s9921_s26 + $0xf0] sm:$0xff]  }
 0x2b5   : > { %2388 = vmatprep.mubr.bf16.mxu0 %v9893_v4 }
 0x2bc   : > { %6371 = vmatmul.mubr.msk.bf16.gmra.mrb[112].mxu0 %vm1211_vm5, %v6916_v45 }
 0x2bd   : > { %2398 = vmatprep.mubr.bf16.mxu0 %v9893_v4 }
 0x2bf   : > { %v2130_v50 = vpop.f32.mrb[8].mxu0 }
 0x2c0   : > { %v2132_v51 = vpop.f32.mrb[9].mxu0 }
 0x2c1   : > { %v2134_v53 = vpop.f32.mrb[10].mxu0 }
 0x2c2   : > { %v2527_v54 = vpack.c.bf16 %v2134_v53, %v2130_v50  ;;  %v2136_v55 = vpop.f32.mrb[11].mxu0  ;;  %v6952_v50 = vld [vmem:[%s9866_s9 + $0x50] ss:$8 sps:$4 sm:$0xff]   ;;  %v6957_v53 = vld [vmem:[%s9866_s9 + $0x64] ss:$8 sps:$4 sm:$0xff]  }
 0x2c3   : > { %v2528_v57 = vpack.c.bf16 %v2136_v55, %v2132_v51 }
 0x2c4   : > { %6372 = vmatmul.mubr.msk.bf16.gmra.mrb[116].mxu0 %vm1211_vm5, %v6921_v52  ;;  %v2607_v63 = vmax.bf16 %v9893_v4, %v2527_v54  ;;  %v7952_v54 = vpop.f32.mrb[28].mxu1 }
 0x2c5   : > { %v2608_v60 = vmax.bf16 %v9893_v4, %v2528_v57  ;;  %2408 = vmatprep.mubr.bf16.mxu0 %v9893_v4  ;;  %v7954_v57 = vpop.f32.mrb[29].mxu1 }
 0x2c7   : > { %v2140_v1 = vpop.f32.mrb[12].mxu0  ;;  %2911 = vmatprep.mubr.bf16.mxu1 %v2608_v60  ;;  %v7957_v60 = vpop.f32.mrb[30].mxu1 }
 0x2c8   : > { %v2142_v2 = vpop.f32.mrb[13].mxu0  ;;  %2912 = vmatmul.mubr.bf16.vlgmr.msra.gmra.mrb[60].mxu1 %v2607_v63  ;;  %v6955_v63 = vld [vmem:[%s9866_s9 + $0x60] ss:$8 sps:$4 sm:$0xff]  }
 0x2c9   : > { %v2144_v5 = vpop.f32.mrb[14].mxu0  ;;  %3771 = vmatpush1.bf16.msra.mxu1 %v6926_v61 }
 0x2ca   : > { %v2529_v7 = vpack.c.bf16 %v2144_v5, %v2140_v1  ;;  %v2146_v8 = vpop.f32.mrb[15].mxu0  ;;  %3772 = vmatprep.subr.bf16.mxu1 %v6933_v0  ;;  %v7964_v0 = vpop.f32.mrb[31].mxu1 }
 0x2cb   : > { %v2530_v11 = vpack.c.bf16 %v2146_v8, %v2142_v2  ;;  %v6960_v2 = vld [vmem:[%s9866_s9 + $0x74] ss:$8 sps:$4 sm:$0xff]   ;;  %v6958_v8 = vld [vmem:[%s9866_s9 + $0x70] ss:$8 sps:$4 sm:$0xff]  }
 0x2cc   : > { %6373 = vmatmul.mubr.msk.bf16.gmra.mrb[120].mxu0 %vm1211_vm5, %v6925_v3  ;;  %v2609_v17 = vmax.bf16 %v9893_v4, %v2529_v7 }
 0x2cd   : > { %v2610_v14 = vmax.bf16 %v9893_v4, %v2530_v11  ;;  %2418 = vmatprep.mubr.bf16.mxu0 %v9893_v4  ;;  %3773 = vmatpush1.bf16.msra.mxu1 %v6931_v6  ;;  %v6934_v6 = vld [vmem:[%s9921_s26 + $0xf8] sm:$0xff]  }
 0x2ce   : > { %3774 = vmatprep.subr.bf16.mxu1 %v6939_v9 }
 0x2cf   : > { %v2150_v19 = vpop.f32.mrb[16].mxu0  ;;  %2921 = vmatprep.mubr.bf16.mxu1 %v2610_v14  ;;  %v7976_v14 = vpop.f32.mrb[32].mxu1 }
 0x2d0   : > { %v2152_v20 = vpop.f32.mrb[17].mxu0  ;;  %2922 = vmatmul.mubr.bf16.gmra.mrb[64].mxu1 %v2609_v17  ;;  %v7978_v17 = vpop.f32.mrb[33].mxu1 }
 0x2d1   : > { %v2154_v23 = vpop.f32.mrb[18].mxu0  ;;  %3775 = vmatpush1.bf16.msra.mxu1 %v6937_v15 }
 0x2d2   : > { %v2531_v26 = vpack.c.bf16 %v2154_v23, %v2150_v19  ;;  %v2156_v27 = vpop.f32.mrb[19].mxu0  ;;  %3776 = vmatprep.subr.bf16.mxu1 %v6944_v18  ;;  %v7981_v18 = vpop.f32.mrb[34].mxu1 }
 0x2d3   : > { %v2532_v30 = vpack.c.bf16 %v2156_v27, %v2152_v20  ;;  %v7985_v20 = vpop.f32.mrb[35].mxu1 }
 0x2d4   : > { %6374 = vmatmul.mubr.msk.bf16.gmra.mrb[124].mxu0 %vm1211_vm5, %v6929_v21  ;;  %v2611_v36 = vmax.bf16 %v9893_v4, %v2531_v26  ;;  %v6935_v26 = vld [vmem:[%s9921_s26 + $0x100] sm:$0xff]  }
 0x2d5   : > { %v2612_v33 = vmax.bf16 %v9893_v4, %v2532_v30  ;;  %2428 = vmatprep.mubr.bf16.mxu0 %v9893_v4  ;;  %3777 = vmatpush1.bf16.msra.mxu1 %v6942_v24 }
 0x2d6   : > { %3778 = vmatprep.subr.bf16.mxu1 %v6950_v28 }
 0x2d7   : > { %v2160_v38 = vpop.f32.mrb[20].mxu0  ;;  %2931 = vmatprep.mubr.bf16.mxu1 %v2612_v33  ;;  %v7991_v33 = vpop.f32.mrb[36].mxu1 }
 0x2d8   : > { %v2162_v39 = vpop.f32.mrb[21].mxu0  ;;  %2932 = vmatmul.mubr.bf16.gmra.mrb[68].mxu1 %v2611_v36  ;;  %v7993_v36 = vpop.f32.mrb[37].mxu1 }
 0x2d9   : > { %v2164_v45 = vpop.f32.mrb[22].mxu0  ;;  %3779 = vmatpush1.bf16.msra.mxu1 %v6948_v34 }
 0x2da   : > { %v2533_v51 = vpack.c.bf16 %v2164_v45, %v2160_v38  ;;  %v2166_v52 = vpop.f32.mrb[23].mxu0  ;;  %3780 = vmatprep.subr.bf16.mxu1 %v6954_v37  ;;  %v7996_v37 = vpop.f32.mrb[38].mxu1 }
 0x2db   : > { %v2534_v55 = vpack.c.bf16 %v2166_v52, %v2162_v39  ;;  %v6961_v39 = vld [vmem:[%s9866_s9 + $0x80] ss:$8 sps:$4 sm:$0xff]   ;;  %v8006_v45 = vpop.f32.mrb[39].mxu1 }
 0x2dc   : > { %6375 = vmatmul.mubr.msk.bf16.gmra.mrb[128].mxu0 %vm1211_vm5, %v6930_v40  ;;  %v2613_v1 = vmax.bf16 %v9893_v4, %v2533_v51  ;;  %v6963_v40 = vld [vmem:[%s9866_s9 + $0x84] ss:$8 sps:$4 sm:$0xff]  }
 0x2dd   : > { %v2614_v61 = vmax.bf16 %v9893_v4, %v2534_v55  ;;  %2438 = vmatprep.mubr.bf16.mxu0 %v9893_v4  ;;  %3781 = vmatpush1.bf16.msra.mxu1 %v6952_v50 }
 0x2de   : > { %3782 = vmatprep.subr.bf16.mxu1 %v6957_v53  ;;  %v6936_v53 = vld [vmem:[%s9921_s26 + $0x108] sm:$0xff]  }
 0x2df   : > { %v2170_v3 = vpop.f32.mrb[24].mxu0  ;;  %2941 = vmatprep.mubr.bf16.mxu1 %v2614_v61 }
 0x2e0   : > { %v2172_v5 = vpop.f32.mrb[25].mxu0  ;;  %2942 = vmatmul.mubr.bf16.gmra.mrb[72].mxu1 %v2613_v1  ;;  %v8012_v1 = vpop.f32.mrb[40].mxu1 }
 0x2e1   : > { %v2174_v7 = vpop.f32.mrb[26].mxu0  ;;  %3783 = vmatpush1.bf16.msra.mxu1 %v6955_v63 }
 0x2e2   : > { %v2535_v9 = vpack.c.bf16 %v2174_v7, %v2170_v3  ;;  %v2176_v11 = vpop.f32.mrb[27].mxu0  ;;  %3784 = vmatprep.subr.bf16.mxu1 %v6960_v2  ;;  %v8014_v3 = vpop.f32.mrb[41].mxu1 }
 0x2e3   : > { %v2536_v15 = vpack.c.bf16 %v2176_v11, %v2172_v5  ;;  %v8017_v5 = vpop.f32.mrb[42].mxu1 }
 0x2e4   : > { %6376 = vmatmul.mubr.msk.bf16.gmra.mrb[132].mxu0 %vm1211_vm5, %v6934_v6  ;;  %v2615_v21 = vmax.bf16 %v9893_v4, %v2535_v9  ;;  %v8021_v7 = vpop.f32.mrb[43].mxu1 }
 0x2e5   : > { %v2616_v19 = vmax.bf16 %v9893_v4, %v2536_v15  ;;  %2448 = vmatprep.mubr.bf16.mxu0 %v9893_v4  ;;  %3785 = vmatpush1.bf16.msra.mxu1 %v6958_v8  ;;  %v6940_v15 = vld [vmem:[%s9921_s26 + $0x110] sm:$0xff]  }
 0x2e6   : > { %3786 = vmatprep.subr.bf16.mxu1 %v6963_v40 }
 0x2e7   : > { %v2180_v23 = vpop.f32.mrb[28].mxu0  ;;  %2951 = vmatprep.mubr.bf16.mxu1 %v2616_v19 }
 0x2e8   : > { %v2182_v24 = vpop.f32.mrb[29].mxu0  ;;  %2952 = vmatmul.mubr.bf16.gmra.mrb[76].mxu1 %v2615_v21 }
 0x2e9   : > { %v2184_v27 = vpop.f32.mrb[30].mxu0  ;;  %3787 = vmatpush1.bf16.msra.mxu1 %v6961_v39 }
 0x2ea   : > { %v2537_v28 = vpack.c.bf16 %v2184_v27, %v2180_v23  ;;  %v2186_v30 = vpop.f32.mrb[31].mxu0 }
 0x2eb   : > { %v2538_v34 = vpack.c.bf16 %v2186_v30, %v2182_v24  ;;  %v8027_v24 = vpop.f32.mrb[44].mxu1 }
 0x2ec   : > { %6377 = vmatmul.mubr.msk.bf16.gmra.mrb[136].mxu0 %vm1211_vm5, %v6935_v26  ;;  %v2617_v50 = vmax.bf16 %v9893_v4, %v2537_v28  ;;  %v8029_v27 = vpop.f32.mrb[45].mxu1 }
 0x2ed   : > { %v2618_v38 = vmax.bf16 %v9893_v4, %v2538_v34  ;;  %2458 = vmatprep.mubr.bf16.mxu0 %v9893_v4  ;;  %v8032_v28 = vpop.f32.mrb[46].mxu1 }
 0x2ee   : > { %v8036_v34 = vpop.f32.mrb[47].mxu1 }
 0x2ef   : > { %v2190_v51 = vpop.f32.mrb[32].mxu0  ;;  %2961 = vmatprep.mubr.bf16.mxu1 %v2618_v38 }
 0x2f0   : > { %v2192_v52 = vpop.f32.mrb[33].mxu0  ;;  %2962 = vmatmul.mubr.bf16.gmra.mrb[80].mxu1 %v2617_v50  ;;  %v6941_v50 = vld [vmem:[%s9921_s26 + $0x118] sm:$0xff]  }
 0x2f1   : > { %v2194_v55 = vpop.f32.mrb[34].mxu0 }
 0x2f2   : > { %v2539_v61 = vpack.c.bf16 %v2194_v55, %v2190_v51  ;;  %v2196_v63 = vpop.f32.mrb[35].mxu0  ;;  %v8042_v55 = vpop.f32.mrb[48].mxu1 }
 0x2f3   : > { %v2540_v2 = vpack.c.bf16 %v2196_v63, %v2192_v52  ;;  %v8044_v63 = vpop.f32.mrb[49].mxu1 }
 0x2f4   : > { %6378 = vmatmul.mubr.msk.bf16.gmra.mrb[140].mxu0 %vm1211_vm5, %v6936_v53  ;;  %v2619_v8 = vmax.bf16 %v9893_v4, %v2539_v61 }
 0x2f5   : > { %v2620_v6 = vmax.bf16 %v9893_v4, %v2540_v2  ;;  %2468 = vmatprep.mubr.bf16.mxu0 %v9893_v4  ;;  %v8047_v2 = vpop.f32.mrb[50].mxu1 }
 0x2f7   : > { %v2200_v9 = vpop.f32.mrb[36].mxu0  ;;  %2971 = vmatprep.mubr.bf16.mxu1 %v2620_v6 }
 0x2f8   : > { %v2202_v11 = vpop.f32.mrb[37].mxu0  ;;  %2972 = vmatmul.mubr.bf16.gmra.mrb[84].mxu1 %v2619_v8  ;;  %v6964_v8 = vld [vmem:[%s9866_s9 + $0x90] ss:$8 sps:$4 sm:$0xff]  }
 0x2f9   : > { %v2204_v19 = vpop.f32.mrb[38].mxu0 }
 0x2fa   : > { %v2541_v21 = vpack.c.bf16 %v2204_v19, %v2200_v9  ;;  %v2206_v23 = vpop.f32.mrb[39].mxu0  ;;  %v6966_v9 = vld [vmem:[%s9866_s9 + $0x94] ss:$8 sps:$4 sm:$0xff]  }
 0x2fb   : > { %v2542_v26 = vpack.c.bf16 %v2206_v23, %v2202_v11  ;;  %v8057_v11 = vpop.f32.mrb[51].mxu1  ;;  %3788 = vmatprep.subr.bf16.mxu1 %v6966_v9  ;;  %v6945_v23 = vld [vmem:[%s9921_s26 + $0x120] sm:$0xff]   ;;  %v6946_v9 = vld [vmem:[%s9921_s26 + $0x128] sm:$0xff]  }
 0x2fc   : > { %6379 = vmatmul.mubr.msk.bf16.gmra.mrb[144].mxu0 %vm1211_vm5, %v6940_v15  ;;  %v2621_v38 = vmax.bf16 %v9893_v4, %v2541_v21  ;;  %3789 = vmatpush1.bf16.msra.mxu1 %v6964_v8 }
 0x2fd   : > { %v2622_v30 = vmax.bf16 %v9893_v4, %v2542_v26  ;;  %2478 = vmatprep.mubr.bf16.mxu0 %v9893_v4 }
 0x2ff   : > { %v2210_v39 = vpop.f32.mrb[40].mxu0  ;;  %2981 = vmatprep.mubr.bf16.mxu1 %v2622_v30 }
 0x300   : > { %v2212_v40 = vpop.f32.mrb[41].mxu0  ;;  %2982 = vmatmul.mubr.bf16.gmra.mrb[88].mxu1 %v2621_v38 }
 0x301   : > { %v2214_v51 = vpop.f32.mrb[42].mxu0 }
 0x302   : > { %v2543_v52 = vpack.c.bf16 %v2214_v51, %v2210_v39  ;;  %v2216_v53 = vpop.f32.mrb[43].mxu0  ;;  %v8063_v39 = vpop.f32.mrb[52].mxu1 }
 0x303   : > { %v2544_v61 = vpack.c.bf16 %v2216_v53, %v2212_v40  ;;  %9922 = vst [vmem:[#allocation12_spill] sm:$0xff] %v8063_v39 }
 0x304   : > { %6380 = vmatmul.mubr.msk.bf16.gmra.mrb[148].mxu0 %vm1211_vm5, %v6941_v50  ;;  %v2623_v15 = vmax.bf16 %v9893_v4, %v2543_v52  ;;  %v8065_v50 = vpop.f32.mrb[53].mxu1 }
 0x305   : > { %v2624_v6 = vmax.bf16 %v9893_v4, %v2544_v61  ;;  %2488 = vmatprep.mubr.bf16.mxu0 %v9893_v4  ;;  %9923 = vst [vmem:[#allocation13_spill] sm:$0xff] %v8065_v50  ;;  %v8068_v51 = vpop.f32.mrb[54].mxu1 }
 0x306   : > { %9924 = vst [vmem:[#allocation14_spill] sm:$0xff] %v8068_v51  ;;  %v8072_v53 = vpop.f32.mrb[55].mxu1 }
 0x307   : > { %v2220_v19 = vpop.f32.mrb[44].mxu0  ;;  %2991 = vmatprep.mubr.bf16.mxu1 %v2624_v6  ;;  %9925 = vst [vmem:[#allocation15_spill] sm:$0xff] %v8072_v53 }
 0x308   : > { %v2222_v21 = vpop.f32.mrb[45].mxu0  ;;  %2992 = vmatmul.mubr.bf16.gmra.mrb[92].mxu1 %v2623_v15 }
 0x309   : > { %v2224_v26 = vpop.f32.mrb[46].mxu0 }
 0x30a   : > { %v2545_v30 = vpack.c.bf16 %v2224_v26, %v2220_v19  ;;  %v2226_v38 = vpop.f32.mrb[47].mxu0 }
 0x30b   : > { %v2546_v40 = vpack.c.bf16 %v2226_v38, %v2222_v21 }
 0x30c   : > { %6381 = vmatmul.mubr.msk.bf16.gmra.mrb[152].mxu0 %vm1211_vm5, %v6945_v23  ;;  %v2625_v61 = vmax.bf16 %v9893_v4, %v2545_v30  ;;  %v8078_v23 = vpop.f32.mrb[56].mxu1 }
 0x30d   : > { %v2626_v52 = vmax.bf16 %v9893_v4, %v2546_v40  ;;  %2498 = vmatprep.mubr.bf16.mxu0 %v9893_v4  ;;  %9926 = vst [vmem:[#allocation16_spill] sm:$0xff] %v8078_v23  ;;  %v8080_v38 = vpop.f32.mrb[57].mxu1 }
 0x30e   : > { %9927 = vst [vmem:[#allocation17_spill] sm:$0xff] %v8080_v38  ;;  %v1769_v40 = vpop.f32.mrb[58].mxu1 }
 0x30f   : > { %v2230_v6 = vpop.f32.mrb[48].mxu0  ;;  %3001 = vmatprep.mubr.bf16.mxu1 %v2626_v52  ;;  %v6967_v52 = vld [vmem:[%s9866_s9 + $0xa0] ss:$8 sps:$4 sm:$0xff]  }
 0x310   : > { %v2232_v8 = vpop.f32.mrb[49].mxu0  ;;  %3002 = vmatmul.mubr.bf16.gmra.mrb[96].mxu1 %v2625_v61  ;;  %v6969_v61 = vld [vmem:[%s9866_s9 + $0xa4] ss:$8 sps:$4 sm:$0xff]  }
 0x311   : > { %v2234_v15 = vpop.f32.mrb[50].mxu0  ;;  %3790 = vmatprep.subr.bf16.mxu1 %v6969_v61 }
 0x312   : > { %v2547_v19 = vpack.c.bf16 %v2234_v15, %v2230_v6  ;;  %v2236_v21 = vpop.f32.mrb[51].mxu0  ;;  %v1770_v6 = vpop.f32.mrb[59].mxu1  ;;  %3791 = vmatpush1.bf16.msra.mxu1 %v6967_v52 }
 0x313   : > { %v2548_v26 = vpack.c.bf16 %v2236_v21, %v2232_v8  ;;  %v6947_v21 = vld [vmem:[%s9921_s26 + $0x130] sm:$0xff]  }
 0x314   : > { %6382 = vmatmul.mubr.msk.bf16.gmra.mrb[156].mxu0 %vm1211_vm5, %v6946_v9  ;;  %v2627_v8 = vmax.bf16 %v9893_v4, %v2547_v19 }
 0x315   : > { %v2628_v30 = vmax.bf16 %v9893_v4, %v2548_v26  ;;  %2508 = vmatprep.mubr.bf16.mxu0 %v9893_v4 }
 0x317   : > { %v2240_v15 = vpop.f32.mrb[52].mxu0  ;;  %3011 = vmatprep.mubr.bf16.mxu1 %v2628_v30 }
 0x318   : > { %v2242_v9 = vpop.f32.mrb[53].mxu0  ;;  %3012 = vmatmul.mubr.bf16.gmra.mrb[100].mxu1 %v2627_v8  ;;  %v6951_v8 = vld [vmem:[%s9921_s26 + $0x138] ss:$0 sps:$4 sm:$0x11]  }
 0x319   : > { %v2244_v26 = vpop.f32.mrb[54].mxu0 }
 0x31a   : > { %v2549_v40 = vpack.c.bf16 %v2244_v26, %v2240_v15  ;;  %v2246_v38 = vpop.f32.mrb[55].mxu0 }
 0x31b   : > { %v2550_v23 = vpack.c.bf16 %v2246_v38, %v2242_v9 }
 0x31c   : > { %6383 = vmatmul.mubr.msk.bf16.gmra.mrb[160].mxu0 %vm1211_vm5, %v6947_v21  ;;  %v2629_v19 = vmax.bf16 %v9893_v4, %v2549_v40 }
 0x31d   : > { %v2630_v6 = vmax.bf16 %v9893_v4, %v2550_v23  ;;  %2518 = vmatprep.mubr.bf16.mxu0 %v9893_v4 }
 0x31f   : > { %v2250_v30 = vpop.f32.mrb[56].mxu0  ;;  %3021 = vmatprep.mubr.bf16.mxu1 %v2630_v6 }
 0x320   : > { %v2252_v61 = vpop.f32.mrb[57].mxu0  ;;  %3022 = vmatmul.mubr.bf16.gmra.mrb[104].mxu1 %v2629_v19 }
 0x321   : > { %v2254_v52 = vpop.f32.mrb[58].mxu0 }
 0x322   : > { %v2551_v15 = vpack.c.bf16 %v2254_v52, %v2250_v30  ;;  %v2256_v26 = vpop.f32.mrb[59].mxu0  ;;  %v6970_v30 = vld [vmem:[%s9866_s9 + $0xb0] ss:$8 sps:$4 sm:$0xff]  }
 0x323   : > { %v2552_v38 = vpack.c.bf16 %v2256_v26, %v2252_v61  ;;  %v6972_v61 = vld [vmem:[%s9866_s9 + $0xb4] ss:$8 sps:$4 sm:$0xff]  }
 0x324   : > { %6384 = vmatmul.mubr.msk.bf16.gmra.mrb[164].mxu0 %vm1211_vm5, %v6951_v8  ;;  %v2631_v9 = vmax.bf16 %v9893_v4, %v2551_v15  ;;  %v6973_v8 = vld [vmem:[%s9868_s11] ss:$8 sps:$4 sm:$0xff]   ;;  %3792 = vmatprep.subr.bf16.mxu1 %v6972_v61 }
 0x325   : > { %v2632_v23 = vmax.bf16 %v9893_v4, %v2552_v38  ;;  %3793 = vmatpush1.bf16.msra.mxu1 %v6970_v30 }
 0x327   : > { %v2260_v21 = vpop.f32.mrb[60].mxu0  ;;  %3031 = vmatprep.mubr.bf16.mxu1 %v2632_v23 }
 0x328   : > { %v2262_v40 = vpop.f32.mrb[61].mxu0  ;;  %3032 = vmatmul.mubr.bf16.gmra.mrb[108].mxu1 %v2631_v9 }
 0x329   : > { %v2264_v6 = vpop.f32.mrb[62].mxu0 }
 0x32a   : > { %v2553_v19 = vpack.c.bf16 %v2264_v6, %v2260_v21  ;;  %v2266_v22 = vpop.f32.mrb[63].mxu0 }
 0x32b   : > { %v2554_v53 = vpack.c.bf16 %v2266_v22, %v2262_v40  ;;  %v6975_v22 = vld [vmem:[%s9868_s11 + $0x4] ss:$8 sps:$4 sm:$0xff]  }
 0x32c   : > { %v2633_v52 = vmax.bf16 %v9893_v4, %v2553_v19  ;;  %4673 = vmatprep.subr.bf16.mxu0 %v6975_v22 }
 0x32d   : > { %v2634_v51 = vmax.bf16 %v9893_v4, %v2554_v53  ;;  %4674 = vmatpush1.bf16.msra.mxu0 %v6973_v8 }
 0x32f   : > { %v2270_v15 = vpop.f32.mrb[64].mxu0  ;;  %3041 = vmatprep.mubr.bf16.mxu1 %v2634_v51 }
 0x330   : > { %v2272_v53 = vpop.f32.mrb[65].mxu0  ;;  %3042 = vmatmul.mubr.bf16.gmra.mrb[112].mxu1 %v2633_v52 }
 0x331   : > { %v2274_v26 = vpop.f32.mrb[66].mxu0 }
 0x332   : > { %v2555_v38 = vpack.c.bf16 %v2274_v26, %v2270_v15  ;;  %v2276_v23 = vpop.f32.mrb[67].mxu0  ;;  %v6978_v26 = vld [vmem:[%s9866_s9 + $0xc4] ss:$8 sps:$4 sm:$0xff]  }
 0x333   : > { %v2556_v9 = vpack.c.bf16 %v2276_v23, %v2272_v53  ;;  %v6976_v53 = vld [vmem:[%s9866_s9 + $0xc0] ss:$8 sps:$4 sm:$0xff]   ;;  %v6981_v23 = vld [vmem:[%s9868_s11 + $0x14] ss:$8 sps:$4 sm:$0xff]   ;;  %3794 = vmatprep.subr.bf16.mxu1 %v6978_v26 }
 0x334   : > { %v2635_v40 = vmax.bf16 %v9893_v4, %v2555_v38  ;;  %3795 = vmatpush1.bf16.msra.mxu1 %v6976_v53  ;;  %4675 = vmatprep.subr.bf16.mxu0 %v6981_v23 }
 0x335   : > { %v2636_v21 = vmax.bf16 %v9893_v4, %v2556_v9 }
 0x337   : > { %v2280_v6 = vpop.f32.mrb[68].mxu0  ;;  %3051 = vmatprep.mubr.bf16.mxu1 %v2636_v21 }
 0x338   : > { %v2282_v19 = vpop.f32.mrb[69].mxu0  ;;  %3052 = vmatmul.mubr.bf16.gmra.mrb[116].mxu1 %v2635_v40 }
 0x339   : > { %v2284_v50 = vpop.f32.mrb[70].mxu0 }
 0x33a   : > { %v2557_v51 = vpack.c.bf16 %v2284_v50, %v2280_v6  ;;  %v2286_v61 = vpop.f32.mrb[71].mxu0 }
 0x33b   : > { %v2558_v39 = vpack.c.bf16 %v2286_v61, %v2282_v19 }
 0x33c   : > { %v2637_v30 = vmax.bf16 %v9893_v4, %v2557_v51 }
 0x33d   : > { %v2638_v52 = vmax.bf16 %v9893_v4, %v2558_v39  ;;  %v6979_v39 = vld [vmem:[%s9868_s11 + $0x10] ss:$8 sps:$4 sm:$0xff]  }
 0x33e   : > { %4676 = vmatpush1.bf16.msra.mxu0 %v6979_v39 }
 0x33f   : > { %v2290_v8 = vpop.f32.mrb[72].mxu0  ;;  %3061 = vmatprep.mubr.bf16.mxu1 %v2638_v52 }
 0x340   : > { %v2292_v22 = vpop.f32.mrb[73].mxu0  ;;  %3062 = vmatmul.mubr.bf16.gmra.mrb[120].mxu1 %v2637_v30 }
 0x341   : > { %v2294_v15 = vpop.f32.mrb[74].mxu0 }
 0x342   : > { %v2559_v50 = vpack.c.bf16 %v2294_v15, %v2290_v8  ;;  %v2296_v38 = vpop.f32.mrb[75].mxu0 }
 0x343   : > { %v2560_v9 = vpack.c.bf16 %v2296_v38, %v2292_v22 }
 0x344   : > { %v2639_v40 = vmax.bf16 %v9893_v4, %v2559_v50 }
 0x345   : > { %v2640_v21 = vmax.bf16 %v9893_v4, %v2560_v9  ;;  %v6982_v9 = vld [vmem:[%s9866_s9 + $0xd0] ss:$8 sps:$4 sm:$0xff]  }
 0x347   : > { %v2300_v6 = vpop.f32.mrb[76].mxu0  ;;  %3071 = vmatprep.mubr.bf16.mxu1 %v2640_v21  ;;  %v6984_v21 = vld [vmem:[%s9866_s9 + $0xd4] ss:$8 sps:$4 sm:$0xff]  }
 0x348   : > { %v2302_v19 = vpop.f32.mrb[77].mxu0  ;;  %3072 = vmatmul.mubr.bf16.gmra.mrb[124].mxu1 %v2639_v40  ;;  %v6985_v40 = vld [vmem:[%s9868_s11 + $0x20] ss:$8 sps:$4 sm:$0xff]   ;;  %3796 = vmatprep.subr.bf16.mxu1 %v6984_v21 }
 0x349   : > { %v2304_v51 = vpop.f32.mrb[78].mxu0  ;;  %3797 = vmatpush1.bf16.msra.mxu1 %v6982_v9 }
 0x34a   : > { %v2561_v61 = vpack.c.bf16 %v2304_v51, %v2300_v6  ;;  %v2306_v52 = vpop.f32.mrb[79].mxu0 }
 0x34b   : > { %v2562_v30 = vpack.c.bf16 %v2306_v52, %v2302_v19  ;;  %v6987_v19 = vld [vmem:[%s9868_s11 + $0x24] ss:$8 sps:$4 sm:$0xff]  }
 0x34c   : > { %v2641_v22 = vmax.bf16 %v9893_v4, %v2561_v61  ;;  %4677 = vmatprep.subr.bf16.mxu0 %v6987_v19 }
 0x34d   : > { %v2642_v8 = vmax.bf16 %v9893_v4, %v2562_v30  ;;  %4678 = vmatpush1.bf16.msra.mxu0 %v6985_v40 }
 0x34f   : > { %v2310_v15 = vpop.f32.mrb[80].mxu0  ;;  %3081 = vmatprep.mubr.bf16.mxu1 %v2642_v8 }
 0x350   : > { %v2312_v53 = vpop.f32.mrb[81].mxu0  ;;  %3082 = vmatmul.mubr.bf16.gmra.mrb[128].mxu1 %v2641_v22 }
 0x351   : > { %v2314_v26 = vpop.f32.mrb[82].mxu0 }
 0x352   : > { %v2563_v38 = vpack.c.bf16 %v2314_v26, %v2310_v15  ;;  %v2316_v39 = vpop.f32.mrb[83].mxu0 }
 0x353   : > { %v2564_v50 = vpack.c.bf16 %v2316_v39, %v2312_v53 }
 0x354   : > { %v2643_v6 = vmax.bf16 %v9893_v4, %v2563_v38 }
 0x355   : > { %v2644_v23 = vmax.bf16 %v9893_v4, %v2564_v50 }
 0x357   : > { %v2320_v51 = vpop.f32.mrb[84].mxu0  ;;  %3091 = vmatprep.mubr.bf16.mxu1 %v2644_v23 }
 0x358   : > { %v2322_v61 = vpop.f32.mrb[85].mxu0  ;;  %3092 = vmatmul.mubr.bf16.gmra.mrb[132].mxu1 %v2643_v6 }
 0x359   : > { %v2324_v52 = vpop.f32.mrb[86].mxu0 }
 0x35a   : > { %v2565_v30 = vpack.c.bf16 %v2324_v52, %v2320_v51  ;;  %v2326_v8 = vpop.f32.mrb[87].mxu0 }
 0x35b   : > { %v2566_v22 = vpack.c.bf16 %v2326_v8, %v2322_v61  ;;  %v6990_v8 = vld [vmem:[%s9866_s9 + $0xe4] ss:$8 sps:$4 sm:$0xff]  }
 0x35c   : > { %v2645_v53 = vmax.bf16 %v9893_v4, %v2565_v30  ;;  %v6988_v30 = vld [vmem:[%s9866_s9 + $0xe0] ss:$8 sps:$4 sm:$0xff]   ;;  %3798 = vmatprep.subr.bf16.mxu1 %v6990_v8 }
 0x35d   : > { %v2646_v15 = vmax.bf16 %v9893_v4, %v2566_v22  ;;  %3799 = vmatpush1.bf16.msra.mxu1 %v6988_v30 }
 0x35f   : > { %v2330_v26 = vpop.f32.mrb[88].mxu0  ;;  %3101 = vmatprep.mubr.bf16.mxu1 %v2646_v15  ;;  %v6991_v15 = vld [vmem:[%s9868_s11 + $0x30] ss:$8 sps:$4 sm:$0xff]  }
 0x360   : > { %v2332_v38 = vpop.f32.mrb[89].mxu0  ;;  %3102 = vmatmul.mubr.bf16.gmra.mrb[136].mxu1 %v2645_v53  ;;  %v6993_v53 = vld [vmem:[%s9868_s11 + $0x34] ss:$8 sps:$4 sm:$0xff]  }
 0x361   : > { %v2334_v39 = vpop.f32.mrb[90].mxu0  ;;  %4679 = vmatprep.subr.bf16.mxu0 %v6993_v53  ;;  %v6994_v53 = vld [vmem:[%s9866_s9 + $0xf0] ss:$8 sps:$4 sm:$0xff]  }
 0x362   : > { %v2567_v50 = vpack.c.bf16 %v2334_v39, %v2330_v26  ;;  %v2336_v23 = vpop.f32.mrb[91].mxu0  ;;  %4680 = vmatpush1.bf16.msra.mxu0 %v6991_v15 }
 0x363   : > { %v2568_v21 = vpack.c.bf16 %v2336_v23, %v2332_v38 }
 0x364   : > { %v2647_v9 = vmax.bf16 %v9893_v4, %v2567_v50 }
 0x365   : > { %v2648_v6 = vmax.bf16 %v9893_v4, %v2568_v21 }
 0x367   : > { %v2340_v40 = vpop.f32.mrb[92].mxu0  ;;  %3111 = vmatprep.mubr.bf16.mxu1 %v2648_v6 }
 0x368   : > { %v2342_v19 = vpop.f32.mrb[93].mxu0  ;;  %3112 = vmatmul.mubr.bf16.gmra.mrb[140].mxu1 %v2647_v9 }
 0x369   : > { %v2344_v51 = vpop.f32.mrb[94].mxu0 }
 0x36a   : > { %v2569_v61 = vpack.c.bf16 %v2344_v51, %v2340_v40  ;;  %v2346_v52 = vpop.f32.mrb[95].mxu0 }
 0x36b   : > { %v2570_v22 = vpack.c.bf16 %v2346_v52, %v2342_v19 }
 0x36c   : > { %v2649_v38 = vmax.bf16 %v9893_v4, %v2569_v61 }
 0x36d   : > { %v2650_v26 = vmax.bf16 %v9893_v4, %v2570_v22 }
 0x36f   : > { %v2350_v39 = vpop.f32.mrb[96].mxu0  ;;  %3121 = vmatprep.mubr.bf16.mxu1 %v2650_v26  ;;  %v6996_v26 = vld [vmem:[%s9866_s9 + $0xf4] ss:$8 sps:$4 sm:$0xff]  }
 0x370   : > { %v2352_v50 = vpop.f32.mrb[97].mxu0  ;;  %3122 = vmatmul.mubr.bf16.gmra.mrb[144].mxu1 %v2649_v38  ;;  %v6997_v38 = vld [vmem:[%s9868_s11 + $0x40] ss:$8 sps:$4 sm:$0xff]   ;;  %3800 = vmatprep.subr.bf16.mxu1 %v6996_v26 }
 0x371   : > { %v2354_v23 = vpop.f32.mrb[98].mxu0  ;;  %3801 = vmatpush1.bf16.msra.mxu1 %v6994_v53 }
 0x372   : > { %v2571_v21 = vpack.c.bf16 %v2354_v23, %v2350_v39  ;;  %v2356_v6 = vpop.f32.mrb[99].mxu0 }
 0x373   : > { %v2572_v9 = vpack.c.bf16 %v2356_v6, %v2352_v50  ;;  %v6999_v50 = vld [vmem:[%s9868_s11 + $0x44] ss:$8 sps:$4 sm:$0xff]  }
 0x374   : > { %v2651_v19 = vmax.bf16 %v9893_v4, %v2571_v21  ;;  %4681 = vmatprep.subr.bf16.mxu0 %v6999_v50 }
 0x375   : > { %v2652_v40 = vmax.bf16 %v9893_v4, %v2572_v9  ;;  %4682 = vmatpush1.bf16.msra.mxu0 %v6997_v38 }
 0x377   : > { %v2360_v51 = vpop.f32.mrb[100].mxu0  ;;  %3131 = vmatprep.mubr.bf16.mxu1 %v2652_v40 }
 0x378   : > { %v2362_v52 = vpop.f32.mrb[101].mxu0  ;;  %3132 = vmatmul.mubr.bf16.gmra.mrb[148].mxu1 %v2651_v19 }
 0x379   : > { %v2364_v30 = vpop.f32.mrb[102].mxu0 }
 0x37a   : > { %v2573_v8 = vpack.c.bf16 %v2364_v30, %v2360_v51  ;;  %v2366_v61 = vpop.f32.mrb[103].mxu0 }
 0x37b   : > { %v2574_v22 = vpack.c.bf16 %v2366_v61, %v2362_v52 }
 0x37c   : > { %v2653_v39 = vmax.bf16 %v9893_v4, %v2573_v8 }
 0x37d   : > { %v2654_v15 = vmax.bf16 %v9893_v4, %v2574_v22 }
 0x37f   : > { %v2370_v23 = vpop.f32.mrb[104].mxu0  ;;  %3141 = vmatprep.mubr.bf16.mxu1 %v2654_v15 }
 0x380   : > { %v2372_v21 = vpop.f32.mrb[105].mxu0  ;;  %3142 = vmatmul.mubr.bf16.gmra.mrb[152].mxu1 %v2653_v39 }
 0x381   : > { %v2374_v6 = vpop.f32.mrb[106].mxu0 }
 0x382   : > { %v2575_v9 = vpack.c.bf16 %v2374_v6, %v2370_v23  ;;  %v2376_v40 = vpop.f32.mrb[107].mxu0 }
 0x383   : > { %v2576_v19 = vpack.c.bf16 %v2376_v40, %v2372_v21  ;;  %v7002_v40 = vld [vmem:[%s9868_s11 + $0x54] ss:$8 sps:$4 sm:$0xff]  }
 0x384   : > { %v2655_v52 = vmax.bf16 %v9893_v4, %v2575_v9  ;;  %v7000_v9 = vld [vmem:[%s9868_s11 + $0x50] ss:$8 sps:$4 sm:$0xff]   ;;  %4683 = vmatprep.subr.bf16.mxu0 %v7002_v40 }
 0x385   : > { %v2656_v51 = vmax.bf16 %v9893_v4, %v2576_v19  ;;  %4684 = vmatpush1.bf16.msra.mxu0 %v7000_v9 }
 0x387   : > { %v2380_v30 = vpop.f32.mrb[108].mxu0  ;;  %3151 = vmatprep.mubr.bf16.mxu1 %v2656_v51 }
 0x388   : > { %v2382_v8 = vpop.f32.mrb[109].mxu0  ;;  %3152 = vmatmul.mubr.bf16.gmra.mrb[156].mxu1 %v2655_v52 }
 0x389   : > { %v2384_v61 = vpop.f32.mrb[110].mxu0 }
 0x38a   : > { %v2577_v22 = vpack.c.bf16 %v2384_v61, %v2380_v30  ;;  %v2386_v15 = vpop.f32.mrb[111].mxu0 }
 0x38b   : > { %v2578_v26 = vpack.c.bf16 %v2386_v15, %v2382_v8 }
 0x38c   : > { %v2657_v53 = vmax.bf16 %v9893_v4, %v2577_v22 }
 0x38d   : > { %v2658_v39 = vmax.bf16 %v9893_v4, %v2578_v26 }
 0x38f   : > { %v2390_v38 = vpop.f32.mrb[112].mxu0  ;;  %3161 = vmatprep.mubr.bf16.mxu1 %v2658_v39 }
 0x390   : > { %v2392_v50 = vpop.f32.mrb[113].mxu0  ;;  %3162 = vmatmul.mubr.bf16.gmra.mrb[160].mxu1 %v2657_v53 }
 0x391   : > { %v2394_v23 = vpop.f32.mrb[114].mxu0 }
 0x392   : > { %v2579_v21 = vpack.c.bf16 %v2394_v23, %v2390_v38  ;;  %v2396_v6 = vpop.f32.mrb[115].mxu0 }
 0x393   : > { %v2580_v19 = vpack.c.bf16 %v2396_v6, %v2392_v50 }
 0x394   : > { %v2659_v52 = vmax.bf16 %v9893_v4, %v2579_v21 }
 0x395   : > { %v2660_v51 = vmax.bf16 %v9893_v4, %v2580_v19 }
 0x397   : > { %v2400_v30 = vpop.f32.mrb[116].mxu0  ;;  %3171 = vmatprep.mubr.bf16.mxu1 %v2660_v51 }
 0x398   : > { %v2401_v8 = vadd.f32 %v2400_v30, %v7845_v41  ;;  %v2402_v61 = vpop.f32.mrb[117].mxu0  ;;  %3172 = vmatmul.mubr.bf16.gmra.mrb[164].mxu1 %v2659_v52  ;;  %v9932_v41 = vld [vmem:[#allocation14_spill] sm:$0xff] }
 0x399   : > { %v2403_v22 = vadd.f32 %v2402_v61, %v7847_v42  ;;  %v2404_v15 = vpop.f32.mrb[118].mxu0 }
 0x39a   : > { %v2405_v26 = vadd.f32 %v2404_v15, %v7850_v43  ;;  %v2406_v39 = vpop.f32.mrb[119].mxu0 }
 0x39b   : > { %v2407_v53 = vadd.f32 %v2406_v39, %v7853_v44  ;;  %v8203_v38 = vpop.f32.mrb[60].mxu1 }
 0x39c   : > { %v2581_v50 = vpack.c.bf16 %v2405_v26, %v2401_v8  ;;  %v8205_v23 = vpop.f32.mrb[61].mxu1 }
 0x39d   : > { %v2582_v21 = vpack.c.bf16 %v2407_v53, %v2403_v22  ;;  %v8207_v6 = vpop.f32.mrb[62].mxu1 }
 0x39e   : > { %v8211_v9 = vpop.f32.mrb[63].mxu1  ;;  %v2661_v51 = vmax.bf16 %v9893_v4, %v2581_v50 }
 0x39f   : > { %v2410_v43 = vpop.f32.mrb[120].mxu0  ;;  %v2662_v40 = vmax.bf16 %v9893_v4, %v2582_v21 }
 0x3a0   : > { %v2411_v44 = vadd.f32 %v2410_v43, %v7858_v46  ;;  %v2412_v19 = vpop.f32.mrb[121].mxu0  ;;  %v7003_v46 = vld [vmem:[%s9868_s11 + $0x60] ss:$8 sps:$4 sm:$0xff]  }
 0x3a1   : > { %v2413_v52 = vadd.f32 %v2412_v19, %v7860_v47  ;;  %v2414_v30 = vpop.f32.mrb[122].mxu0  ;;  %3181 = vmatprep.mubr.bf16.mxu1 %v2662_v40  ;;  %v7005_v47 = vld [vmem:[%s9868_s11 + $0x64] ss:$8 sps:$4 sm:$0xff]  }
 0x3a2   : > { %v2415_v8 = vadd.f32 %v2414_v30, %v7863_v48  ;;  %v2416_v61 = vpop.f32.mrb[123].mxu0  ;;  %3182 = vmatmul.mubr.bf16.gmra.mrb[168].mxu1 %v2661_v51  ;;  %4685 = vmatprep.subr.bf16.mxu0 %v7005_v47 }
 0x3a3   : > { %v2417_v22 = vadd.f32 %v2416_v61, %v7866_v49  ;;  %v8221_v15 = vpop.f32.mrb[64].mxu1  ;;  %4686 = vmatpush1.bf16.msra.mxu0 %v7003_v46 }
 0x3a4   : > { %v2583_v26 = vpack.c.bf16 %v2415_v8, %v2411_v44  ;;  %v8223_v39 = vpop.f32.mrb[65].mxu1 }
 0x3a5   : > { %v2584_v53 = vpack.c.bf16 %v2417_v22, %v2413_v52  ;;  %v8231_v50 = vpop.f32.mrb[66].mxu1 }
 0x3a6   : > { %v8235_v49 = vpop.f32.mrb[67].mxu1  ;;  %v2663_v51 = vmax.bf16 %v9893_v4, %v2583_v26 }
 0x3a7   : > { %v2420_v43 = vpop.f32.mrb[124].mxu0  ;;  %v2664_v40 = vmax.bf16 %v9893_v4, %v2584_v53 }
 0x3a8   : > { %v2421_v44 = vadd.f32 %v2420_v43, %v7871_v56  ;;  %v2422_v19 = vpop.f32.mrb[125].mxu0 }
 0x3a9   : > { %v2423_v52 = vadd.f32 %v2422_v19, %v7873_v58  ;;  %v2424_v30 = vpop.f32.mrb[126].mxu0  ;;  %3191 = vmatprep.mubr.bf16.mxu1 %v2664_v40 }
 0x3aa   : > { %v2425_v8 = vadd.f32 %v2424_v30, %v7876_v59  ;;  %v2426_v61 = vpop.f32.mrb[127].mxu0  ;;  %3192 = vmatmul.mubr.bf16.gmra.mrb[172].mxu1 %v2663_v51 }
 0x3ab   : > { %v2427_v22 = vadd.f32 %v2426_v61, %v7883_v62  ;;  %v8245_v47 = vpop.f32.mrb[68].mxu1 }
 0x3ac   : > { %v2585_v48 = vpack.c.bf16 %v2425_v8, %v2421_v44  ;;  %v8247_v53 = vpop.f32.mrb[69].mxu1 }
 0x3ad   : > { %v2586_v46 = vpack.c.bf16 %v2427_v22, %v2423_v52  ;;  %v8249_v56 = vpop.f32.mrb[70].mxu1 }
 0x3ae   : > { %v8253_v58 = vpop.f32.mrb[71].mxu1  ;;  %v2665_v44 = vmax.bf16 %v9893_v4, %v2585_v48 }
 0x3af   : > { %v2430_v43 = vpop.f32.mrb[128].mxu0  ;;  %v2666_v40 = vmax.bf16 %v9893_v4, %v2586_v46 }
 0x3b0   : > { %v2431_v62 = vadd.f32 %v2430_v43, %v7898_v10  ;;  %v2432_v19 = vpop.f32.mrb[129].mxu0 }
 0x3b1   : > { %v2433_v51 = vadd.f32 %v2432_v19, %v7900_v12  ;;  %v2434_v52 = vpop.f32.mrb[130].mxu0  ;;  %3201 = vmatprep.mubr.bf16.mxu1 %v2666_v40 }
 0x3b2   : > { %v2435_v30 = vadd.f32 %v2434_v52, %v7903_v13  ;;  %v2436_v8 = vpop.f32.mrb[131].mxu0  ;;  %3202 = vmatmul.mubr.bf16.gmra.mrb[176].mxu1 %v2665_v44 }
 0x3b3   : > { %v2437_v61 = vadd.f32 %v2436_v8, %v7910_v16  ;;  %v8263_v22 = vpop.f32.mrb[72].mxu1  ;;  %v7006_v8 = vld [vmem:[%s9868_s11 + $0x70] ss:$8 sps:$4 sm:$0xff]  }
 0x3b4   : > { %v2587_v26 = vpack.c.bf16 %v2435_v30, %v2431_v62  ;;  %v8265_v59 = vpop.f32.mrb[73].mxu1 }
 0x3b5   : > { %v2588_v46 = vpack.c.bf16 %v2437_v61, %v2433_v51  ;;  %v8267_v10 = vpop.f32.mrb[74].mxu1  ;;  %v7008_v61 = vld [vmem:[%s9868_s11 + $0x74] ss:$8 sps:$4 sm:$0xff]  }
 0x3b6   : > { %v8271_v12 = vpop.f32.mrb[75].mxu1  ;;  %v2667_v62 = vmax.bf16 %v9893_v4, %v2587_v26  ;;  %4687 = vmatprep.subr.bf16.mxu0 %v7008_v61 }
 0x3b7   : > { %v2440_v43 = vpop.f32.mrb[132].mxu0  ;;  %v2668_v40 = vmax.bf16 %v9893_v4, %v2588_v46  ;;  %4688 = vmatpush1.bf16.msra.mxu0 %v7006_v8 }
 0x3b8   : > { %v2441_v16 = vadd.f32 %v2440_v43, %v7925_v29  ;;  %v2442_v19 = vpop.f32.mrb[133].mxu0 }
 0x3b9   : > { %v2443_v44 = vadd.f32 %v2442_v19, %v7927_v31  ;;  %v2444_v51 = vpop.f32.mrb[134].mxu0  ;;  %3211 = vmatprep.mubr.bf16.mxu1 %v2668_v40 }
 0x3ba   : > { %v2445_v52 = vadd.f32 %v2444_v51, %v7930_v32  ;;  %v2446_v30 = vpop.f32.mrb[135].mxu0  ;;  %3212 = vmatmul.mubr.bf16.gmra.mrb[180].mxu1 %v2667_v62 }
 0x3bb   : > { %v2447_v29 = vadd.f32 %v2446_v30, %v7937_v35  ;;  %v8287_v46 = vpop.f32.mrb[76].mxu1 }
 0x3bc   : > { %v2589_v26 = vpack.c.bf16 %v2445_v52, %v2441_v16  ;;  %v8289_v31 = vpop.f32.mrb[77].mxu1 }
 0x3bd   : > { %v2590_v43 = vpack.c.bf16 %v2447_v29, %v2443_v44  ;;  %v8291_v32 = vpop.f32.mrb[78].mxu1 }
 0x3be   : > { %v8295_v19 = vpop.f32.mrb[79].mxu1  ;;  %v2669_v30 = vmax.bf16 %v9893_v4, %v2589_v26 }
 0x3bf   : > { %v2450_v51 = vpop.f32.mrb[136].mxu0  ;;  %v2670_v35 = vmax.bf16 %v9893_v4, %v2590_v43 }
 0x3c0   : > { %v2451_v16 = vadd.f32 %v2450_v51, %v7952_v54  ;;  %v2452_v52 = vpop.f32.mrb[137].mxu0 }
 0x3c1   : > { %v2453_v44 = vadd.f32 %v2452_v52, %v7954_v57  ;;  %v2454_v61 = vpop.f32.mrb[138].mxu0  ;;  %3221 = vmatprep.mubr.bf16.mxu1 %v2670_v35 }
 0x3c2   : > { %v2455_v8 = vadd.f32 %v2454_v61, %v7957_v60  ;;  %v2456_v29 = vpop.f32.mrb[139].mxu0  ;;  %3222 = vmatmul.mubr.bf16.gmra.mrb[184].mxu1 %v2669_v30 }
 0x3c3   : > { %v2457_v40 = vadd.f32 %v2456_v29, %v7964_v0  ;;  %v8305_v48 = vpop.f32.mrb[80].mxu1 }
 0x3c4   : > { %v2591_v62 = vpack.c.bf16 %v2455_v8, %v2451_v16  ;;  %v8307_v13 = vpop.f32.mrb[81].mxu1 }
 0x3c5   : > { %v2592_v43 = vpack.c.bf16 %v2457_v40, %v2453_v44  ;;  %v8309_v54 = vpop.f32.mrb[82].mxu1 }
 0x3c6   : > { %v8313_v57 = vpop.f32.mrb[83].mxu1  ;;  %v2671_v16 = vmax.bf16 %v9893_v4, %v2591_v62 }
 0x3c7   : > { %v2460_v51 = vpop.f32.mrb[140].mxu0  ;;  %v2672_v35 = vmax.bf16 %v9893_v4, %v2592_v43 }
 0x3c8   : > { %v2461_v0 = vadd.f32 %v2460_v51, %v7976_v14  ;;  %v2462_v52 = vpop.f32.mrb[141].mxu0  ;;  %v7009_v14 = vld [vmem:[%s9868_s11 + $0x80] ss:$8 sps:$4 sm:$0xff]  }
 0x3c9   : > { %v2463_v40 = vadd.f32 %v2462_v52, %v7978_v17  ;;  %v2464_v30 = vpop.f32.mrb[142].mxu0  ;;  %3231 = vmatprep.mubr.bf16.mxu1 %v2672_v35  ;;  %v7011_v17 = vld [vmem:[%s9868_s11 + $0x84] ss:$8 sps:$4 sm:$0xff]  }
 0x3ca   : > { %v2465_v44 = vadd.f32 %v2464_v30, %v7981_v18  ;;  %v2466_v61 = vpop.f32.mrb[143].mxu0  ;;  %3232 = vmatmul.mubr.bf16.gmra.mrb[188].mxu1 %v2671_v16  ;;  %4689 = vmatprep.subr.bf16.mxu0 %v7011_v17 }
 0x3cb   : > { %v2467_v8 = vadd.f32 %v2466_v61, %v7985_v20  ;;  %v8323_v29 = vpop.f32.mrb[84].mxu1  ;;  %4690 = vmatpush1.bf16.msra.mxu0 %v7009_v14 }
 0x3cc   : > { %v2593_v26 = vpack.c.bf16 %v2465_v44, %v2461_v0  ;;  %v8325_v60 = vpop.f32.mrb[85].mxu1 }
 0x3cd   : > { %v2594_v62 = vpack.c.bf16 %v2467_v8, %v2463_v40  ;;  %v8333_v43 = vpop.f32.mrb[86].mxu1 }
 0x3ce   : > { %v8337_v20 = vpop.f32.mrb[87].mxu1  ;;  %v2673_v40 = vmax.bf16 %v9893_v4, %v2593_v26 }
 0x3cf   : > { %v2470_v35 = vpop.f32.mrb[144].mxu0  ;;  %v2674_v0 = vmax.bf16 %v9893_v4, %v2594_v62 }
 0x3d0   : > { %v2471_v52 = vadd.f32 %v2470_v35, %v7991_v33  ;;  %v2472_v16 = vpop.f32.mrb[145].mxu0 }
 0x3d1   : > { %v2473_v30 = vadd.f32 %v2472_v16, %v7993_v36  ;;  %v2474_v44 = vpop.f32.mrb[146].mxu0  ;;  %3241 = vmatprep.mubr.bf16.mxu1 %v2674_v0 }
 0x3d2   : > { %v2475_v61 = vadd.f32 %v2474_v44, %v7996_v37  ;;  %v2476_v8 = vpop.f32.mrb[147].mxu0  ;;  %3242 = vmatmul.mubr.bf16.gmra.mrb[192].mxu1 %v2673_v40 }
 0x3d3   : > { %v2477_v17 = vadd.f32 %v2476_v8, %v8006_v45  ;;  %v8347_v18 = vpop.f32.mrb[88].mxu1 }
 0x3d4   : > { %v2595_v51 = vpack.c.bf16 %v2475_v61, %v2471_v52  ;;  %v8349_v62 = vpop.f32.mrb[89].mxu1 }
 0x3d5   : > { %v2596_v14 = vpack.c.bf16 %v2477_v17, %v2473_v30  ;;  %v8351_v33 = vpop.f32.mrb[90].mxu1 }
 0x3d6   : > { %v8355_v36 = vpop.f32.mrb[91].mxu1  ;;  %v2675_v52 = vmax.bf16 %v9893_v4, %v2595_v51 }
 0x3d7   : > { %v2480_v35 = vpop.f32.mrb[148].mxu0  ;;  %v2676_v0 = vmax.bf16 %v9893_v4, %v2596_v14 }
 0x3d8   : > { %v2481_v45 = vadd.f32 %v2480_v35, %v8012_v1  ;;  %v2482_v16 = vpop.f32.mrb[149].mxu0 }
 0x3d9   : > { %v2483_v40 = vadd.f32 %v2482_v16, %v8014_v3  ;;  %v2484_v30 = vpop.f32.mrb[150].mxu0  ;;  %3251 = vmatprep.mubr.bf16.mxu1 %v2676_v0 }
 0x3da   : > { %v2485_v44 = vadd.f32 %v2484_v30, %v8017_v5  ;;  %v2486_v61 = vpop.f32.mrb[151].mxu0  ;;  %3252 = vmatmul.mubr.bf16.gmra.mrb[196].mxu1 %v2675_v52 }
 0x3db   : > { %v2487_v8 = vadd.f32 %v2486_v61, %v8021_v7  ;;  %v8365_v17 = vpop.f32.mrb[92].mxu1  ;;  %v7012_v61 = vld [vmem:[%s9868_s11 + $0x90] ss:$8 sps:$4 sm:$0xff]  }
 0x3dc   : > { %v2597_v26 = vpack.c.bf16 %v2485_v44, %v2481_v45  ;;  %v8367_v37 = vpop.f32.mrb[93].mxu1 }
 0x3dd   : > { %v2598_v14 = vpack.c.bf16 %v2487_v8, %v2483_v40  ;;  %v8369_v1 = vpop.f32.mrb[94].mxu1  ;;  %v7014_v8 = vld [vmem:[%s9868_s11 + $0x94] ss:$8 sps:$4 sm:$0xff]  }
 0x3de   : > { %v8373_v3 = vpop.f32.mrb[95].mxu1  ;;  %v2677_v45 = vmax.bf16 %v9893_v4, %v2597_v26  ;;  %4691 = vmatprep.subr.bf16.mxu0 %v7014_v8 }
 0x3df   : > { %v2490_v35 = vpop.f32.mrb[152].mxu0  ;;  %v2678_v0 = vmax.bf16 %v9893_v4, %v2598_v14  ;;  %4692 = vmatpush1.bf16.msra.mxu0 %v7012_v61  ;;  %v3390_v61 = vld [vmem:[%s9865_s8] sm:$0x3] }
 0x3e0   : > { %v2491_v7 = vadd.f32 %v2490_v35, %v8027_v24  ;;  %v2492_v16 = vpop.f32.mrb[153].mxu0 }
 0x3e1   : > { %v2493_v52 = vadd.f32 %v2492_v16, %v8029_v27  ;;  %v2494_v40 = vpop.f32.mrb[154].mxu0  ;;  %3261 = vmatprep.mubr.bf16.mxu1 %v2678_v0 }
 0x3e2   : > { %v2495_v30 = vadd.f32 %v2494_v40, %v8032_v28  ;;  %v2496_v44 = vpop.f32.mrb[155].mxu0  ;;  %3262 = vmatmul.mubr.bf16.gmra.mrb[200].mxu1 %v2677_v45 }
 0x3e3   : > { %v2497_v24 = vadd.f32 %v2496_v44, %v8036_v34  ;;  %v8389_v14 = vpop.f32.mrb[96].mxu1 }
 0x3e4   : > { %v2599_v26 = vpack.c.bf16 %v2495_v30, %v2491_v7  ;;  %v8391_v27 = vpop.f32.mrb[97].mxu1 }
 0x3e5   : > { %v2600_v35 = vpack.c.bf16 %v2497_v24, %v2493_v52  ;;  %v8393_v28 = vpop.f32.mrb[98].mxu1 }
 0x3e6   : > { %v8397_v16 = vpop.f32.mrb[99].mxu1  ;;  %v2679_v44 = vmax.bf16 %v9893_v4, %v2599_v26  ;;  %v3399_v26 = vrot.slane %v3390_v61, %v7414_v25  ;;  %v9933_v25 = vld [vmem:[#allocation15_spill] sm:$0xff] }
 0x3e7   : > { %v2500_v40 = vpop.f32.mrb[156].mxu0  ;;  %v2680_v34 = vmax.bf16 %v9893_v4, %v2600_v35 }
 0x3e8   : > { %v2501_v7 = vadd.f32 %v2500_v40, %v8042_v55  ;;  %v2502_v30 = vpop.f32.mrb[157].mxu0  ;;  %v3403_v5 = vpack.c.bf16 %v3399_v26, %v3399_v26  ;;  %v9935_v26 = vld [vmem:[#allocation10_spill] sm:$0xff] }
 0x3e9   : > { %v2503_v52 = vadd.f32 %v2502_v30, %v8044_v63  ;;  %v2504_v8 = vpop.f32.mrb[158].mxu0  ;;  %3271 = vmatprep.mubr.bf16.mxu1 %v2680_v34 }
 0x3ea   : > { %v2505_v24 = vadd.f32 %v2504_v8, %v8047_v2  ;;  %v2506_v0 = vpop.f32.mrb[159].mxu0  ;;  %3272 = vmatmul.mubr.bf16.gmra.mrb[204].mxu1 %v2679_v44 }
 0x3eb   : > { %v2507_v45 = vadd.f32 %v2506_v0, %v8057_v11  ;;  %v8410_v35 = vpop.f32.mrb[100].mxu1  ;;  %v9930_v0 = vld [vmem:[#allocation12_spill] sm:$0xff] }
 0x3ec   : > { %9928 = vst [vmem:[#allocation18_spill] sm:$0xff] %v8410_v35  ;;  %v2601_v55 = vpack.c.bf16 %v2505_v24, %v2501_v7  ;;  %v8412_v40 = vpop.f32.mrb[101].mxu1 }
 0x3ed   : > { %v2602_v63 = vpack.c.bf16 %v2507_v45, %v2503_v52  ;;  %v8415_v30 = vpop.f32.mrb[102].mxu1  ;;  %v9931_v45 = vld [vmem:[#allocation13_spill] sm:$0xff] }
 0x3ee   : > { %9929 = vst [vmem:[#allocation19_spill] sm:$0xff] %v8415_v30  ;;  %v8419_v51 = vpop.f32.mrb[103].mxu1  ;;  %v2681_v24 = vmax.bf16 %v9893_v4, %v2601_v55  ;;  %v7017_v55 = vld [vmem:[%s9868_s11 + $0xa4] ss:$8 sps:$4 sm:$0xff]  }
 0x3ef   : > { %v2510_v44 = vpop.f32.mrb[160].mxu0  ;;  %v2682_v11 = vmax.bf16 %v9893_v4, %v2602_v63  ;;  %v7015_v63 = vld [vmem:[%s9868_s11 + $0xa0] ss:$8 sps:$4 sm:$0xff]   ;;  %4693 = vmatprep.subr.bf16.mxu0 %v7017_v55 }
 0x3f0   : > { %v2511_v7 = vadd.f32 %v2510_v44, %v9930_v0  ;;  %v2512_v8 = vpop.f32.mrb[161].mxu0  ;;  %v3395_v44 = vrot.slane %v3390_v61, %v9935_v26  ;;  %4694 = vmatpush1.bf16.msra.mxu0 %v7015_v63  ;;  %v9939_v55 = vld [vmem:[#allocation17_spill] sm:$0xff] }
 0x3f1   : > { %v2513_v52 = vadd.f32 %v2512_v8, %v9931_v45  ;;  %v2514_v21 = vpop.f32.mrb[162].mxu0  ;;  %3281 = vmatprep.mubr.bf16.mxu1 %v2682_v11 }
 0x3f2   : > { %v2515_v34 = vadd.f32 %v2514_v21, %v9932_v41  ;;  %v2516_v42 = vpop.f32.mrb[163].mxu0  ;;  %3282 = vmatmul.mubr.bf16.gmra.mrb[208].mxu1 %v2681_v24  ;;  %v3412_v41 = vpack.i.b16 %v3403_v5, %v3403_v5 }
 0x3f3   : > { %v2517_v35 = vadd.f32 %v2516_v42, %v9933_v25  ;;  %v8429_v2 = vpop.f32.mrb[104].mxu1 }
 0x3f4   : > { %9934 = vst [vmem:[#allocation12_spill] sm:$0xff] %v8429_v2  ;;  %v2603_v0 = vpack.c.bf16 %v2515_v34, %v2511_v7  ;;  %v8438_v11 = vpop.f32.mrb[105].mxu1  ;;  %v3402_v34 = vpack.c.bf16 %v3395_v44, %v3395_v44  ;;  %v9938_v7 = vld [vmem:[#allocation16_spill] sm:$0xff] }
 0x3f5   : > { %9936 = vst [vmem:[#allocation13_spill] sm:$0xff] %v8438_v11  ;;  %v2604_v21 = vpack.c.bf16 %v2517_v35, %v2513_v52  ;;  %v8440_v8 = vpop.f32.mrb[106].mxu1  ;;  %v8452_v52 = vrot.slane %v3412_v41, %v9935_v26 }
 0x3f6   : > { %9937 = vst [vmem:[#allocation14_spill] sm:$0xff] %v8440_v8  ;;  %v8444_v42 = vpop.f32.mrb[107].mxu1  ;;  %v2683_v35 = vmax.bf16 %v9893_v4, %v2603_v0  ;;  %v3405_v11 = vpack.i.b16 %v3402_v34, %v3402_v34  ;;  %v9941_v34 = vpack.c.bf16 %v8207_v6, %v8203_v38 }
 0x3f7   : > { %v2520_v45 = vpop.f32.mrb[164].mxu0  ;;  %v2684_v61 = vmax.bf16 %v9893_v4, %v2604_v21 }
 0x3f8   : > { %v2521_v30 = vadd.f32 %v2520_v45, %v9938_v7  ;;  %v2522_v5 = vpop.f32.mrb[165].mxu0  ;;  %v9940_v45 = vpack.c.bf16 %v8211_v9, %v8205_v23 }
 0x3f9   : > { %v2523_v25 = vadd.f32 %v2522_v5, %v9939_v55  ;;  %3291 = vmatprep.mubr.bf16.mxu1 %v2684_v61  ;;  %v2524_v2 = vpop.f32.mrb[166].mxu0  ;;  %v9942_v55 = vpack.c.bf16 %v8235_v49, %v8223_v39  ;;  %v9943_v39 = vpack.c.bf16 %v8231_v50, %v8221_v15 }
 0x3fa   : > { %3292 = vmatmul.mubr.bf16.gmra.mrb[212].mxu1 %v2683_v35  ;;  %v2525_v63 = vpop.f32.mrb[167].mxu0  ;;  %v2605_v21 = vpack.c.bf16 %v2521_v30, %v2521_v30  ;;  %v3419_v0 = vadd.bf16 %v8452_v52, %v9940_v45  ;;  %v8473_v30 = vrot.slane %v3405_v11, %v9935_v26 }
 0x3fb   : > { %v2606_v8 = vpack.c.bf16 %v2523_v25, %v2523_v25  ;;  %v8455_v24 = vpop.f32.mrb[108].mxu1  ;;  %v3421_v11 = vadd.bf16 %v8452_v52, %v9942_v55 }
 0x3fc   : > { %v8457_v44 = vpop.f32.mrb[109].mxu1  ;;  %v2685_v23 = vmax.bf16 %v9893_v4, %v2605_v21  ;;  %v3499_v9 = vmax.bf16 %v9893_v4, %v3419_v0  ;;  %v3418_v5 = vadd.bf16 %v8473_v30, %v9941_v34  ;;  %v3420_v49 = vadd.bf16 %v8473_v30, %v9943_v39  ;;  %v7020_v34 = vld [vmem:[%s9868_s11 + $0xb4] ss:$8 sps:$4 sm:$0xff]  }
 0x3fd   : > { %v2686_v41 = vmax.bf16 %v9893_v4, %v2606_v8  ;;  %v8464_v7 = vpop.f32.mrb[110].mxu1  ;;  %v3501_v6 = vmax.bf16 %v9893_v4, %v3421_v11  ;;  %4695 = vmatprep.subr.bf16.mxu0 %v7020_v34  ;;  %v9946_v34 = vpack.c.bf16 %v8271_v12, %v8265_v59  ;;  %v9947_v59 = vpack.c.bf16 %v8267_v10, %v8263_v22 }
 0x3fe   : > { %v8468_v61 = vpop.f32.mrb[111].mxu1  ;;  %v3498_v38 = vmax.bf16 %v9893_v4, %v3418_v5  ;;  %v9944_v5 = vpack.c.bf16 %v8253_v58, %v8247_v53  ;;  %v9945_v58 = vpack.c.bf16 %v8249_v56, %v8245_v47 }
 0x3ff   : > { %v3335_v25 = vpack.c.bf16 %v8468_v61, %v8457_v44  ;;  %3301 = vmatprep.mubr.bf16.mxu1 %v2686_v41  ;;  %v3424_v12 = vadd.bf16 %v8473_v30, %v9947_v59  ;;  %v9970_v44 = vpack.c.bf16 %v8464_v7, %v8455_v24 }
 0x400   : > { %v3423_v55 = vadd.bf16 %v8452_v52, %v9944_v5  ;;  %v3422_v5 = vadd.bf16 %v8473_v30, %v9945_v58 }
 0x401   : > { %v3442_v61 = vadd.bf16 %v8473_v30, %v9970_v44 }
 0x402   : > { %3302 = vmatmul.mubr.bf16.gmra.mrb[216].mxu1 %v2685_v23  ;;  %v3503_v39 = vmax.bf16 %v9893_v4, %v3423_v55  ;;  %v3502_v47 = vmax.bf16 %v9893_v4, %v3422_v5  ;;  %v7023_v5 = vld [vmem:[%s9868_s11 + $0xc4] ss:$8 sps:$4 sm:$0xff]  }
 0x403   : > { %v8477_v8 = vpop.f32.mrb[112].mxu1  ;;  %3802 = vmatprep.mubr.bf16.mxu1 %v3499_v9  ;;  %v7018_v9 = vld [vmem:[%s9868_s11 + $0xb0] ss:$8 sps:$4 sm:$0xff]  }
 0x404   : > { %v8483_v35 = vpop.f32.mrb[113].mxu1  ;;  %4696 = vmatpush1.bf16.msra.mxu0 %v7018_v9  ;;  %v3425_v9 = vadd.bf16 %v8452_v52, %v9946_v34  ;;  %v7021_v34 = vld [vmem:[%s9868_s11 + $0xc0] ss:$8 sps:$4 sm:$0xff]  }
 0x405   : > { %v8489_v63 = vpop.f32.mrb[114].mxu1  ;;  %4697 = vmatprep.subr.bf16.mxu0 %v7023_v5  ;;  %v9950_v5 = vpack.c.bf16 %v8313_v57, %v8307_v13  ;;  %v9951_v13 = vpack.c.bf16 %v8309_v54, %v8305_v48 }
 0x406   : > { %v8493_v45 = vpop.f32.mrb[115].mxu1  ;;  %v3505_v56 = vmax.bf16 %v9893_v4, %v3425_v9  ;;  %v9948_v9 = vpack.c.bf16 %v8295_v19, %v8289_v31  ;;  %v9949_v19 = vpack.c.bf16 %v8291_v32, %v8287_v46 }
 0x407   : > { %v3428_v57 = vadd.bf16 %v8473_v30, %v9951_v13 }
 0x408   : > { %4698 = vmatpush1.bf16.msra.mxu0 %v7021_v34  ;;  %v3429_v34 = vadd.bf16 %v8452_v52, %v9950_v5  ;;  %v9952_v5 = vpack.c.bf16 %v8337_v20, %v8325_v60  ;;  %v9953_v60 = vpack.c.bf16 %v8333_v43, %v8323_v29 }
 0x409   : > { %v3508_v48 = vmax.bf16 %v9893_v4, %v3428_v57  ;;  %v7026_v57 = vld [vmem:[%s9868_s11 + $0xd4] ss:$8 sps:$4 sm:$0xff]  }
 0x40a   : > { %3803 = vmatmul.mubr.bf16.vlgmr.msra.gmra.mrb[220].mxu1 %v3498_v38  ;;  %v3509_v32 = vmax.bf16 %v9893_v4, %v3429_v34  ;;  %v3430_v20 = vadd.bf16 %v8473_v30, %v9953_v60  ;;  %4699 = vmatprep.subr.bf16.mxu0 %v7026_v57  ;;  %v9956_v57 = vpack.c.bf16 %v8373_v3, %v8367_v37 }
 0x40b   : > { %v8499_v41 = vpop.f32.mrb[116].mxu1  ;;  %3812 = vmatprep.mubr.bf16.mxu1 %v3501_v6  ;;  %v3500_v6 = vmax.bf16 %v9893_v4, %v3420_v49  ;;  %v3504_v49 = vmax.bf16 %v9893_v4, %v3424_v12  ;;  %v9957_v37 = vpack.c.bf16 %v8369_v1, %v8365_v17 }
 0x40c   : > { %v8505_v23 = vpop.f32.mrb[117].mxu1 }
 0x40d   : > { %v8517_v11 = vpop.f32.mrb[118].mxu1  ;;  %v3434_v3 = vadd.bf16 %v8473_v30, %v9957_v37 }
 0x40e   : > { %v8521_v50 = vpop.f32.mrb[119].mxu1 }
 0x412   : > { %3813 = vmatmul.mubr.bf16.gmra.mrb[224].mxu1 %v3500_v6 }
 0x413   : > { %v8527_v53 = vpop.f32.mrb[120].mxu1  ;;  %3822 = vmatprep.mubr.bf16.mxu1 %v3503_v39 }
 0x414   : > { %v8533_v15 = vpop.f32.mrb[121].mxu1 }
 0x415   : > { %v8539_v38 = vpop.f32.mrb[122].mxu1 }
 0x416   : > { %v8543_v55 = vpop.f32.mrb[123].mxu1 }
 0x41a   : > { %3823 = vmatmul.mubr.bf16.gmra.mrb[228].mxu1 %v3502_v47  ;;  %v3427_v47 = vadd.bf16 %v8452_v52, %v9948_v9  ;;  %v3426_v9 = vadd.bf16 %v8473_v30, %v9949_v19 }
 0x41b   : > { %v8549_v39 = vpop.f32.mrb[124].mxu1  ;;  %3832 = vmatprep.mubr.bf16.mxu1 %v3505_v56 }
 0x41c   : > { %v8555_v58 = vpop.f32.mrb[125].mxu1  ;;  %v3507_v6 = vmax.bf16 %v9893_v4, %v3427_v47  ;;  %v3506_v46 = vmax.bf16 %v9893_v4, %v3426_v9  ;;  %v3510_v9 = vmax.bf16 %v9893_v4, %v3430_v20 }
 0x41d   : > { %v8567_v56 = vpop.f32.mrb[126].mxu1 }
 0x41e   : > { %v8571_v10 = vpop.f32.mrb[127].mxu1 }
 0x422   : > { %3833 = vmatmul.mubr.bf16.gmra.mrb[232].mxu1 %v3504_v49  ;;  %v3431_v49 = vadd.bf16 %v8452_v52, %v9952_v5  ;;  %v7024_v5 = vld [vmem:[%s9868_s11 + $0xd0] ss:$8 sps:$4 sm:$0xff]  }
 0x423   : > { %v8577_v31 = vpop.f32.mrb[128].mxu1  ;;  %3842 = vmatprep.mubr.bf16.mxu1 %v3507_v6  ;;  %4700 = vmatpush1.bf16.msra.mxu0 %v7024_v5  ;;  %v3435_v5 = vadd.bf16 %v8452_v52, %v9956_v57  ;;  %v7027_v57 = vld [vmem:[%s9868_s11 + $0xe0] ss:$8 sps:$4 sm:$0xff]  }
 0x424   : > { %v8583_v22 = vpop.f32.mrb[129].mxu1  ;;  %v3511_v54 = vmax.bf16 %v9893_v4, %v3431_v49  ;;  %v9954_v49 = vpack.c.bf16 %v8355_v36, %v8349_v62  ;;  %v9955_v36 = vpack.c.bf16 %v8351_v33, %v8347_v18 }
 0x425   : > { %v8589_v59 = vpop.f32.mrb[130].mxu1  ;;  %v3515_v33 = vmax.bf16 %v9893_v4, %v3435_v5  ;;  %v9958_v5 = vpack.c.bf16 %v8397_v16, %v8391_v27  ;;  %v9959_v16 = vpack.c.bf16 %v8393_v28, %v8389_v14 }
 0x426   : > { %v8593_v12 = vpop.f32.mrb[131].mxu1 }
 0x42a   : > { %3843 = vmatmul.mubr.bf16.gmra.mrb[236].mxu1 %v3506_v46 }
 0x42b   : > { %v8599_v47 = vpop.f32.mrb[132].mxu1  ;;  %3852 = vmatprep.mubr.bf16.mxu1 %v3509_v32 }
 0x42c   : > { %v8605_v19 = vpop.f32.mrb[133].mxu1 }
 0x42d   : > { %v8611_v6 = vpop.f32.mrb[134].mxu1 }
 0x42e   : > { %v8615_v34 = vpop.f32.mrb[135].mxu1 }
 0x432   : > { %3853 = vmatmul.mubr.bf16.gmra.mrb[240].mxu1 %v3508_v48  ;;  %v3433_v48 = vadd.bf16 %v8452_v52, %v9954_v49  ;;  %v3432_v49 = vadd.bf16 %v8473_v30, %v9955_v36 }
 0x433   : > { %v8621_v32 = vpop.f32.mrb[136].mxu1  ;;  %3862 = vmatprep.mubr.bf16.mxu1 %v3511_v54 }
 0x434   : > { %v8627_v13 = vpop.f32.mrb[137].mxu1  ;;  %v3513_v46 = vmax.bf16 %v9893_v4, %v3433_v48  ;;  %v3512_v18 = vmax.bf16 %v9893_v4, %v3432_v49  ;;  %v7029_v49 = vld [vmem:[%s9868_s11 + $0xe4] ss:$8 sps:$4 sm:$0xff]  }
 0x435   : > { %v8639_v54 = vpop.f32.mrb[138].mxu1  ;;  %4701 = vmatprep.subr.bf16.mxu0 %v7029_v49  ;;  %v9960_v49 = vpack.c.bf16 %v8419_v51, %v8412_v40  ;;  %v9961_v51 = vld [vmem:[#allocation19_spill] sm:$0xff]  ;;  %v9962_v40 = vld [vmem:[#allocation18_spill] sm:$0xff] }
 0x436   : > { %v8643_v43 = vpop.f32.mrb[139].mxu1  ;;  %4702 = vmatpush1.bf16.msra.mxu0 %v7027_v57 }
 0x437   : > { %v3439_v57 = vadd.bf16 %v8452_v52, %v9960_v49 }
 0x439   : > { %v3519_v28 = vmax.bf16 %v9893_v4, %v3439_v57 }
 0x43a   : > { %3863 = vmatmul.mubr.bf16.gmra.mrb[244].mxu1 %v3510_v9  ;;  %v3514_v9 = vmax.bf16 %v9893_v4, %v3434_v3 }
 0x43b   : > { %v8649_v62 = vpop.f32.mrb[140].mxu1  ;;  %3872 = vmatprep.mubr.bf16.mxu1 %v3513_v46 }
 0x43c   : > { %v8655_v29 = vpop.f32.mrb[141].mxu1 }
 0x43d   : > { %v8661_v60 = vpop.f32.mrb[142].mxu1 }
 0x43e   : > { %v8665_v20 = vpop.f32.mrb[143].mxu1 }
 0x442   : > { %3873 = vmatmul.mubr.bf16.gmra.mrb[248].mxu1 %v3512_v18  ;;  %v3437_v18 = vadd.bf16 %v8452_v52, %v9958_v5  ;;  %v3436_v5 = vadd.bf16 %v8473_v30, %v9959_v16  ;;  %v9963_v16 = vpack.c.bf16 %v9961_v51, %v9962_v40  ;;  %v9966_v40 = vld [vmem:[#allocation14_spill] sm:$0xff] }
 0x443   : > { %v8671_v48 = vpop.f32.mrb[144].mxu1  ;;  %3882 = vmatprep.mubr.bf16.mxu1 %v3515_v33 }
 0x444   : > { %v8677_v36 = vpop.f32.mrb[145].mxu1  ;;  %v3517_v46 = vmax.bf16 %v9893_v4, %v3437_v18  ;;  %v3516_v14 = vmax.bf16 %v9893_v4, %v3436_v5  ;;  %v3438_v49 = vadd.bf16 %v8473_v30, %v9963_v16  ;;  %v9967_v16 = vld [vmem:[#allocation12_spill] sm:$0xff] }
 0x445   : > { %v8689_v33 = vpop.f32.mrb[146].mxu1  ;;  %v9968_v5 = vpack.c.bf16 %v9966_v40, %v9967_v16 }
 0x446   : > { %v8693_v1 = vpop.f32.mrb[147].mxu1 }
 0x44a   : > { %3883 = vmatmul.mubr.bf16.gmra.mrb[252].mxu1 %v3514_v9  ;;  %v9964_v9 = vld [vmem:[#allocation13_spill] sm:$0xff] }
 0x44b   : > { %v8699_v27 = vpop.f32.mrb[148].mxu1  ;;  %3892 = vmatprep.mubr.bf16.mxu1 %v3517_v46  ;;  %v9965_v0 = vpack.c.bf16 %v8444_v42, %v9964_v9  ;;  %v7030_v42 = vld [vmem:[%s9868_s11 + $0xf0] ss:$8 sps:$4 sm:$0xff]  }
 0x44c   : > { %v8705_v17 = vpop.f32.mrb[149].mxu1 }
 0x44d   : > { %v8711_v37 = vpop.f32.mrb[150].mxu1  ;;  %v3441_v46 = vadd.bf16 %v8452_v52, %v9965_v0  ;;  %v7032_v0 = vld [vmem:[%s9868_s11 + $0xf4] ss:$8 sps:$4 sm:$0xff]  }
 0x44e   : > { %v8715_v3 = vpop.f32.mrb[151].mxu1  ;;  %4703 = vmatprep.subr.bf16.mxu0 %v7032_v0 }
 0x44f   : > { %v3521_v51 = vmax.bf16 %v9893_v4, %v3441_v46  ;;  %v3443_v46 = vadd.bf16 %v8452_v52, %v3335_v25  ;;  %4704 = vmatpush1.bf16.msra.mxu0 %v7030_v42  ;;  %v9971_v42 = vpack.c.bf16 %v8493_v45, %v8483_v35  ;;  %v9972_v35 = vpack.c.bf16 %v8489_v63, %v8477_v8 }
 0x451   : > { %v3444_v45 = vadd.bf16 %v8473_v30, %v9972_v35 }
 0x452   : > { %3893 = vmatmul.mubr.bf16.gmra.mrb[0].mxu1 %v3516_v14  ;;  %v3440_v14 = vadd.bf16 %v8473_v30, %v9968_v5  ;;  %v9969_v5 = vmov 0  }
 0x453   : > { %v8721_v18 = vpop.f32.mrb[152].mxu1  ;;  %3902 = vmatprep.mubr.bf16.mxu1 %v3519_v28  ;;  %v3518_v28 = vmax.bf16 %v9893_v4, %v3438_v49  ;;  %v3523_v0 = vmax.bf16 %v9969_v5, %v3443_v46  ;;  %v3445_v4 = vadd.bf16 %v8452_v52, %v9971_v42  ;;  %v3522_v24 = vmax.bf16 %v9969_v5, %v3442_v61 }
 0x454   : > { %v8727_v21 = vpop.f32.mrb[153].mxu1  ;;  %v3520_v16 = vmax.bf16 %v9969_v5, %v3440_v14  ;;  %v9973_v42 = vpack.c.bf16 %v8521_v50, %v8505_v23  ;;  %v3524_v8 = vmax.bf16 %v9969_v5, %v3444_v45  ;;  %v9974_v23 = vpack.c.bf16 %v8517_v11, %v8499_v41 }
 0x455   : > { %v8733_v2 = vpop.f32.mrb[154].mxu1  ;;  %v3525_v7 = vmax.bf16 %v9969_v5, %v3445_v4 }
 0x456   : > { %v8737_v57 = vpop.f32.mrb[155].mxu1  ;;  %v3447_v14 = vadd.bf16 %v8452_v52, %v9973_v42  ;;  %v3446_v50 = vadd.bf16 %v8473_v30, %v9974_v23 }
 0x458   : > { %v3527_v63 = vmax.bf16 %v9969_v5, %v3447_v14  ;;  %v3526_v14 = vmax.bf16 %v9969_v5, %v3446_v50 }
 0x45a   : > { %3903 = vmatmul.mubr.bf16.gmra.mrb[4].mxu1 %v3518_v28 }
 0x45b   : > { %v8749_v9 = vpop.f32.mrb[156].mxu1  ;;  %3912 = vmatprep.mubr.bf16.mxu1 %v3521_v51 }
 0x45c   : > { %v8755_v49 = vpop.f32.mrb[157].mxu1 }
 0x45d   : > { %v8761_v28 = vpop.f32.mrb[158].mxu1 }
 0x45e   : > { %v8765_v51 = vpop.f32.mrb[159].mxu1 }
 0x462   : > { %3913 = vmatmul.mubr.bf16.gmra.mrb[8].mxu1 %v3520_v16 }
 0x463   : > { %v8771_v26 = vpop.f32.mrb[160].mxu1  ;;  %3922 = vmatprep.mubr.bf16.mxu1 %v3523_v0 }
 0x464   : > { %v8777_v25 = vpop.f32.mrb[161].mxu1 }
 0x465   : > { %v8783_v40 = vpop.f32.mrb[162].mxu1 }
 0x466   : > { %v8787_v46 = vpop.f32.mrb[163].mxu1 }
 0x46a   : > { %3923 = vmatmul.mubr.bf16.gmra.mrb[12].mxu1 %v3522_v24 }
 0x46b   : > { %v8793_v0 = vpop.f32.mrb[164].mxu1  ;;  %3932 = vmatprep.mubr.bf16.mxu1 %v3525_v7  ;;  %v9975_v7 = vpack.c.bf16 %v8543_v55, %v8533_v15  ;;  %v9976_v15 = vpack.c.bf16 %v8539_v38, %v8527_v53 }
 0x46c   : > { %v8799_v44 = vpop.f32.mrb[165].mxu1 }
 0x46d   : > { %v8805_v16 = vpop.f32.mrb[166].mxu1  ;;  %v3449_v35 = vadd.bf16 %v8452_v52, %v9975_v7  ;;  %v3448_v55 = vadd.bf16 %v8473_v30, %v9976_v15  ;;  %v9979_v15 = vpack.c.bf16 %v8593_v12, %v8583_v22  ;;  %v9980_v22 = vpack.c.bf16 %v8589_v59, %v8577_v31 }
 0x46e   : > { %v8809_v61 = vpop.f32.mrb[167].mxu1 }
 0x46f   : > { %v3529_v11 = vmax.bf16 %v9969_v5, %v3449_v35  ;;  %v3528_v35 = vmax.bf16 %v9969_v5, %v3448_v55  ;;  %v3453_v55 = vadd.bf16 %v8452_v52, %v9979_v15  ;;  %v3452_v12 = vadd.bf16 %v8473_v30, %v9980_v22 }
 0x470   : > { %v9983_v22 = vpack.c.bf16 %v8643_v43, %v8627_v13  ;;  %v9984_v13 = vpack.c.bf16 %v8639_v54, %v8621_v32 }
 0x472   : > { %3933 = vmatmul.mubr.bf16.gmra.mrb[16].mxu1 %v3524_v8  ;;  %v3456_v43 = vadd.bf16 %v8473_v30, %v9984_v13  ;;  %v9987_v13 = vpack.c.bf16 %v8693_v1, %v8677_v36  ;;  %v9988_v36 = vpack.c.bf16 %v8689_v33, %v8671_v48 }
 0x473   : > { %3942 = vmatprep.mubr.bf16.mxu1 %v3527_v63  ;;  %v9977_v63 = vpack.c.bf16 %v8571_v10, %v8555_v58  ;;  %v9978_v58 = vpack.c.bf16 %v8567_v56, %v8549_v39  ;;  %v3533_v56 = vmax.bf16 %v9969_v5, %v3453_v55  ;;  %v3532_v55 = vmax.bf16 %v9969_v5, %v3452_v12 }
 0x474   : > { %v3457_v12 = vadd.bf16 %v8452_v52, %v9983_v22  ;;  %v3460_v1 = vadd.bf16 %v8473_v30, %v9988_v36  ;;  %v9991_v36 = vpack.c.bf16 %v8737_v57, %v8727_v21 }
 0x475   : > { %v8823_v42 = vpop.f32.mrb[168].mxu1  ;;  %v3451_v23 = vadd.bf16 %v8452_v52, %v9977_v63  ;;  %v3450_v10 = vadd.bf16 %v8473_v30, %v9978_v58  ;;  %v9981_v58 = vpack.c.bf16 %v8615_v34, %v8605_v19  ;;  %v9982_v19 = vpack.c.bf16 %v8611_v6, %v8599_v47 }
 0x476   : > { %v8825_v4 = vpop.f32.mrb[169].mxu1  ;;  %v3537_v47 = vmax.bf16 %v9969_v5, %v3457_v12  ;;  %v3536_v12 = vmax.bf16 %v9969_v5, %v3456_v43  ;;  %v3461_v43 = vadd.bf16 %v8452_v52, %v9987_v13 }
 0x477   : > { %v8827_v24 = vpop.f32.mrb[170].mxu1  ;;  %v3531_v53 = vmax.bf16 %v9969_v5, %v3451_v23  ;;  %v3530_v23 = vmax.bf16 %v9969_v5, %v3450_v10  ;;  %v3455_v10 = vadd.bf16 %v8452_v52, %v9981_v58  ;;  %v3454_v34 = vadd.bf16 %v8473_v30, %v9982_v19 }
 0x478   : > { %v8832_v8 = vpop.f32.mrb[171].mxu1  ;;  %v9985_v19 = vpack.c.bf16 %v8665_v20, %v8655_v29  ;;  %v9986_v29 = vpack.c.bf16 %v8661_v60, %v8649_v62  ;;  %v3541_v62 = vmax.bf16 %v9969_v5, %v3461_v43  ;;  %v3540_v43 = vmax.bf16 %v9969_v5, %v3460_v1 }
 0x479   : > { %v3535_v31 = vmax.bf16 %v9969_v5, %v3455_v10  ;;  %v3534_v10 = vmax.bf16 %v9969_v5, %v3454_v34  ;;  %v3465_v1 = vadd.bf16 %v8452_v52, %v9991_v36 }
 0x47a   : > { %3943 = vmatmul.mubr.bf16.gmra.mrb[20].mxu1 %v3526_v14  ;;  %v3459_v34 = vadd.bf16 %v8452_v52, %v9985_v19  ;;  %v3458_v20 = vadd.bf16 %v8473_v30, %v9986_v29  ;;  %v9989_v29 = vpack.c.bf16 %v8715_v3, %v8705_v17  ;;  %v9990_v17 = vpack.c.bf16 %v8711_v37, %v8699_v27 }
 0x47b   : > { %3952 = vmatprep.mubr.bf16.mxu1 %v3529_v11  ;;  %v3545_v21 = vmax.bf16 %v9969_v5, %v3465_v1  ;;  %v9992_v27 = vpack.c.bf16 %v8733_v2, %v8721_v18 }
 0x47c   : > { %v3539_v54 = vmax.bf16 %v9969_v5, %v3459_v34  ;;  %v3538_v34 = vmax.bf16 %v9969_v5, %v3458_v20  ;;  %v3463_v20 = vadd.bf16 %v8452_v52, %v9989_v29  ;;  %v3462_v3 = vadd.bf16 %v8473_v30, %v9990_v17 }
 0x47d   : > { %v8845_v50 = vpop.f32.mrb[172].mxu1  ;;  %v3464_v57 = vadd.bf16 %v8473_v30, %v9992_v27  ;;  %v9993_v17 = vpack.c.bf16 %v8765_v51, %v8755_v49  ;;  %v9994_v49 = vpack.c.bf16 %v8761_v28, %v8749_v9  ;;  %v9995_v27 = vpack.c.bf16 %v8787_v46, %v8777_v25  ;;  %v10003_v9 = vld [vmem:[#allocation11_spill] sm:$0xff] }
 0x47e   : > { %v8847_v7 = vpop.f32.mrb[173].mxu1  ;;  %v3543_v33 = vmax.bf16 %v9969_v5, %v3463_v20  ;;  %v3542_v20 = vmax.bf16 %v9969_v5, %v3462_v3  ;;  %v9997_v25 = vpack.c.bf16 %v8783_v40, %v8771_v26  ;;  %v10005_v26 = vpack.c.bf16 %v8832_v8, %v8825_v4 }
 0x47f   : > { %v8849_v45 = vpop.f32.mrb[174].mxu1  ;;  %v3467_v3 = vadd.bf16 %v8452_v52, %v9993_v17  ;;  %v3544_v1 = vmax.bf16 %v9969_v5, %v3464_v57  ;;  %v3466_v51 = vadd.bf16 %v8473_v30, %v9994_v49  ;;  %v3469_v57 = vadd.bf16 %v8452_v52, %v9995_v27 }
 0x480   : > { %v8854_v11 = vpop.f32.mrb[175].mxu1  ;;  %v3468_v46 = vadd.bf16 %v8473_v30, %v9997_v25  ;;  %v9998_v49 = vpack.c.bf16 %v8809_v61, %v8799_v44  ;;  %v10002_v25 = vld [vmem:[#allocation10_spill] sm:$0xff]  ;;  %v10006_v4 = vpack.c.bf16 %v8827_v24, %v8823_v42 }
 0x481   : > { %v3547_v18 = vmax.bf16 %v9969_v5, %v3467_v3  ;;  %v3546_v3 = vmax.bf16 %v9969_v5, %v3466_v51  ;;  %v3549_v28 = vmax.bf16 %v9969_v5, %v3469_v57  ;;  %v4281_v57 = vld [vmem:[%s9867_s10] sm:$0x3] }
 0x482   : > { %3953 = vmatmul.mubr.bf16.gmra.mrb[24].mxu1 %v3528_v35  ;;  %v3471_v51 = vadd.bf16 %v8452_v52, %v9998_v49  ;;  %v4286_v49 = vrot.slane %v4281_v57, %v10002_v25  ;;  %v4290_v2 = vrot.slane %v4281_v57, %v10003_v9  ;;  %v3472_v8 = vadd.bf16 %v8473_v30, %v10006_v4 }
 0x483   : > { %3962 = vmatprep.mubr.bf16.mxu1 %v3531_v53 }
 0x484   : > { %v3551_v61 = vmax.bf16 %v9969_v5, %v3471_v51  ;;  %v4293_v44 = vpack.c.bf16 %v4286_v49, %v4286_v49 }
 0x485   : > { %v8867_v63 = vpop.f32.mrb[176].mxu1 }
 0x486   : > { %v8869_v14 = vpop.f32.mrb[177].mxu1 }
 0x487   : > { %v8871_v41 = vpop.f32.mrb[178].mxu1 }
 0x488   : > { %v8876_v53 = vpop.f32.mrb[179].mxu1 }
 0x48a   : > { %3963 = vmatmul.mubr.bf16.gmra.mrb[28].mxu1 %v3530_v23 }
 0x48b   : > { %3972 = vmatprep.mubr.bf16.mxu1 %v3533_v56 }
 0x48d   : > { %v8889_v15 = vpop.f32.mrb[180].mxu1 }
 0x48e   : > { %v8891_v35 = vpop.f32.mrb[181].mxu1 }
 0x48f   : > { %v8893_v38 = vpop.f32.mrb[182].mxu1 }
 0x490   : > { %v8898_v56 = vpop.f32.mrb[183].mxu1 }
 0x492   : > { %3973 = vmatmul.mubr.bf16.gmra.mrb[32].mxu1 %v3532_v55 }
 0x493   : > { %3982 = vmatprep.mubr.bf16.mxu1 %v3535_v31 }
 0x495   : > { %v8911_v58 = vpop.f32.mrb[184].mxu1 }
 0x496   : > { %v8913_v23 = vpop.f32.mrb[185].mxu1 }
 0x497   : > { %v8915_v39 = vpop.f32.mrb[186].mxu1 }
 0x498   : > { %v8920_v31 = vpop.f32.mrb[187].mxu1 }
 0x49a   : > { %3983 = vmatmul.mubr.bf16.gmra.mrb[36].mxu1 %v3534_v10 }
 0x49b   : > { %3992 = vmatprep.mubr.bf16.mxu1 %v3537_v47 }
 0x49d   : > { %v8933_v22 = vpop.f32.mrb[188].mxu1 }
 0x49e   : > { %v8935_v55 = vpop.f32.mrb[189].mxu1 }
 0x49f   : > { %v8937_v59 = vpop.f32.mrb[190].mxu1 }
 0x4a0   : > { %v8942_v47 = vpop.f32.mrb[191].mxu1 }
 0x4a2   : > { %3993 = vmatmul.mubr.bf16.gmra.mrb[40].mxu1 %v3536_v12 }
 0x4a3   : > { %4002 = vmatprep.mubr.bf16.mxu1 %v3539_v54 }
 0x4a5   : > { %v8955_v19 = vpop.f32.mrb[192].mxu1 }
 0x4a6   : > { %v8957_v10 = vpop.f32.mrb[193].mxu1 }
 0x4a7   : > { %v8959_v6 = vpop.f32.mrb[194].mxu1 }
 0x4a8   : > { %v8964_v54 = vpop.f32.mrb[195].mxu1 }
 0x4aa   : > { %4003 = vmatmul.mubr.bf16.gmra.mrb[44].mxu1 %v3538_v34 }
 0x4ab   : > { %4012 = vmatprep.mubr.bf16.mxu1 %v3541_v62 }
 0x4ad   : > { %v8977_v13 = vpop.f32.mrb[196].mxu1 }
 0x4ae   : > { %v8979_v12 = vpop.f32.mrb[197].mxu1 }
 0x4af   : > { %v8981_v32 = vpop.f32.mrb[198].mxu1 }
 0x4b0   : > { %v8986_v62 = vpop.f32.mrb[199].mxu1 }
 0x4b2   : > { %4013 = vmatmul.mubr.bf16.gmra.mrb[48].mxu1 %v3540_v43 }
 0x4b3   : > { %4022 = vmatprep.mubr.bf16.mxu1 %v3543_v33 }
 0x4b5   : > { %v8999_v29 = vpop.f32.mrb[200].mxu1 }
 0x4b6   : > { %v9001_v34 = vpop.f32.mrb[201].mxu1 }
 0x4b7   : > { %v9003_v60 = vpop.f32.mrb[202].mxu1 }
 0x4b8   : > { %v9008_v33 = vpop.f32.mrb[203].mxu1 }
 0x4ba   : > { %4023 = vmatmul.mubr.bf16.gmra.mrb[52].mxu1 %v3542_v20 }
 0x4bb   : > { %4032 = vmatprep.mubr.bf16.mxu1 %v3545_v21 }
 0x4bd   : > { %v9021_v36 = vpop.f32.mrb[204].mxu1 }
 0x4be   : > { %v9023_v43 = vpop.f32.mrb[205].mxu1 }
 0x4bf   : > { %v9025_v48 = vpop.f32.mrb[206].mxu1 }
 0x4c0   : > { %v9030_v21 = vpop.f32.mrb[207].mxu1 }
 0x4c2   : > { %4033 = vmatmul.mubr.bf16.gmra.mrb[56].mxu1 %v3544_v1 }
 0x4c3   : > { %4042 = vmatprep.mubr.bf16.mxu1 %v3547_v18 }
 0x4c5   : > { %v9043_v17 = vpop.f32.mrb[208].mxu1 }
 0x4c6   : > { %9996 = vst [vmem:[#allocation15_spill] sm:$0xff] %v9043_v17  ;;  %v9045_v20 = vpop.f32.mrb[209].mxu1  ;;  %v10004_v17 = vpack.c.bf16 %v8805_v16, %v8793_v0  ;;  %v4296_v16 = vpack.i.b16 %v4293_v44, %v4293_v44 }
 0x4c7   : > { %v9047_v37 = vpop.f32.mrb[210].mxu1 }
 0x4c8   : > { %v9052_v18 = vpop.f32.mrb[211].mxu1  ;;  %v9107_v49 = vrot.slane %v4296_v16, %v10002_v25  ;;  %v10009_v16 = vpack.c.bf16 %v8876_v53, %v8869_v14 }
 0x4ca   : > { %4043 = vmatmul.mubr.bf16.gmra.mrb[60].mxu1 %v3546_v3 }
 0x4cb   : > { %4052 = vmatprep.mubr.bf16.mxu1 %v3549_v28  ;;  %v3548_v28 = vmax.bf16 %v9969_v5, %v3468_v46  ;;  %v3470_v46 = vadd.bf16 %v8473_v30, %v10004_v17  ;;  %v10007_v17 = vpack.c.bf16 %v8854_v11, %v8847_v7 }
 0x4cd   : > { %v9065_v27 = vpop.f32.mrb[212].mxu1  ;;  %v3550_v57 = vmax.bf16 %v9969_v5, %v3470_v46 }
 0x4ce   : > { %9999 = vst [vmem:[#allocation16_spill] sm:$0xff] %v9065_v27  ;;  %v9067_v1 = vpop.f32.mrb[213].mxu1  ;;  %v3473_v27 = vadd.bf16 %v8452_v52, %v10005_v26 }
 0x4cf   : > { %10000 = vst [vmem:[#allocation17_spill] sm:$0xff] %v9067_v1  ;;  %v9072_v3 = vpop.f32.mrb[214].mxu1  ;;  %v4294_v1 = vpack.c.bf16 %v4290_v2, %v4290_v2  ;;  %v3475_v2 = vadd.bf16 %v8452_v52, %v10007_v17 }
 0x4d0   : > { %10001 = vst [vmem:[#allocation19_spill] sm:$0xff] %v9072_v3  ;;  %v9077_v40 = vpop.f32.mrb[215].mxu1  ;;  %v3553_v9 = vmax.bf16 %v9969_v5, %v3473_v27 }
 0x4d1   : > { %v4303_v0 = vpack.i.b16 %v4294_v1, %v4294_v1 }
 0x4d2   : > { %4053 = vmatmul.mubr.bf16.gmra.mrb[64].mxu1 %v3548_v28 }
 0x4d3   : > { %4062 = vmatprep.mubr.bf16.mxu1 %v3551_v61  ;;  %v9110_v27 = vrot.slane %v4303_v0, %v10002_v25  ;;  %v3477_v0 = vadd.bf16 %v8452_v52, %v10009_v16 }
 0x4d5   : > { %v9092_v3 = vpop.f32.mrb[216].mxu1 }
 0x4d6   : > { %v9094_v51 = vpop.f32.mrb[217].mxu1 }
 0x4d7   : > { %v3307_v28 = vpop.f32.mrb[218].mxu1 }
 0x4d8   : > { %v3308_v61 = vpop.f32.mrb[219].mxu1  ;;  %v3555_v28 = vmax.bf16 %v9969_v5, %v3475_v2 }
 0x4da   : > { %4063 = vmatmul.mubr.bf16.gmra.mrb[68].mxu1 %v3550_v57  ;;  %v10008_v57 = vpack.c.bf16 %v8849_v45, %v8845_v50  ;;  %v3557_v50 = vmax.bf16 %v9969_v5, %v3477_v0 }
 0x4db   : > { %4072 = vmatprep.mubr.bf16.mxu1 %v3553_v9  ;;  %v3552_v9 = vmax.bf16 %v9969_v5, %v3472_v8 }
 0x4dc   : > { %v3474_v61 = vadd.bf16 %v8473_v30, %v10008_v57 }
 0x4dd   : > { %v3804_v26 = vpop.f32.mrb[220].mxu1 }
 0x4de   : > { %v3806_v46 = vpop.f32.mrb[221].mxu1 }
 0x4df   : > { %v3808_v1 = vpop.f32.mrb[222].mxu1 }
 0x4e0   : > { %v4201_v44 = vpack.c.bf16 %v3808_v1, %v3804_v26  ;;  %v3810_v24 = vpop.f32.mrb[223].mxu1 }
 0x4e1   : > { %v4202_v42 = vpack.c.bf16 %v3810_v24, %v3806_v46  ;;  %v3554_v46 = vmax.bf16 %v9969_v5, %v3474_v61 }
 0x4e2   : > { %v4309_v7 = vadd.bf16 %v9107_v49, %v4201_v44  ;;  %4073 = vmatmul.mubr.bf16.gmra.mrb[72].mxu1 %v3552_v9  ;;  %v10010_v44 = vpack.c.bf16 %v8871_v41, %v8867_v63 }
 0x4e3   : > { %v4310_v11 = vadd.bf16 %v9110_v27, %v4202_v42  ;;  %4082 = vmatprep.mubr.bf16.mxu1 %v3555_v28  ;;  %v10011_v42 = vpack.c.bf16 %v8898_v56, %v8891_v35 }
 0x4e4   : > { %v4389_v17 = vmax.bf16 %v9969_v5, %v4309_v7  ;;  %v3476_v24 = vadd.bf16 %v8473_v30, %v10010_v44 }
 0x4e5   : > { %v3814_v4 = vpop.f32.mrb[224].mxu1  ;;  %v4390_v8 = vmax.bf16 %v9969_v5, %v4310_v11  ;;  %v3479_v28 = vadd.bf16 %v8452_v52, %v10011_v42  ;;  %v10014_v42 = vpack.c.bf16 %v8915_v39, %v8911_v58 }
 0x4e6   : > { %v3816_v2 = vpop.f32.mrb[225].mxu1  ;;  %v3556_v0 = vmax.bf16 %v9969_v5, %v3476_v24 }
 0x4e7   : > { %v3818_v26 = vpop.f32.mrb[226].mxu1  ;;  %4705 = vmatprep.mubr.bf16.mxu0 %v4390_v8  ;;  %v3559_v63 = vmax.bf16 %v9969_v5, %v3479_v28  ;;  %v3480_v28 = vadd.bf16 %v8473_v30, %v10014_v42 }
 0x4e8   : > { %v4203_v1 = vpack.c.bf16 %v3818_v26, %v3814_v4  ;;  %v3820_v9 = vpop.f32.mrb[227].mxu1  ;;  %4706 = vmatmul.mubr.bf16.vlgmr.msra.gmra.mrb[168].mxu0 %v4389_v17  ;;  %v10012_v17 = vpack.c.bf16 %v8893_v38, %v8889_v15  ;;  %v10013_v26 = vpack.c.bf16 %v8920_v31, %v8913_v23 }
 0x4e9   : > { %v4204_v45 = vpack.c.bf16 %v3820_v9, %v3816_v2 }
 0x4ea   : > { %v4311_v14 = vadd.bf16 %v9107_v49, %v4203_v1  ;;  %4083 = vmatmul.mubr.bf16.gmra.mrb[76].mxu1 %v3554_v46  ;;  %v3478_v2 = vadd.bf16 %v8473_v30, %v10012_v17  ;;  %v3481_v46 = vadd.bf16 %v8452_v52, %v10013_v26  ;;  %v10017_v17 = vpack.c.bf16 %v8964_v54, %v8957_v10 }
 0x4eb   : > { %v4312_v53 = vadd.bf16 %v9110_v27, %v4204_v45  ;;  %4092 = vmatprep.mubr.bf16.mxu1 %v3557_v50 }
 0x4ec   : > { %v4391_v61 = vmax.bf16 %v9969_v5, %v4311_v14  ;;  %v3561_v15 = vmax.bf16 %v9969_v5, %v3481_v46 }
 0x4ed   : > { %v3824_v7 = vpop.f32.mrb[228].mxu1  ;;  %v4392_v11 = vmax.bf16 %v9969_v5, %v4312_v53  ;;  %v3558_v53 = vmax.bf16 %v9969_v5, %v3478_v2  ;;  %v3485_v2 = vadd.bf16 %v8452_v52, %v10017_v17  ;;  %v10022_v17 = vpack.c.bf16 %v9003_v60, %v8999_v29 }
 0x4ee   : > { %v3826_v57 = vpop.f32.mrb[229].mxu1 }
 0x4ef   : > { %v3828_v16 = vpop.f32.mrb[230].mxu1  ;;  %4715 = vmatprep.mubr.bf16.mxu0 %v4392_v11 }
 0x4f0   : > { %v4205_v4 = vpack.c.bf16 %v3828_v16, %v3824_v7  ;;  %v3830_v8 = vpop.f32.mrb[231].mxu1  ;;  %4716 = vmatmul.mubr.bf16.gmra.mrb[172].mxu0 %v4391_v61  ;;  %v10015_v7 = vpack.c.bf16 %v8942_v47, %v8935_v55 }
 0x4f1   : > { %v4206_v41 = vpack.c.bf16 %v3830_v8, %v3826_v57  ;;  %v3560_v8 = vmax.bf16 %v9969_v5, %v3480_v28 }
 0x4f2   : > { %v4313_v35 = vadd.bf16 %v9107_v49, %v4205_v4  ;;  %4093 = vmatmul.mubr.bf16.gmra.mrb[80].mxu1 %v3556_v0  ;;  %v3483_v11 = vadd.bf16 %v8452_v52, %v10015_v7 }
 0x4f3   : > { %v4314_v56 = vadd.bf16 %v9110_v27, %v4206_v41  ;;  %4102 = vmatprep.mubr.bf16.mxu1 %v3559_v63 }
 0x4f4   : > { %v4393_v50 = vmax.bf16 %v9969_v5, %v4313_v35  ;;  %v3563_v58 = vmax.bf16 %v9969_v5, %v3483_v11  ;;  %v10016_v35 = vpack.c.bf16 %v8937_v59, %v8933_v22  ;;  %v3565_v22 = vmax.bf16 %v9969_v5, %v3485_v2 }
 0x4f5   : > { %v3834_v1 = vpop.f32.mrb[232].mxu1  ;;  %v4394_v9 = vmax.bf16 %v9969_v5, %v4314_v56  ;;  %v3488_v2 = vadd.bf16 %v8473_v30, %v10022_v17 }
 0x4f6   : > { %v3836_v45 = vpop.f32.mrb[233].mxu1  ;;  %v3482_v56 = vadd.bf16 %v8473_v30, %v10016_v35 }
 0x4f7   : > { %v3838_v14 = vpop.f32.mrb[234].mxu1  ;;  %4725 = vmatprep.mubr.bf16.mxu0 %v4394_v9 }
 0x4f8   : > { %v4207_v44 = vpack.c.bf16 %v3838_v14, %v3834_v1  ;;  %v3840_v24 = vpop.f32.mrb[235].mxu1  ;;  %4726 = vmatmul.mubr.bf16.gmra.mrb[176].mxu0 %v4393_v50  ;;  %v3562_v50 = vmax.bf16 %v9969_v5, %v3482_v56 }
 0x4f9   : > { %v4208_v38 = vpack.c.bf16 %v3840_v24, %v3836_v45 }
 0x4fa   : > { %v4315_v23 = vadd.bf16 %v9107_v49, %v4207_v44  ;;  %4103 = vmatmul.mubr.bf16.gmra.mrb[84].mxu1 %v3558_v53  ;;  %v10018_v44 = vpack.c.bf16 %v8959_v6, %v8955_v19 }
 0x4fb   : > { %v4316_v31 = vadd.bf16 %v9110_v27, %v4208_v38  ;;  %4112 = vmatprep.mubr.bf16.mxu1 %v3561_v15  ;;  %v10019_v38 = vpack.c.bf16 %v8986_v62, %v8979_v12 }
 0x4fc   : > { %v4395_v0 = vmax.bf16 %v9969_v5, %v4315_v23  ;;  %v3484_v24 = vadd.bf16 %v8473_v30, %v10018_v44  ;;  %v10025_v44 = vpack.c.bf16 %v9052_v18, %v9045_v20 }
 0x4fd   : > { %v3844_v57 = vpop.f32.mrb[236].mxu1  ;;  %v4396_v61 = vmax.bf16 %v9969_v5, %v4316_v31  ;;  %v3487_v15 = vadd.bf16 %v8452_v52, %v10019_v38 }
 0x4fe   : > { %v3846_v16 = vpop.f32.mrb[237].mxu1  ;;  %v3564_v11 = vmax.bf16 %v9969_v5, %v3484_v24  ;;  %v3493_v24 = vadd.bf16 %v8452_v52, %v10025_v44 }
 0x4ff   : > { %v3848_v4 = vpop.f32.mrb[238].mxu1  ;;  %4735 = vmatprep.mubr.bf16.mxu0 %v4396_v61  ;;  %v3567_v19 = vmax.bf16 %v9969_v5, %v3487_v15 }
 0x500   : > { %v4209_v41 = vpack.c.bf16 %v3848_v4, %v3844_v57  ;;  %v3850_v63 = vpop.f32.mrb[239].mxu1  ;;  %4736 = vmatmul.mubr.bf16.gmra.mrb[180].mxu0 %v4395_v0  ;;  %v10021_v4 = vpack.c.bf16 %v9008_v33, %v9001_v34 }
 0x501   : > { %v4210_v39 = vpack.c.bf16 %v3850_v63, %v3846_v16  ;;  %v10020_v16 = vpack.c.bf16 %v8981_v32, %v8977_v13 }
 0x502   : > { %v4317_v55 = vadd.bf16 %v9107_v49, %v4209_v41  ;;  %4113 = vmatmul.mubr.bf16.gmra.mrb[88].mxu1 %v3560_v8  ;;  %v3489_v8 = vadd.bf16 %v8452_v52, %v10021_v4 }
 0x503   : > { %v4318_v47 = vadd.bf16 %v9110_v27, %v4210_v39  ;;  %4122 = vmatprep.mubr.bf16.mxu1 %v3563_v58  ;;  %v3486_v0 = vadd.bf16 %v8473_v30, %v10020_v16 }
 0x504   : > { %v4397_v9 = vmax.bf16 %v9969_v5, %v4317_v55  ;;  %v3569_v13 = vmax.bf16 %v9969_v5, %v3489_v8 }
 0x505   : > { %v3854_v26 = vpop.f32.mrb[240].mxu1  ;;  %v4398_v46 = vmax.bf16 %v9969_v5, %v4318_v47  ;;  %v3566_v47 = vmax.bf16 %v9969_v5, %v3486_v0 }
 0x506   : > { %v3856_v1 = vpop.f32.mrb[241].mxu1 }
 0x507   : > { %v3858_v45 = vpop.f32.mrb[242].mxu1  ;;  %4745 = vmatprep.mubr.bf16.mxu0 %v4398_v46 }
 0x508   : > { %v4211_v14 = vpack.c.bf16 %v3858_v45, %v3854_v26  ;;  %v3860_v53 = vpop.f32.mrb[243].mxu1  ;;  %4746 = vmatmul.mubr.bf16.gmra.mrb[184].mxu0 %v4397_v9  ;;  %v10023_v26 = vpack.c.bf16 %v9030_v21, %v9023_v43 }
 0x509   : > { %v4212_v59 = vpack.c.bf16 %v3860_v53, %v3856_v1  ;;  %v3568_v53 = vmax.bf16 %v9969_v5, %v3488_v2 }
 0x50a   : > { %v4319_v10 = vadd.bf16 %v9107_v49, %v4211_v14  ;;  %4123 = vmatmul.mubr.bf16.gmra.mrb[92].mxu1 %v3562_v50  ;;  %v3491_v46 = vadd.bf16 %v8452_v52, %v10023_v26 }
 0x50b   : > { %v4320_v54 = vadd.bf16 %v9110_v27, %v4212_v59  ;;  %4132 = vmatprep.mubr.bf16.mxu1 %v3565_v22 }
 0x50c   : > { %v4399_v28 = vmax.bf16 %v9969_v5, %v4319_v10  ;;  %v3571_v29 = vmax.bf16 %v9969_v5, %v3491_v46  ;;  %v10024_v10 = vpack.c.bf16 %v9025_v48, %v9021_v36  ;;  %v3573_v36 = vmax.bf16 %v9969_v5, %v3493_v24 }
 0x50d   : > { %v3864_v23 = vpop.f32.mrb[244].mxu1  ;;  %v4400_v31 = vmax.bf16 %v9969_v5, %v4320_v54 }
 0x50e   : > { %v3866_v42 = vpop.f32.mrb[245].mxu1  ;;  %v3490_v54 = vadd.bf16 %v8473_v30, %v10024_v10 }
 0x50f   : > { %v3868_v7 = vpop.f32.mrb[246].mxu1  ;;  %4755 = vmatprep.mubr.bf16.mxu0 %v4400_v31 }
 0x510   : > { %v4213_v57 = vpack.c.bf16 %v3868_v7, %v3864_v23  ;;  %v3870_v61 = vpop.f32.mrb[247].mxu1  ;;  %4756 = vmatmul.mubr.bf16.gmra.mrb[188].mxu0 %v4399_v28  ;;  %v3570_v28 = vmax.bf16 %v9969_v5, %v3490_v54 }
 0x511   : > { %v4214_v6 = vpack.c.bf16 %v3870_v61, %v3866_v42 }
 0x512   : > { %v4321_v12 = vadd.bf16 %v9107_v49, %v4213_v57  ;;  %4133 = vmatmul.mubr.bf16.gmra.mrb[96].mxu1 %v3564_v11  ;;  %v10026_v57 = vld [vmem:[#allocation15_spill] sm:$0xff] }
 0x513   : > { %v4322_v62 = vadd.bf16 %v9110_v27, %v4214_v6  ;;  %4142 = vmatprep.mubr.bf16.mxu1 %v3567_v19  ;;  %v10027_v61 = vpack.c.bf16 %v9047_v37, %v10026_v57  ;;  %v10028_v19 = vld [vmem:[#allocation17_spill] sm:$0xff]  ;;  %v3389_v37 = vpack.c.bf16 %v9094_v51, %v9094_v51 }
 0x514   : > { %v4401_v58 = vmax.bf16 %v9969_v5, %v4321_v12  ;;  %v10029_v12 = vpack.c.bf16 %v9077_v40, %v10028_v19 }
 0x515   : > { %v3874_v41 = vpop.f32.mrb[248].mxu1  ;;  %v4402_v63 = vmax.bf16 %v9969_v5, %v4322_v62  ;;  %v3492_v6 = vadd.bf16 %v8473_v30, %v10027_v61 }
 0x516   : > { %v3876_v39 = vpop.f32.mrb[249].mxu1  ;;  %v3495_v62 = vadd.bf16 %v8452_v52, %v10029_v12 }
 0x517   : > { %v3878_v55 = vpop.f32.mrb[250].mxu1  ;;  %4765 = vmatprep.mubr.bf16.mxu0 %v4402_v63  ;;  %v3572_v63 = vmax.bf16 %v9969_v5, %v3492_v6 }
 0x518   : > { %v4215_v35 = vpack.c.bf16 %v3878_v55, %v3874_v41  ;;  %v3880_v56 = vpop.f32.mrb[251].mxu1  ;;  %4766 = vmatmul.mubr.bf16.gmra.mrb[192].mxu0 %v4401_v58  ;;  %v3575_v40 = vmax.bf16 %v9969_v5, %v3495_v62 }
 0x519   : > { %v4216_v32 = vpack.c.bf16 %v3880_v56, %v3876_v39  ;;  %v10030_v56 = vld [vmem:[#allocation19_spill] sm:$0xff] }
 0x51a   : > { %v4323_v34 = vadd.bf16 %v9107_v49, %v4215_v35  ;;  %4143 = vmatmul.mubr.bf16.gmra.mrb[100].mxu1 %v3566_v47 }
 0x51b   : > { %v4324_v33 = vadd.bf16 %v9110_v27, %v4216_v32  ;;  %4152 = vmatprep.mubr.bf16.mxu1 %v3569_v13  ;;  %v10031_v32 = vld [vmem:[#allocation16_spill] sm:$0xff] }
 0x51c   : > { %v4403_v50 = vmax.bf16 %v9969_v5, %v4323_v34  ;;  %v10032_v13 = vpack.c.bf16 %v10030_v56, %v10031_v32 }
 0x51d   : > { %v3884_v1 = vpop.f32.mrb[252].mxu1  ;;  %v4404_v9 = vmax.bf16 %v9969_v5, %v4324_v33  ;;  %v3497_v33 = vadd.bf16 %v8452_v52, %v3389_v37 }
 0x51e   : > { %v3886_v45 = vpop.f32.mrb[253].mxu1  ;;  %v3494_v34 = vadd.bf16 %v8473_v30, %v10032_v13 }
 0x51f   : > { %v3888_v14 = vpop.f32.mrb[254].mxu1  ;;  %4775 = vmatprep.mubr.bf16.mxu0 %v4404_v9  ;;  %v3388_v9 = vpack.c.bf16 %v9092_v3, %v9092_v3 }
 0x520   : > { %v4217_v59 = vpack.c.bf16 %v3888_v14, %v3884_v1  ;;  %v3890_v22 = vpop.f32.mrb[255].mxu1  ;;  %4776 = vmatmul.mubr.bf16.gmra.mrb[196].mxu0 %v4403_v50  ;;  %v3574_v1 = vmax.bf16 %v9969_v5, %v3494_v34 }
 0x521   : > { %v4218_v60 = vpack.c.bf16 %v3890_v22, %v3886_v45  ;;  %v3496_v22 = vadd.bf16 %v8473_v30, %v3388_v9 }
 0x522   : > { %v4325_v43 = vadd.bf16 %v9107_v49, %v4217_v59  ;;  %4153 = vmatmul.mubr.bf16.gmra.mrb[104].mxu1 %v3568_v53  ;;  %v3577_v53 = vmax.bf16 %v9969_v5, %v3497_v33 }
 0x523   : > { %v4326_v21 = vadd.bf16 %v9110_v27, %v4218_v60  ;;  %4162 = vmatprep.mubr.bf16.mxu1 %v3571_v29  ;;  %v3576_v10 = vmax.bf16 %v9969_v5, %v3496_v22 }
 0x524   : > { %v4405_v31 = vmax.bf16 %v9969_v5, %v4325_v43 }
 0x525   : > { %v3894_v38 = vpop.f32.mrb[0].mxu1  ;;  %v4406_v15 = vmax.bf16 %v9969_v5, %v4326_v21 }
 0x526   : > { %v3896_v23 = vpop.f32.mrb[1].mxu1 }
 0x527   : > { %v3898_v42 = vpop.f32.mrb[2].mxu1  ;;  %4785 = vmatprep.mubr.bf16.mxu0 %v4406_v15 }
 0x528   : > { %v4219_v7 = vpack.c.bf16 %v3898_v42, %v3894_v38  ;;  %v3900_v11 = vpop.f32.mrb[3].mxu1  ;;  %4786 = vmatmul.mubr.bf16.gmra.mrb[200].mxu0 %v4405_v31 }
 0x529   : > { %v4220_v48 = vpack.c.bf16 %v3900_v11, %v3896_v23 }
 0x52a   : > { %v4327_v20 = vadd.bf16 %v9107_v49, %v4219_v7  ;;  %4163 = vmatmul.mubr.bf16.gmra.mrb[108].mxu1 %v3570_v28 }
 0x52b   : > { %v4328_v18 = vadd.bf16 %v9110_v27, %v4220_v48  ;;  %4172 = vmatprep.mubr.bf16.mxu1 %v3573_v36 }
 0x52c   : > { %v4407_v8 = vmax.bf16 %v9969_v5, %v4327_v20 }
 0x52d   : > { %v3904_v16 = vpop.f32.mrb[4].mxu1  ;;  %v4408_v0 = vmax.bf16 %v9969_v5, %v4328_v18 }
 0x52e   : > { %v3906_v4 = vpop.f32.mrb[5].mxu1 }
 0x52f   : > { %v3908_v41 = vpop.f32.mrb[6].mxu1  ;;  %4795 = vmatprep.mubr.bf16.mxu0 %v4408_v0 }
 0x530   : > { %v4221_v39 = vpack.c.bf16 %v3908_v41, %v3904_v16  ;;  %v3910_v58 = vpop.f32.mrb[7].mxu1  ;;  %4796 = vmatmul.mubr.bf16.gmra.mrb[204].mxu0 %v4407_v8  ;;  %v7033_v8 = vld [vmem:[%s9870_s13] ss:$8 sps:$4 sm:$0xff]   ;;  %v7035_v41 = vld [vmem:[%s9870_s13 + $0x4] ss:$8 sps:$4 sm:$0xff]  }
 0x531   : > { %v4222_v55 = vpack.c.bf16 %v3910_v58, %v3906_v4  ;;  %5639 = vmatprep.subr.bf16.mxu1 %v7035_v41 }
 0x532   : > { %v4329_v47 = vadd.bf16 %v9107_v49, %v4221_v39  ;;  %4173 = vmatmul.mubr.bf16.gmra.mrb[112].mxu1 %v3572_v63 }
 0x533   : > { %v4330_v35 = vadd.bf16 %v9110_v27, %v4222_v55  ;;  %4182 = vmatprep.mubr.bf16.mxu1 %v3575_v40  ;;  %5640 = vmatpush1.bf16.msra.mxu1 %v7033_v8 }
 0x534   : > { %v4409_v26 = vmax.bf16 %v9969_v5, %v4329_v47 }
 0x535   : > { %v3914_v17 = vpop.f32.mrb[8].mxu1  ;;  %v4410_v2 = vmax.bf16 %v9969_v5, %v4330_v35 }
 0x536   : > { %v3916_v51 = vpop.f32.mrb[9].mxu1 }
 0x537   : > { %v3918_v46 = vpop.f32.mrb[10].mxu1  ;;  %4805 = vmatprep.mubr.bf16.mxu0 %v4410_v2 }
 0x538   : > { %v4223_v45 = vpack.c.bf16 %v3918_v46, %v3914_v17  ;;  %v3920_v50 = vpop.f32.mrb[11].mxu1  ;;  %4806 = vmatmul.mubr.bf16.gmra.mrb[208].mxu0 %v4409_v26 }
 0x539   : > { %v4224_v14 = vpack.c.bf16 %v3920_v50, %v3916_v51 }
 0x53a   : > { %v4331_v52 = vadd.bf16 %v9107_v49, %v4223_v45  ;;  %4183 = vmatmul.mubr.bf16.gmra.mrb[116].mxu1 %v3574_v1 }
 0x53b   : > { %v4332_v59 = vadd.bf16 %v9110_v27, %v4224_v14  ;;  %4192 = vmatprep.mubr.bf16.mxu1 %v3577_v53 }
 0x53c   : > { %v4411_v3 = vmax.bf16 %v9969_v5, %v4331_v52 }
 0x53d   : > { %v3924_v60 = vpop.f32.mrb[12].mxu1  ;;  %v4412_v29 = vmax.bf16 %v9969_v5, %v4332_v59 }
 0x53e   : > { %v3926_v43 = vpop.f32.mrb[13].mxu1 }
 0x53f   : > { %v3928_v21 = vpop.f32.mrb[14].mxu1  ;;  %4815 = vmatprep.mubr.bf16.mxu0 %v4412_v29  ;;  %v7038_v29 = vld [vmem:[%s9870_s13 + $0x14] ss:$8 sps:$4 sm:$0xff]  }
 0x540   : > { %v4225_v54 = vpack.c.bf16 %v3928_v21, %v3924_v60  ;;  %v3930_v44 = vpop.f32.mrb[15].mxu1  ;;  %4816 = vmatmul.mubr.bf16.gmra.mrb[212].mxu0 %v4411_v3  ;;  %v7036_v60 = vld [vmem:[%s9870_s13 + $0x10] ss:$8 sps:$4 sm:$0xff]   ;;  %5641 = vmatprep.subr.bf16.mxu1 %v7038_v29 }
 0x541   : > { %v4226_v24 = vpack.c.bf16 %v3930_v44, %v3926_v43  ;;  %5642 = vmatpush1.bf16.msra.mxu1 %v7036_v60 }
 0x542   : > { %v4333_v38 = vadd.bf16 %v9107_v49, %v4225_v54  ;;  %4193 = vmatmul.mubr.bf16.gmra.mrb[120].mxu1 %v3576_v10 }
 0x543   : > { %v4334_v15 = vadd.bf16 %v9110_v27, %v4226_v24 }
 0x544   : > { %v4413_v42 = vmax.bf16 %v9969_v5, %v4333_v38 }
 0x545   : > { %v3934_v30 = vpop.f32.mrb[16].mxu1  ;;  %v4414_v23 = vmax.bf16 %v9969_v5, %v4334_v15 }
 0x546   : > { %v3936_v31 = vpop.f32.mrb[17].mxu1 }
 0x547   : > { %v3938_v28 = vpop.f32.mrb[18].mxu1  ;;  %4825 = vmatprep.mubr.bf16.mxu0 %v4414_v23 }
 0x548   : > { %v4227_v7 = vpack.c.bf16 %v3938_v28, %v3934_v30  ;;  %v3940_v11 = vpop.f32.mrb[19].mxu1  ;;  %4826 = vmatmul.mubr.bf16.gmra.mrb[216].mxu0 %v4413_v42 }
 0x549   : > { %v4228_v48 = vpack.c.bf16 %v3940_v11, %v3936_v31 }
 0x54a   : > { %v4335_v36 = vadd.bf16 %v9107_v49, %v4227_v7 }
 0x54b   : > { %v4336_v20 = vadd.bf16 %v9110_v27, %v4228_v48 }
 0x54c   : > { %v4415_v6 = vmax.bf16 %v9969_v5, %v4335_v36 }
 0x54d   : > { %v3944_v18 = vpop.f32.mrb[20].mxu1  ;;  %v4416_v57 = vmax.bf16 %v9969_v5, %v4336_v20 }
 0x54e   : > { %v3946_v61 = vpop.f32.mrb[21].mxu1 }
 0x54f   : > { %v3948_v19 = vpop.f32.mrb[22].mxu1  ;;  %4835 = vmatprep.mubr.bf16.mxu0 %v4416_v57 }
 0x550   : > { %v4229_v12 = vpack.c.bf16 %v3948_v19, %v3944_v18  ;;  %v3950_v62 = vpop.f32.mrb[23].mxu1  ;;  %4836 = vmatmul.mubr.bf16.gmra.mrb[220].mxu0 %v4415_v6  ;;  %v7039_v19 = vld [vmem:[%s9870_s13 + $0x20] ss:$8 sps:$4 sm:$0xff]  }
 0x551   : > { %v4230_v16 = vpack.c.bf16 %v3950_v62, %v3946_v61 }
 0x552   : > { %v4337_v0 = vadd.bf16 %v9107_v49, %v4229_v12  ;;  %v7041_v12 = vld [vmem:[%s9870_s13 + $0x24] ss:$8 sps:$4 sm:$0xff]  }
 0x553   : > { %v4338_v4 = vadd.bf16 %v9110_v27, %v4230_v16  ;;  %5643 = vmatprep.subr.bf16.mxu1 %v7041_v12 }
 0x554   : > { %v4417_v37 = vmax.bf16 %v9969_v5, %v4337_v0  ;;  %5644 = vmatpush1.bf16.msra.mxu1 %v7039_v19 }
 0x555   : > { %v3954_v63 = vpop.f32.mrb[24].mxu1  ;;  %v4418_v39 = vmax.bf16 %v9969_v5, %v4338_v4 }
 0x556   : > { %v3956_v58 = vpop.f32.mrb[25].mxu1 }
 0x557   : > { %v3958_v55 = vpop.f32.mrb[26].mxu1  ;;  %4845 = vmatprep.mubr.bf16.mxu0 %v4418_v39 }
 0x558   : > { %v4231_v40 = vpack.c.bf16 %v3958_v55, %v3954_v63  ;;  %v3960_v47 = vpop.f32.mrb[27].mxu1  ;;  %4846 = vmatmul.mubr.bf16.gmra.mrb[224].mxu0 %v4417_v37 }
 0x559   : > { %v4232_v35 = vpack.c.bf16 %v3960_v47, %v3956_v58 }
 0x55a   : > { %v4339_v56 = vadd.bf16 %v9107_v49, %v4231_v40 }
 0x55b   : > { %v4340_v32 = vadd.bf16 %v9110_v27, %v4232_v35 }
 0x55c   : > { %v4419_v17 = vmax.bf16 %v9969_v5, %v4339_v56 }
 0x55d   : > { %v3964_v13 = vpop.f32.mrb[28].mxu1  ;;  %v4420_v34 = vmax.bf16 %v9969_v5, %v4340_v32 }
 0x55e   : > { %v3966_v33 = vpop.f32.mrb[29].mxu1 }
 0x55f   : > { %v3968_v2 = vpop.f32.mrb[30].mxu1  ;;  %4855 = vmatprep.mubr.bf16.mxu0 %v4420_v34 }
 0x560   : > { %v4233_v51 = vpack.c.bf16 %v3968_v2, %v3964_v13  ;;  %v3970_v26 = vpop.f32.mrb[31].mxu1  ;;  %4856 = vmatmul.mubr.bf16.gmra.mrb[228].mxu0 %v4419_v17 }
 0x561   : > { %v4234_v46 = vpack.c.bf16 %v3970_v26, %v3966_v33 }
 0x562   : > { %v4341_v1 = vadd.bf16 %v9107_v49, %v4233_v51 }
 0x563   : > { %v4342_v9 = vadd.bf16 %v9110_v27, %v4234_v46 }
 0x564   : > { %v4421_v53 = vmax.bf16 %v9969_v5, %v4341_v1 }
 0x565   : > { %v3974_v45 = vpop.f32.mrb[32].mxu1  ;;  %v4422_v50 = vmax.bf16 %v9969_v5, %v4342_v9 }
 0x566   : > { %v3976_v14 = vpop.f32.mrb[33].mxu1 }
 0x567   : > { %v3978_v52 = vpop.f32.mrb[34].mxu1  ;;  %4865 = vmatprep.mubr.bf16.mxu0 %v4422_v50  ;;  %v7042_v50 = vld [vmem:[%s9870_s13 + $0x30] ss:$8 sps:$4 sm:$0xff]  }
 0x568   : > { %v4235_v59 = vpack.c.bf16 %v3978_v52, %v3974_v45  ;;  %v3980_v22 = vpop.f32.mrb[35].mxu1  ;;  %4866 = vmatmul.mubr.bf16.gmra.mrb[232].mxu0 %v4421_v53 }
 0x569   : > { %v4236_v43 = vpack.c.bf16 %v3980_v22, %v3976_v14  ;;  %v7044_v14 = vld [vmem:[%s9870_s13 + $0x34] ss:$8 sps:$4 sm:$0xff]  }
 0x56a   : > { %v4343_v3 = vadd.bf16 %v9107_v49, %v4235_v59  ;;  %5645 = vmatprep.subr.bf16.mxu1 %v7044_v14 }
 0x56b   : > { %v4344_v21 = vadd.bf16 %v9110_v27, %v4236_v43  ;;  %5646 = vmatpush1.bf16.msra.mxu1 %v7042_v50 }
 0x56c   : > { %v4423_v24 = vmax.bf16 %v9969_v5, %v4343_v3 }
 0x56d   : > { %v3984_v10 = vpop.f32.mrb[36].mxu1  ;;  %v4424_v54 = vmax.bf16 %v9969_v5, %v4344_v21 }
 0x56e   : > { %v3986_v44 = vpop.f32.mrb[37].mxu1 }
 0x56f   : > { %v3988_v38 = vpop.f32.mrb[38].mxu1  ;;  %4875 = vmatprep.mubr.bf16.mxu0 %v4424_v54 }
 0x570   : > { %v4237_v15 = vpack.c.bf16 %v3988_v38, %v3984_v10  ;;  %v3990_v30 = vpop.f32.mrb[39].mxu1  ;;  %4876 = vmatmul.mubr.bf16.gmra.mrb[236].mxu0 %v4423_v24 }
 0x571   : > { %v4238_v23 = vpack.c.bf16 %v3990_v30, %v3986_v44 }
 0x572   : > { %v4345_v31 = vadd.bf16 %v9107_v49, %v4237_v15 }
 0x573   : > { %v4346_v42 = vadd.bf16 %v9110_v27, %v4238_v23 }
 0x574   : > { %v4425_v48 = vmax.bf16 %v9969_v5, %v4345_v31 }
 0x575   : > { %v3994_v28 = vpop.f32.mrb[40].mxu1  ;;  %v4426_v7 = vmax.bf16 %v9969_v5, %v4346_v42 }
 0x576   : > { %v3996_v11 = vpop.f32.mrb[41].mxu1 }
 0x577   : > { %v3998_v36 = vpop.f32.mrb[42].mxu1  ;;  %4885 = vmatprep.mubr.bf16.mxu0 %v4426_v7 }
 0x578   : > { %v4239_v20 = vpack.c.bf16 %v3998_v36, %v3994_v28  ;;  %v4000_v18 = vpop.f32.mrb[43].mxu1  ;;  %4886 = vmatmul.mubr.bf16.gmra.mrb[240].mxu0 %v4425_v48  ;;  %v7045_v36 = vld [vmem:[%s9870_s13 + $0x40] ss:$8 sps:$4 sm:$0xff]  }
 0x579   : > { %v4240_v57 = vpack.c.bf16 %v4000_v18, %v3996_v11 }
 0x57a   : > { %v4347_v61 = vadd.bf16 %v9107_v49, %v4239_v20  ;;  %v7047_v20 = vld [vmem:[%s9870_s13 + $0x44] ss:$8 sps:$4 sm:$0xff]  }
 0x57b   : > { %v4348_v6 = vadd.bf16 %v9110_v27, %v4240_v57  ;;  %5647 = vmatprep.subr.bf16.mxu1 %v7047_v20 }
 0x57c   : > { %v4427_v4 = vmax.bf16 %v9969_v5, %v4347_v61  ;;  %5648 = vmatpush1.bf16.msra.mxu1 %v7045_v36 }
 0x57d   : > { %v4004_v62 = vpop.f32.mrb[44].mxu1  ;;  %v4428_v16 = vmax.bf16 %v9969_v5, %v4348_v6 }
 0x57e   : > { %v4006_v0 = vpop.f32.mrb[45].mxu1 }
 0x57f   : > { %v4008_v8 = vpop.f32.mrb[46].mxu1  ;;  %4895 = vmatprep.mubr.bf16.mxu0 %v4428_v16 }
 0x580   : > { %v4241_v41 = vpack.c.bf16 %v4008_v8, %v4004_v62  ;;  %v4010_v63 = vpop.f32.mrb[47].mxu1  ;;  %4896 = vmatmul.mubr.bf16.gmra.mrb[244].mxu0 %v4427_v4 }
 0x581   : > { %v4242_v39 = vpack.c.bf16 %v4010_v63, %v4006_v0 }
 0x582   : > { %v4349_v58 = vadd.bf16 %v9107_v49, %v4241_v41 }
 0x583   : > { %v4350_v37 = vadd.bf16 %v9110_v27, %v4242_v39 }
 0x584   : > { %v4429_v35 = vmax.bf16 %v9969_v5, %v4349_v58 }
 0x585   : > { %v4014_v55 = vpop.f32.mrb[48].mxu1  ;;  %v4430_v40 = vmax.bf16 %v9969_v5, %v4350_v37 }
 0x586   : > { %v4016_v47 = vpop.f32.mrb[49].mxu1 }
 0x587   : > { %v4018_v56 = vpop.f32.mrb[50].mxu1  ;;  %4905 = vmatprep.mubr.bf16.mxu0 %v4430_v40 }
 0x588   : > { %v4243_v32 = vpack.c.bf16 %v4018_v56, %v4014_v55  ;;  %v4020_v13 = vpop.f32.mrb[51].mxu1  ;;  %4906 = vmatmul.mubr.bf16.gmra.mrb[248].mxu0 %v4429_v35  ;;  %v4501_v56 = vld [vmem:[%s9869_s12] sm:$0x3] }
 0x589   : > { %v4244_v34 = vpack.c.bf16 %v4020_v13, %v4016_v47 }
 0x58a   : > { %v4351_v33 = vadd.bf16 %v9107_v49, %v4243_v32 }
 0x58b   : > { %v4352_v17 = vadd.bf16 %v9110_v27, %v4244_v34 }
 0x58c   : > { %v4431_v46 = vmax.bf16 %v9969_v5, %v4351_v33 }
 0x58d   : > { %v4024_v2 = vpop.f32.mrb[52].mxu1  ;;  %v4432_v51 = vmax.bf16 %v9969_v5, %v4352_v17 }
 0x58e   : > { %v4026_v26 = vpop.f32.mrb[53].mxu1 }
 0x58f   : > { %v4028_v1 = vpop.f32.mrb[54].mxu1  ;;  %4915 = vmatprep.mubr.bf16.mxu0 %v4432_v51 }
 0x590   : > { %v4245_v9 = vpack.c.bf16 %v4028_v1, %v4024_v2  ;;  %v4030_v45 = vpop.f32.mrb[55].mxu1  ;;  %4916 = vmatmul.mubr.bf16.gmra.mrb[252].mxu0 %v4431_v46  ;;  %v9369_v2 = vrot.slane %v4501_v56, %v10002_v25  ;;  %v7048_v46 = vld [vmem:[%s9870_s13 + $0x50] ss:$8 sps:$4 sm:$0xff]   ;;  %v7050_v1 = vld [vmem:[%s9870_s13 + $0x54] ss:$8 sps:$4 sm:$0xff]  }
 0x591   : > { %v4246_v53 = vpack.c.bf16 %v4030_v45, %v4026_v26  ;;  %5649 = vmatprep.subr.bf16.mxu1 %v7050_v1 }
 0x592   : > { %v4353_v52 = vadd.bf16 %v9107_v49, %v4245_v9  ;;  %v10033_v9 = vld [vmem:[#allocation11_spill] sm:$0xff]  ;;  %5650 = vmatpush1.bf16.msra.mxu1 %v7048_v46 }
 0x593   : > { %v4354_v59 = vadd.bf16 %v9110_v27, %v4246_v53  ;;  %v9378_v45 = vrot.slane %v4501_v56, %v10033_v9  ;;  %v7053_v46 = vld [vmem:[%s9870_s13 + $0x64] ss:$8 sps:$4 sm:$0xff]  }
 0x594   : > { %v4433_v29 = vmax.bf16 %v9969_v5, %v4353_v52  ;;  %5651 = vmatprep.subr.bf16.mxu1 %v7053_v46 }
 0x595   : > { %v4034_v22 = vpop.f32.mrb[56].mxu1  ;;  %v4434_v60 = vmax.bf16 %v9969_v5, %v4354_v59 }
 0x596   : > { %v4036_v43 = vpop.f32.mrb[57].mxu1 }
 0x597   : > { %v4038_v3 = vpop.f32.mrb[58].mxu1  ;;  %4925 = vmatprep.mubr.bf16.mxu0 %v4434_v60 }
 0x598   : > { %v4247_v21 = vpack.c.bf16 %v4038_v3, %v4034_v22  ;;  %v4040_v10 = vpop.f32.mrb[59].mxu1  ;;  %4926 = vmatmul.mubr.bf16.gmra.mrb[0].mxu0 %v4433_v29 }
 0x599   : > { %v4248_v54 = vpack.c.bf16 %v4040_v10, %v4036_v43 }
 0x59a   : > { %v4355_v44 = vadd.bf16 %v9107_v49, %v4247_v21 }
 0x59b   : > { %v4356_v24 = vadd.bf16 %v9110_v27, %v4248_v54 }
 0x59c   : > { %v4435_v30 = vmax.bf16 %v9969_v5, %v4355_v44 }
 0x59d   : > { %v4044_v38 = vpop.f32.mrb[60].mxu1  ;;  %v4436_v15 = vmax.bf16 %v9969_v5, %v4356_v24 }
 0x59e   : > { %v4046_v23 = vpop.f32.mrb[61].mxu1 }
 0x59f   : > { %v4048_v31 = vpop.f32.mrb[62].mxu1  ;;  %4935 = vmatprep.mubr.bf16.mxu0 %v4436_v15 }
 0x5a0   : > { %v4249_v42 = vpack.c.bf16 %v4048_v31, %v4044_v38  ;;  %v4050_v28 = vpop.f32.mrb[63].mxu1  ;;  %4936 = vmatmul.mubr.bf16.gmra.mrb[4].mxu0 %v4435_v30 }
 0x5a1   : > { %v4250_v7 = vpack.c.bf16 %v4050_v28, %v4046_v23 }
 0x5a2   : > { %v4357_v11 = vadd.bf16 %v9107_v49, %v4249_v42 }
 0x5a3   : > { %v4358_v48 = vadd.bf16 %v9110_v27, %v4250_v7 }
 0x5a4   : > { %v4437_v61 = vmax.bf16 %v9969_v5, %v4357_v11 }
 0x5a5   : > { %v4054_v18 = vpop.f32.mrb[64].mxu1  ;;  %v4438_v57 = vmax.bf16 %v9969_v5, %v4358_v48 }
 0x5a6   : > { %v4056_v6 = vpop.f32.mrb[65].mxu1 }
 0x5a7   : > { %v4058_v19 = vpop.f32.mrb[66].mxu1  ;;  %4945 = vmatprep.mubr.bf16.mxu0 %v4438_v57 }
 0x5a8   : > { %v4251_v12 = vpack.c.bf16 %v4058_v19, %v4054_v18  ;;  %v4060_v62 = vpop.f32.mrb[67].mxu1  ;;  %4946 = vmatmul.mubr.bf16.gmra.mrb[8].mxu0 %v4437_v61 }
 0x5a9   : > { %v4252_v16 = vpack.c.bf16 %v4060_v62, %v4056_v6 }
 0x5aa   : > { %v4359_v0 = vadd.bf16 %v9107_v49, %v4251_v12 }
 0x5ab   : > { %v4360_v4 = vadd.bf16 %v9110_v27, %v4252_v16 }
 0x5ac   : > { %v4439_v63 = vmax.bf16 %v9969_v5, %v4359_v0 }
 0x5ad   : > { %v4064_v8 = vpop.f32.mrb[68].mxu1  ;;  %v4440_v41 = vmax.bf16 %v9969_v5, %v4360_v4 }
 0x5ae   : > { %v4066_v39 = vpop.f32.mrb[69].mxu1 }
 0x5af   : > { %v4068_v58 = vpop.f32.mrb[70].mxu1  ;;  %4955 = vmatprep.mubr.bf16.mxu0 %v4440_v41 }
 0x5b0   : > { %v4253_v37 = vpack.c.bf16 %v4068_v58, %v4064_v8  ;;  %v4070_v55 = vpop.f32.mrb[71].mxu1  ;;  %4956 = vmatmul.mubr.bf16.gmra.mrb[12].mxu0 %v4439_v63 }
 0x5b1   : > { %v4254_v40 = vpack.c.bf16 %v4070_v55, %v4066_v39 }
 0x5b2   : > { %v4361_v47 = vadd.bf16 %v9107_v49, %v4253_v37 }
 0x5b3   : > { %v4362_v35 = vadd.bf16 %v9110_v27, %v4254_v40 }
 0x5b4   : > { %v4441_v34 = vmax.bf16 %v9969_v5, %v4361_v47 }
 0x5b5   : > { %v4074_v32 = vpop.f32.mrb[72].mxu1  ;;  %v4442_v13 = vmax.bf16 %v9969_v5, %v4362_v35 }
 0x5b6   : > { %v4076_v33 = vpop.f32.mrb[73].mxu1 }
 0x5b7   : > { %v4078_v17 = vpop.f32.mrb[74].mxu1  ;;  %4965 = vmatprep.mubr.bf16.mxu0 %v4442_v13 }
 0x5b8   : > { %v4255_v51 = vpack.c.bf16 %v4078_v17, %v4074_v32  ;;  %v4080_v26 = vpop.f32.mrb[75].mxu1  ;;  %4966 = vmatmul.mubr.bf16.gmra.mrb[16].mxu0 %v4441_v34 }
 0x5b9   : > { %v4256_v50 = vpack.c.bf16 %v4080_v26, %v4076_v33  ;;  %v7051_v26 = vld [vmem:[%s9870_s13 + $0x60] ss:$8 sps:$4 sm:$0xff]  }
 0x5ba   : > { %v4363_v14 = vadd.bf16 %v9107_v49, %v4255_v51  ;;  %5652 = vmatpush1.bf16.msra.mxu1 %v7051_v26 }
 0x5bb   : > { %v4364_v53 = vadd.bf16 %v9110_v27, %v4256_v50  ;;  %v4707_v52 = vpop.f32.mrb[168].mxu0 }
 0x5bc   : > { %v4708_v59 = vadd.f32 %v4707_v52, %v9369_v2  ;;  %v4709_v22 = vpop.f32.mrb[169].mxu0  ;;  %v4443_v21 = vmax.bf16 %v9969_v5, %v4363_v14 }
 0x5bd   : > { %v4710_v60 = vadd.f32 %v4709_v22, %v9378_v45  ;;  %v4084_v29 = vpop.f32.mrb[76].mxu1  ;;  %v4711_v43 = vpop.f32.mrb[170].mxu0  ;;  %v4444_v3 = vmax.bf16 %v9969_v5, %v4364_v53 }
 0x5be   : > { %v4712_v10 = vadd.f32 %v4711_v43, %v9369_v2  ;;  %v4086_v54 = vpop.f32.mrb[77].mxu1  ;;  %v4713_v44 = vpop.f32.mrb[171].mxu0  ;;  %v5104_v15 = vmax.f32 %v4708_v59, 0.0 }
 0x5bf   : > { %v4714_v24 = vadd.f32 %v4713_v44, %v9378_v45  ;;  %v4088_v38 = vpop.f32.mrb[78].mxu1  ;;  %4975 = vmatprep.mubr.bf16.mxu0 %v4444_v3  ;;  %v5105_v42 = vmax.f32 %v4710_v60, 0.0 }
 0x5c0   : > { %v5106_v30 = vmax.f32 %v4712_v10, 0.0  ;;  %v4257_v23 = vpack.c.bf16 %v4088_v38, %v4084_v29  ;;  %v4090_v31 = vpop.f32.mrb[79].mxu1  ;;  %4976 = vmatmul.mubr.bf16.gmra.mrb[20].mxu0 %v4443_v21 }
 0x5c1   : > { %v5107_v28 = vmax.f32 %v4714_v24, 0.0  ;;  %v4258_v7 = vpack.c.bf16 %v4090_v31, %v4086_v54 }
 0x5c2   : > { %v5262_v11 = vadd.f32 %v5106_v30, %v5104_v15  ;;  %v4365_v48 = vadd.bf16 %v9107_v49, %v4257_v23 }
 0x5c3   : > { %v5348_v36 = vadd.f32 %v5107_v28, %v5105_v42  ;;  %v4366_v20 = vadd.bf16 %v9110_v27, %v4258_v7  ;;  %v4717_v18 = vpop.f32.mrb[172].mxu0 }
 0x5c4   : > { %v4718_v57 = vadd.f32 %v4717_v18, %v9369_v2  ;;  %v4719_v61 = vpop.f32.mrb[173].mxu0  ;;  %v4445_v16 = vmax.bf16 %v9969_v5, %v4365_v48 }
 0x5c5   : > { %v4720_v6 = vadd.f32 %v4719_v61, %v9378_v45  ;;  %v4094_v19 = vpop.f32.mrb[80].mxu1  ;;  %v4721_v12 = vpop.f32.mrb[174].mxu0  ;;  %v4446_v62 = vmax.bf16 %v9969_v5, %v4366_v20 }
 0x5c6   : > { %v5108_v0 = vmax.f32 %v4718_v57, 0.0  ;;  %v4722_v4 = vadd.f32 %v4721_v12, %v9369_v2  ;;  %v4096_v8 = vpop.f32.mrb[81].mxu1  ;;  %v4723_v41 = vpop.f32.mrb[175].mxu0 }
 0x5c7   : > { %v5109_v63 = vmax.f32 %v4720_v6, 0.0  ;;  %v4724_v39 = vadd.f32 %v4723_v41, %v9378_v45  ;;  %v4098_v58 = vpop.f32.mrb[82].mxu1  ;;  %4985 = vmatprep.mubr.bf16.mxu0 %v4446_v62 }
 0x5c8   : > { %v5263_v37 = vadd.f32 %v5262_v11, %v5108_v0  ;;  %v5110_v55 = vmax.f32 %v4722_v4, 0.0  ;;  %v4259_v40 = vpack.c.bf16 %v4098_v58, %v4094_v19  ;;  %v4100_v47 = vpop.f32.mrb[83].mxu1  ;;  %4986 = vmatmul.mubr.bf16.gmra.mrb[24].mxu0 %v4445_v16 }
 0x5c9   : > { %v5349_v35 = vadd.f32 %v5348_v36, %v5109_v63  ;;  %v5111_v56 = vmax.f32 %v4724_v39, 0.0  ;;  %v4260_v32 = vpack.c.bf16 %v4100_v47, %v4096_v8 }
 0x5ca   : > { %v5264_v13 = vadd.f32 %v5263_v37, %v5110_v55  ;;  %v4367_v34 = vadd.bf16 %v9107_v49, %v4259_v40 }
 0x5cb   : > { %v5350_v33 = vadd.f32 %v5349_v35, %v5111_v56  ;;  %v4368_v17 = vadd.bf16 %v9110_v27, %v4260_v32  ;;  %v4727_v51 = vpop.f32.mrb[176].mxu0 }
 0x5cc   : > { %v4728_v1 = vadd.f32 %v4727_v51, %v9369_v2  ;;  %v4729_v50 = vpop.f32.mrb[177].mxu0  ;;  %v4447_v22 = vmax.bf16 %v9969_v5, %v4367_v34 }
 0x5cd   : > { %v4730_v14 = vadd.f32 %v4729_v50, %v9378_v45  ;;  %v4104_v53 = vpop.f32.mrb[84].mxu1  ;;  %v4731_v52 = vpop.f32.mrb[178].mxu0  ;;  %v4448_v59 = vmax.bf16 %v9969_v5, %v4368_v17 }
 0x5ce   : > { %v5112_v60 = vmax.f32 %v4728_v1, 0.0  ;;  %v4732_v29 = vadd.f32 %v4731_v52, %v9369_v2  ;;  %v4106_v43 = vpop.f32.mrb[85].mxu1  ;;  %v4733_v3 = vpop.f32.mrb[179].mxu0 }
 0x5cf   : > { %v5113_v21 = vmax.f32 %v4730_v14, 0.0  ;;  %v4734_v10 = vadd.f32 %v4733_v3, %v9378_v45  ;;  %v4108_v54 = vpop.f32.mrb[86].mxu1  ;;  %4995 = vmatprep.mubr.bf16.mxu0 %v4448_v59 }
 0x5d0   : > { %v5265_v44 = vadd.f32 %v5264_v13, %v5112_v60  ;;  %v5114_v24 = vmax.f32 %v4732_v29, 0.0  ;;  %v4261_v38 = vpack.c.bf16 %v4108_v54, %v4104_v53  ;;  %v4110_v15 = vpop.f32.mrb[87].mxu1  ;;  %4996 = vmatmul.mubr.bf16.gmra.mrb[28].mxu0 %v4447_v22  ;;  %v7054_v54 = vld [vmem:[%s9870_s13 + $0x70] ss:$8 sps:$4 sm:$0xff]  }
 0x5d1   : > { %v5351_v30 = vadd.f32 %v5350_v33, %v5113_v21  ;;  %v5115_v23 = vmax.f32 %v4734_v10, 0.0  ;;  %v4262_v31 = vpack.c.bf16 %v4110_v15, %v4106_v43 }
 0x5d2   : > { %v5266_v42 = vadd.f32 %v5265_v44, %v5114_v24  ;;  %v4369_v28 = vadd.bf16 %v9107_v49, %v4261_v38  ;;  %v7056_v44 = vld [vmem:[%s9870_s13 + $0x74] ss:$8 sps:$4 sm:$0xff]  }
 0x5d3   : > { %v5352_v7 = vadd.f32 %v5351_v30, %v5115_v23  ;;  %v4370_v11 = vadd.bf16 %v9110_v27, %v4262_v31  ;;  %v4737_v48 = vpop.f32.mrb[180].mxu0  ;;  %5653 = vmatprep.subr.bf16.mxu1 %v7056_v44 }
 0x5d4   : > { %v4738_v36 = vadd.f32 %v4737_v48, %v9369_v2  ;;  %v4739_v20 = vpop.f32.mrb[181].mxu0  ;;  %v4449_v19 = vmax.bf16 %v9969_v5, %v4369_v28  ;;  %5654 = vmatpush1.bf16.msra.mxu1 %v7054_v54 }
 0x5d5   : > { %v4740_v18 = vadd.f32 %v4739_v20, %v9378_v45  ;;  %v4114_v57 = vpop.f32.mrb[88].mxu1  ;;  %v4741_v61 = vpop.f32.mrb[182].mxu0  ;;  %v4450_v6 = vmax.bf16 %v9969_v5, %v4370_v11 }
 0x5d6   : > { %v5116_v12 = vmax.f32 %v4738_v36, 0.0  ;;  %v4742_v62 = vadd.f32 %v4741_v61, %v9369_v2  ;;  %v4116_v16 = vpop.f32.mrb[89].mxu1  ;;  %v4743_v0 = vpop.f32.mrb[183].mxu0 }
 0x5d7   : > { %v5117_v4 = vmax.f32 %v4740_v18, 0.0  ;;  %v4744_v8 = vadd.f32 %v4743_v0, %v9378_v45  ;;  %v4118_v41 = vpop.f32.mrb[90].mxu1  ;;  %5005 = vmatprep.mubr.bf16.mxu0 %v4450_v6 }
 0x5d8   : > { %v5267_v63 = vadd.f32 %v5266_v42, %v5116_v12  ;;  %v5118_v39 = vmax.f32 %v4742_v62, 0.0  ;;  %v4263_v58 = vpack.c.bf16 %v4118_v41, %v4114_v57  ;;  %v4120_v37 = vpop.f32.mrb[91].mxu1  ;;  %5006 = vmatmul.mubr.bf16.gmra.mrb[32].mxu0 %v4449_v19 }
 0x5d9   : > { %v5353_v55 = vadd.f32 %v5352_v7, %v5117_v4  ;;  %v5119_v40 = vmax.f32 %v4744_v8, 0.0  ;;  %v4264_v47 = vpack.c.bf16 %v4120_v37, %v4116_v16 }
 0x5da   : > { %v5268_v35 = vadd.f32 %v5267_v63, %v5118_v39  ;;  %v4371_v56 = vadd.bf16 %v9107_v49, %v4263_v58 }
 0x5db   : > { %v5354_v32 = vadd.f32 %v5353_v55, %v5119_v40  ;;  %v4372_v13 = vadd.bf16 %v9110_v27, %v4264_v47  ;;  %v4747_v34 = vpop.f32.mrb[184].mxu0 }
 0x5dc   : > { %v4748_v33 = vadd.f32 %v4747_v34, %v9369_v2  ;;  %v4749_v17 = vpop.f32.mrb[185].mxu0  ;;  %v4451_v50 = vmax.bf16 %v9969_v5, %v4371_v56 }
 0x5dd   : > { %v4750_v51 = vadd.f32 %v4749_v17, %v9378_v45  ;;  %v4124_v26 = vpop.f32.mrb[92].mxu1  ;;  %v4751_v46 = vpop.f32.mrb[186].mxu0  ;;  %v4452_v1 = vmax.bf16 %v9969_v5, %v4372_v13 }
 0x5de   : > { %v5120_v14 = vmax.f32 %v4748_v33, 0.0  ;;  %v4752_v53 = vadd.f32 %v4751_v46, %v9369_v2  ;;  %v4126_v52 = vpop.f32.mrb[93].mxu1  ;;  %v4753_v59 = vpop.f32.mrb[187].mxu0 }
 0x5df   : > { %v5121_v22 = vmax.f32 %v4750_v51, 0.0  ;;  %v4754_v60 = vadd.f32 %v4753_v59, %v9378_v45  ;;  %v4128_v29 = vpop.f32.mrb[94].mxu1  ;;  %5015 = vmatprep.mubr.bf16.mxu0 %v4452_v1 }
 0x5e0   : > { %v5269_v43 = vadd.f32 %v5268_v35, %v5120_v14  ;;  %v5122_v3 = vmax.f32 %v4752_v53, 0.0  ;;  %v4265_v21 = vpack.c.bf16 %v4128_v29, %v4124_v26  ;;  %v4130_v10 = vpop.f32.mrb[95].mxu1  ;;  %5016 = vmatmul.mubr.bf16.gmra.mrb[36].mxu0 %v4451_v50 }
 0x5e1   : > { %v5355_v24 = vadd.f32 %v5354_v32, %v5121_v22  ;;  %v5123_v38 = vmax.f32 %v4754_v60, 0.0  ;;  %v4266_v15 = vpack.c.bf16 %v4130_v10, %v4126_v52 }
 0x5e2   : > { %v5270_v30 = vadd.f32 %v5269_v43, %v5122_v3  ;;  %v4373_v23 = vadd.bf16 %v9107_v49, %v4265_v21 }
 0x5e3   : > { %v5356_v31 = vadd.f32 %v5355_v24, %v5123_v38  ;;  %v4374_v42 = vadd.bf16 %v9110_v27, %v4266_v15  ;;  %v4757_v28 = vpop.f32.mrb[188].mxu0 }
 0x5e4   : > { %v4758_v7 = vadd.f32 %v4757_v28, %v9369_v2  ;;  %v4759_v11 = vpop.f32.mrb[189].mxu0  ;;  %v4453_v57 = vmax.bf16 %v9969_v5, %v4373_v23  ;;  %v7059_v23 = vld [vmem:[%s9870_s13 + $0x84] ss:$8 sps:$4 sm:$0xff]  }
 0x5e5   : > { %v4760_v48 = vadd.f32 %v4759_v11, %v9378_v45  ;;  %v4134_v36 = vpop.f32.mrb[96].mxu1  ;;  %v4761_v20 = vpop.f32.mrb[190].mxu0  ;;  %v4454_v18 = vmax.bf16 %v9969_v5, %v4374_v42  ;;  %5655 = vmatprep.subr.bf16.mxu1 %v7059_v23 }
 0x5e6   : > { %v5124_v61 = vmax.f32 %v4758_v7, 0.0  ;;  %v4762_v6 = vadd.f32 %v4761_v20, %v9369_v2  ;;  %v4136_v19 = vpop.f32.mrb[97].mxu1  ;;  %v4763_v12 = vpop.f32.mrb[191].mxu0 }
 0x5e7   : > { %v5125_v62 = vmax.f32 %v4760_v48, 0.0  ;;  %v4764_v16 = vadd.f32 %v4763_v12, %v9378_v45  ;;  %v4138_v0 = vpop.f32.mrb[98].mxu1  ;;  %5025 = vmatprep.mubr.bf16.mxu0 %v4454_v18 }
 0x5e8   : > { %v5271_v4 = vadd.f32 %v5270_v30, %v5124_v61  ;;  %v5126_v8 = vmax.f32 %v4762_v6, 0.0  ;;  %v4267_v41 = vpack.c.bf16 %v4138_v0, %v4134_v36  ;;  %v4140_v63 = vpop.f32.mrb[99].mxu1  ;;  %5026 = vmatmul.mubr.bf16.gmra.mrb[40].mxu0 %v4453_v57  ;;  %v7057_v30 = vld [vmem:[%s9870_s13 + $0x80] ss:$8 sps:$4 sm:$0xff]  }
 0x5e9   : > { %v5357_v39 = vadd.f32 %v5356_v31, %v5125_v62  ;;  %v5127_v58 = vmax.f32 %v4764_v16, 0.0  ;;  %v4268_v37 = vpack.c.bf16 %v4140_v63, %v4136_v19  ;;  %5656 = vmatpush1.bf16.msra.mxu1 %v7057_v30 }
 0x5ea   : > { %v5272_v55 = vadd.f32 %v5271_v4, %v5126_v8  ;;  %v4375_v40 = vadd.bf16 %v9107_v49, %v4267_v41 }
 0x5eb   : > { %v5358_v47 = vadd.f32 %v5357_v39, %v5127_v58  ;;  %v4376_v35 = vadd.bf16 %v9110_v27, %v4268_v37  ;;  %v4767_v56 = vpop.f32.mrb[192].mxu0 }
 0x5ec   : > { %v4768_v32 = vadd.f32 %v4767_v56, %v9369_v2  ;;  %v4769_v13 = vpop.f32.mrb[193].mxu0  ;;  %v4455_v26 = vmax.bf16 %v9969_v5, %v4375_v40 }
 0x5ed   : > { %v4770_v34 = vadd.f32 %v4769_v13, %v9378_v45  ;;  %v4144_v33 = vpop.f32.mrb[100].mxu1  ;;  %v4771_v17 = vpop.f32.mrb[194].mxu0  ;;  %v4456_v51 = vmax.bf16 %v9969_v5, %v4376_v35 }
 0x5ee   : > { %v5128_v46 = vmax.f32 %v4768_v32, 0.0  ;;  %v4772_v1 = vadd.f32 %v4771_v17, %v9369_v2  ;;  %v4146_v50 = vpop.f32.mrb[101].mxu1  ;;  %v4773_v14 = vpop.f32.mrb[195].mxu0 }
 0x5ef   : > { %v5129_v53 = vmax.f32 %v4770_v34, 0.0  ;;  %v4774_v52 = vadd.f32 %v4773_v14, %v9378_v45  ;;  %v4148_v59 = vpop.f32.mrb[102].mxu1  ;;  %5035 = vmatprep.mubr.bf16.mxu0 %v4456_v51 }
 0x5f0   : > { %v5273_v22 = vadd.f32 %v5272_v55, %v5128_v46  ;;  %v5130_v60 = vmax.f32 %v4772_v1, 0.0  ;;  %v4269_v29 = vpack.c.bf16 %v4148_v59, %v4144_v33  ;;  %v4150_v43 = vpop.f32.mrb[103].mxu1  ;;  %5036 = vmatmul.mubr.bf16.gmra.mrb[44].mxu0 %v4455_v26 }
 0x5f1   : > { %v5359_v3 = vadd.f32 %v5358_v47, %v5129_v53  ;;  %v5131_v21 = vmax.f32 %v4774_v52, 0.0  ;;  %v4270_v10 = vpack.c.bf16 %v4150_v43, %v4146_v50 }
 0x5f2   : > { %v5274_v54 = vadd.f32 %v5273_v22, %v5130_v60  ;;  %v4377_v44 = vadd.bf16 %v9107_v49, %v4269_v29 }
 0x5f3   : > { %v5360_v24 = vadd.f32 %v5359_v3, %v5131_v21  ;;  %v4378_v38 = vadd.bf16 %v9110_v27, %v4270_v10  ;;  %v4777_v15 = vpop.f32.mrb[196].mxu0 }
 0x5f4   : > { %v4778_v31 = vadd.f32 %v4777_v15, %v9369_v2  ;;  %v4779_v42 = vpop.f32.mrb[197].mxu0  ;;  %v4457_v36 = vmax.bf16 %v9969_v5, %v4377_v44 }
 0x5f5   : > { %v4780_v28 = vadd.f32 %v4779_v42, %v9378_v45  ;;  %v4154_v7 = vpop.f32.mrb[104].mxu1  ;;  %v4781_v11 = vpop.f32.mrb[198].mxu0  ;;  %v4458_v48 = vmax.bf16 %v9969_v5, %v4378_v38 }
 0x5f6   : > { %v5132_v20 = vmax.f32 %v4778_v31, 0.0  ;;  %v4782_v18 = vadd.f32 %v4781_v11, %v9369_v2  ;;  %v4156_v57 = vpop.f32.mrb[105].mxu1  ;;  %v4783_v61 = vpop.f32.mrb[199].mxu0 }
 0x5f7   : > { %v5133_v6 = vmax.f32 %v4780_v28, 0.0  ;;  %v4784_v19 = vadd.f32 %v4783_v61, %v9378_v45  ;;  %v4158_v12 = vpop.f32.mrb[106].mxu1  ;;  %5045 = vmatprep.mubr.bf16.mxu0 %v4458_v48 }
 0x5f8   : > { %v5275_v62 = vadd.f32 %v5274_v54, %v5132_v20  ;;  %v5134_v16 = vmax.f32 %v4782_v18, 0.0  ;;  %v4271_v0 = vpack.c.bf16 %v4158_v12, %v4154_v7  ;;  %v4160_v4 = vpop.f32.mrb[107].mxu1  ;;  %5046 = vmatmul.mubr.bf16.gmra.mrb[48].mxu0 %v4457_v36  ;;  %v7060_v12 = vld [vmem:[%s9870_s13 + $0x90] ss:$8 sps:$4 sm:$0xff]  }
 0x5f9   : > { %v5361_v8 = vadd.f32 %v5360_v24, %v5133_v6  ;;  %v5135_v41 = vmax.f32 %v4784_v19, 0.0  ;;  %v4272_v63 = vpack.c.bf16 %v4160_v4, %v4156_v57 }
 0x5fa   : > { %v5276_v39 = vadd.f32 %v5275_v62, %v5134_v16  ;;  %v4379_v58 = vadd.bf16 %v9107_v49, %v4271_v0  ;;  %v7062_v62 = vld [vmem:[%s9870_s13 + $0x94] ss:$8 sps:$4 sm:$0xff]  }
 0x5fb   : > { %v5362_v37 = vadd.f32 %v5361_v8, %v5135_v41  ;;  %v4380_v55 = vadd.bf16 %v9110_v27, %v4272_v63  ;;  %v4787_v40 = vpop.f32.mrb[200].mxu0  ;;  %5657 = vmatprep.subr.bf16.mxu1 %v7062_v62 }
 0x5fc   : > { %v4788_v47 = vadd.f32 %v4787_v40, %v9369_v2  ;;  %v4789_v35 = vpop.f32.mrb[201].mxu0  ;;  %v4459_v33 = vmax.bf16 %v9969_v5, %v4379_v58  ;;  %5658 = vmatpush1.bf16.msra.mxu1 %v7060_v12 }
 0x5fd   : > { %v4790_v56 = vadd.f32 %v4789_v35, %v9378_v45  ;;  %v4164_v32 = vpop.f32.mrb[108].mxu1  ;;  %v4791_v13 = vpop.f32.mrb[202].mxu0  ;;  %v4460_v34 = vmax.bf16 %v9969_v5, %v4380_v55 }
 0x5fe   : > { %v5136_v17 = vmax.f32 %v4788_v47, 0.0  ;;  %v4792_v51 = vadd.f32 %v4791_v13, %v9369_v2  ;;  %v4166_v26 = vpop.f32.mrb[109].mxu1  ;;  %v4793_v46 = vpop.f32.mrb[203].mxu0 }
 0x5ff   : > { %v5137_v1 = vmax.f32 %v4790_v56, 0.0  ;;  %v4794_v50 = vadd.f32 %v4793_v46, %v9378_v45  ;;  %v4168_v14 = vpop.f32.mrb[110].mxu1  ;;  %5055 = vmatprep.mubr.bf16.mxu0 %v4460_v34 }
 0x600   : > { %v5277_v53 = vadd.f32 %v5276_v39, %v5136_v17  ;;  %v5138_v52 = vmax.f32 %v4792_v51, 0.0  ;;  %v4273_v59 = vpack.c.bf16 %v4168_v14, %v4164_v32  ;;  %v4170_v22 = vpop.f32.mrb[111].mxu1  ;;  %5056 = vmatmul.mubr.bf16.gmra.mrb[52].mxu0 %v4459_v33 }
 0x601   : > { %v5363_v60 = vadd.f32 %v5362_v37, %v5137_v1  ;;  %v5139_v29 = vmax.f32 %v4794_v50, 0.0  ;;  %v4274_v43 = vpack.c.bf16 %v4170_v22, %v4166_v26 }
 0x602   : > { %v5278_v3 = vadd.f32 %v5277_v53, %v5138_v52  ;;  %v4381_v21 = vadd.bf16 %v9107_v49, %v4273_v59 }
 0x603   : > { %v5364_v10 = vadd.f32 %v5363_v60, %v5139_v29  ;;  %v4382_v54 = vadd.bf16 %v9110_v27, %v4274_v43  ;;  %v4797_v44 = vpop.f32.mrb[204].mxu0 }
 0x604   : > { %v4798_v24 = vadd.f32 %v4797_v44, %v9369_v2  ;;  %v4799_v38 = vpop.f32.mrb[205].mxu0  ;;  %v4461_v42 = vmax.bf16 %v9969_v5, %v4381_v21 }
 0x605   : > { %v4800_v15 = vadd.f32 %v4799_v38, %v9378_v45  ;;  %v4174_v30 = vpop.f32.mrb[112].mxu1  ;;  %v4801_v23 = vpop.f32.mrb[206].mxu0  ;;  %v4462_v31 = vmax.bf16 %v9969_v5, %v4382_v54 }
 0x606   : > { %v5140_v28 = vmax.f32 %v4798_v24, 0.0  ;;  %v4802_v7 = vadd.f32 %v4801_v23, %v9369_v2  ;;  %v4176_v11 = vpop.f32.mrb[113].mxu1  ;;  %v4803_v48 = vpop.f32.mrb[207].mxu0 }
 0x607   : > { %v5141_v36 = vmax.f32 %v4800_v15, 0.0  ;;  %v4804_v20 = vadd.f32 %v4803_v48, %v9378_v45  ;;  %v4178_v18 = vpop.f32.mrb[114].mxu1  ;;  %5065 = vmatprep.mubr.bf16.mxu0 %v4462_v31 }
 0x608   : > { %v5279_v57 = vadd.f32 %v5278_v3, %v5140_v28  ;;  %v5142_v61 = vmax.f32 %v4802_v7, 0.0  ;;  %v4275_v6 = vpack.c.bf16 %v4178_v18, %v4174_v30  ;;  %v4180_v19 = vpop.f32.mrb[115].mxu1  ;;  %5066 = vmatmul.mubr.bf16.gmra.mrb[56].mxu0 %v4461_v42 }
 0x609   : > { %v5365_v16 = vadd.f32 %v5364_v10, %v5141_v36  ;;  %v5143_v0 = vmax.f32 %v4804_v20, 0.0  ;;  %v4276_v4 = vpack.c.bf16 %v4180_v19, %v4176_v11 }
 0x60a   : > { %v5280_v8 = vadd.f32 %v5279_v57, %v5142_v61  ;;  %v4383_v41 = vadd.bf16 %v9107_v49, %v4275_v6 }
 0x60b   : > { %v5366_v63 = vadd.f32 %v5365_v16, %v5143_v0  ;;  %v4384_v39 = vadd.bf16 %v9110_v27, %v4276_v4  ;;  %v4807_v58 = vpop.f32.mrb[208].mxu0 }
 0x60c   : > { %v4808_v37 = vadd.f32 %v4807_v58, %v9369_v2  ;;  %v4809_v55 = vpop.f32.mrb[209].mxu0  ;;  %v4463_v32 = vmax.bf16 %v9969_v5, %v4383_v41  ;;  %v7063_v41 = vld [vmem:[%s9870_s13 + $0xa0] ss:$8 sps:$4 sm:$0xff]  }
 0x60d   : > { %v4810_v40 = vadd.f32 %v4809_v55, %v9378_v45  ;;  %v4184_v47 = vpop.f32.mrb[116].mxu1  ;;  %v4811_v35 = vpop.f32.mrb[210].mxu0  ;;  %v4464_v56 = vmax.bf16 %v9969_v5, %v4384_v39 }
 0x60e   : > { %v5144_v13 = vmax.f32 %v4808_v37, 0.0  ;;  %v4812_v34 = vadd.f32 %v4811_v35, %v9369_v2  ;;  %v4186_v33 = vpop.f32.mrb[117].mxu1  ;;  %v4813_v17 = vpop.f32.mrb[211].mxu0 }
 0x60f   : > { %v5145_v51 = vmax.f32 %v4810_v40, 0.0  ;;  %v4814_v26 = vadd.f32 %v4813_v17, %v9378_v45  ;;  %v4188_v46 = vpop.f32.mrb[118].mxu1  ;;  %5075 = vmatprep.mubr.bf16.mxu0 %v4464_v56 }
 0x610   : > { %v5281_v1 = vadd.f32 %v5280_v8, %v5144_v13  ;;  %v5146_v50 = vmax.f32 %v4812_v34, 0.0  ;;  %v4277_v14 = vpack.c.bf16 %v4188_v46, %v4184_v47  ;;  %v4190_v53 = vpop.f32.mrb[119].mxu1  ;;  %5076 = vmatmul.mubr.bf16.gmra.mrb[60].mxu0 %v4463_v32 }
 0x611   : > { %v5367_v52 = vadd.f32 %v5366_v63, %v5145_v51  ;;  %v5147_v59 = vmax.f32 %v4814_v26, 0.0  ;;  %v4278_v22 = vpack.c.bf16 %v4190_v53, %v4186_v33  ;;  %v7065_v63 = vld [vmem:[%s9870_s13 + $0xa4] ss:$8 sps:$4 sm:$0xff]  }
 0x612   : > { %v5282_v60 = vadd.f32 %v5281_v1, %v5146_v50  ;;  %v4385_v29 = vadd.bf16 %v9107_v49, %v4277_v14  ;;  %5659 = vmatprep.subr.bf16.mxu1 %v7065_v63 }
 0x613   : > { %v5368_v43 = vadd.f32 %v5367_v52, %v5147_v59  ;;  %v4386_v3 = vadd.bf16 %v9110_v27, %v4278_v22  ;;  %v4817_v21 = vpop.f32.mrb[212].mxu0  ;;  %5660 = vmatpush1.bf16.msra.mxu1 %v7063_v41 }
 0x614   : > { %v4818_v10 = vadd.f32 %v4817_v21, %v9369_v2  ;;  %v4819_v54 = vpop.f32.mrb[213].mxu0  ;;  %v4465_v30 = vmax.bf16 %v9969_v5, %v4385_v29 }
 0x615   : > { %v4820_v44 = vadd.f32 %v4819_v54, %v9378_v45  ;;  %v4194_v24 = vpop.f32.mrb[120].mxu1  ;;  %v4821_v38 = vpop.f32.mrb[214].mxu0  ;;  %v4466_v15 = vmax.bf16 %v9969_v5, %v4386_v3 }
 0x616   : > { %v5148_v23 = vmax.f32 %v4818_v10, 0.0  ;;  %v4279_v31 = vpack.c.bf16 %v4194_v24, %v4194_v24  ;;  %v4822_v42 = vadd.f32 %v4821_v38, %v9369_v2  ;;  %v4196_v28 = vpop.f32.mrb[121].mxu1  ;;  %v4823_v7 = vpop.f32.mrb[215].mxu0 }
 0x617   : > { %v5149_v11 = vmax.f32 %v4820_v44, 0.0  ;;  %v4280_v48 = vpack.c.bf16 %v4196_v28, %v4196_v28  ;;  %v4824_v36 = vadd.f32 %v4823_v7, %v9378_v45  ;;  %v4198_v20 = vpop.f32.mrb[122].mxu1  ;;  %5085 = vmatprep.mubr.bf16.mxu0 %v4466_v15 }
 0x618   : > { %v5283_v18 = vadd.f32 %v5282_v60, %v5148_v23  ;;  %v5150_v57 = vmax.f32 %v4822_v42, 0.0  ;;  %v4199_v61 = vpop.f32.mrb[123].mxu1  ;;  %5086 = vmatmul.mubr.bf16.gmra.mrb[64].mxu0 %v4465_v30  ;;  %v4387_v62 = vadd.bf16 %v9107_v49, %v4279_v31 }
 0x619   : > { %v5369_v6 = vadd.f32 %v5368_v43, %v5149_v11  ;;  %v4388_v19 = vadd.bf16 %v9110_v27, %v4280_v48  ;;  %v5151_v12 = vmax.f32 %v4824_v36, 0.0  ;;  %v7066_v48 = vld [vmem:[%s9870_s13 + $0xb0] ss:$8 sps:$4 sm:$0xff]   ;;  %v7068_v36 = vld [vmem:[%s9870_s13 + $0xb4] ss:$8 sps:$4 sm:$0xff]  }
 0x61a   : > { %v5284_v16 = vadd.f32 %v5283_v18, %v5150_v57  ;;  %v4467_v49 = vmax.bf16 %v9969_v5, %v4387_v62  ;;  %5661 = vmatprep.subr.bf16.mxu1 %v7068_v36 }
 0x61b   : > { %v5370_v0 = vadd.f32 %v5369_v6, %v5151_v12  ;;  %v4827_v4 = vpop.f32.mrb[216].mxu0  ;;  %v4468_v8 = vmax.bf16 %v9969_v5, %v4388_v19  ;;  %5662 = vmatpush1.bf16.msra.mxu1 %v7066_v48 }
 0x61c   : > { %v4828_v39 = vadd.f32 %v4827_v4, %v9369_v2  ;;  %v4829_v58 = vpop.f32.mrb[217].mxu0 }
 0x61d   : > { %v4830_v27 = vadd.f32 %v4829_v58, %v9378_v45  ;;  %v4831_v37 = vpop.f32.mrb[218].mxu0  ;;  %5095 = vmatprep.mubr.bf16.mxu0 %v4468_v8 }
 0x61e   : > { %v5152_v55 = vmax.f32 %v4828_v39, 0.0  ;;  %v4832_v40 = vadd.f32 %v4831_v37, %v9369_v2  ;;  %v4833_v47 = vpop.f32.mrb[219].mxu0 }
 0x61f   : > { %v5153_v35 = vmax.f32 %v4830_v27, 0.0  ;;  %v4834_v56 = vadd.f32 %v4833_v47, %v9378_v45 }
 0x620   : > { %v5285_v32 = vadd.f32 %v5284_v16, %v5152_v55  ;;  %v5154_v13 = vmax.f32 %v4832_v40, 0.0  ;;  %5096 = vmatmul.mubr.bf16.gmra.mrb[68].mxu0 %v4467_v49 }
 0x621   : > { %v5371_v34 = vadd.f32 %v5370_v0, %v5153_v35  ;;  %v5155_v33 = vmax.f32 %v4834_v56, 0.0 }
 0x622   : > { %v5286_v17 = vadd.f32 %v5285_v32, %v5154_v13 }
 0x623   : > { %v5372_v51 = vadd.f32 %v5371_v34, %v5155_v33  ;;  %v4837_v26 = vpop.f32.mrb[220].mxu0 }
 0x624   : > { %v4838_v46 = vadd.f32 %v4837_v26, %v9369_v2  ;;  %v4839_v1 = vpop.f32.mrb[221].mxu0 }
 0x625   : > { %v4840_v5 = vadd.f32 %v4839_v1, %v9378_v45  ;;  %v4841_v50 = vpop.f32.mrb[222].mxu0 }
 0x626   : > { %v5156_v14 = vmax.f32 %v4838_v46, 0.0  ;;  %v4842_v53 = vadd.f32 %v4841_v50, %v9369_v2  ;;  %v4843_v52 = vpop.f32.mrb[223].mxu0 }
 0x627   : > { %v5157_v59 = vmax.f32 %v4840_v5, 0.0  ;;  %v4844_v22 = vadd.f32 %v4843_v52, %v9378_v45  ;;  %v7069_v52 = vld [vmem:[%s9870_s13 + $0xc0] ss:$8 sps:$4 sm:$0xff]  }
 0x628   : > { %v5287_v60 = vadd.f32 %v5286_v17, %v5156_v14  ;;  %v5158_v29 = vmax.f32 %v4842_v53, 0.0 }
 0x629   : > { %v5373_v43 = vadd.f32 %v5372_v51, %v5157_v59  ;;  %v5159_v3 = vmax.f32 %v4844_v22, 0.0  ;;  %v7071_v59 = vld [vmem:[%s9870_s13 + $0xc4] ss:$8 sps:$4 sm:$0xff]  }
 0x62a   : > { %v5288_v21 = vadd.f32 %v5287_v60, %v5158_v29  ;;  %5663 = vmatprep.subr.bf16.mxu1 %v7071_v59 }
 0x62b   : > { %v5374_v10 = vadd.f32 %v5373_v43, %v5159_v3  ;;  %v4847_v54 = vpop.f32.mrb[224].mxu0  ;;  %5664 = vmatpush1.bf16.msra.mxu1 %v7069_v52 }
 0x62c   : > { %v4848_v44 = vadd.f32 %v4847_v54, %v9369_v2  ;;  %v4849_v24 = vpop.f32.mrb[225].mxu0 }
 0x62d   : > { %v4850_v38 = vadd.f32 %v4849_v24, %v9378_v45  ;;  %v4851_v15 = vpop.f32.mrb[226].mxu0 }
 0x62e   : > { %v5160_v30 = vmax.f32 %v4848_v44, 0.0  ;;  %v4852_v23 = vadd.f32 %v4851_v15, %v9369_v2  ;;  %v4853_v31 = vpop.f32.mrb[227].mxu0 }
 0x62f   : > { %v5161_v42 = vmax.f32 %v4850_v38, 0.0  ;;  %v4854_v28 = vadd.f32 %v4853_v31, %v9378_v45 }
 0x630   : > { %v5289_v7 = vadd.f32 %v5288_v21, %v5160_v30  ;;  %v5162_v11 = vmax.f32 %v4852_v23, 0.0 }
 0x631   : > { %v5375_v20 = vadd.f32 %v5374_v10, %v5161_v42  ;;  %v5163_v18 = vmax.f32 %v4854_v28, 0.0 }
 0x632   : > { %v5290_v57 = vadd.f32 %v5289_v7, %v5162_v11 }
 0x633   : > { %v5376_v61 = vadd.f32 %v5375_v20, %v5163_v18  ;;  %v4857_v6 = vpop.f32.mrb[228].mxu0 }
 0x634   : > { %v4858_v19 = vadd.f32 %v4857_v6, %v9369_v2  ;;  %v4859_v12 = vpop.f32.mrb[229].mxu0 }
 0x635   : > { %v4860_v62 = vadd.f32 %v4859_v12, %v9378_v45  ;;  %v4861_v16 = vpop.f32.mrb[230].mxu0 }
 0x636   : > { %v5164_v0 = vmax.f32 %v4858_v19, 0.0  ;;  %v4862_v4 = vadd.f32 %v4861_v16, %v9369_v2  ;;  %v4863_v8 = vpop.f32.mrb[231].mxu0 }
 0x637   : > { %v5165_v41 = vmax.f32 %v4860_v62, 0.0  ;;  %v4864_v63 = vadd.f32 %v4863_v8, %v9378_v45 }
 0x638   : > { %v5291_v39 = vadd.f32 %v5290_v57, %v5164_v0  ;;  %v5166_v58 = vmax.f32 %v4862_v4, 0.0 }
 0x639   : > { %v5377_v27 = vadd.f32 %v5376_v61, %v5165_v41  ;;  %v5167_v37 = vmax.f32 %v4864_v63, 0.0 }
 0x63a   : > { %v5292_v49 = vadd.f32 %v5291_v39, %v5166_v58 }
 0x63b   : > { %v5378_v55 = vadd.f32 %v5377_v27, %v5167_v37  ;;  %v4867_v40 = vpop.f32.mrb[232].mxu0 }
 0x63c   : > { %v4868_v47 = vadd.f32 %v4867_v40, %v9369_v2  ;;  %v4869_v35 = vpop.f32.mrb[233].mxu0 }
 0x63d   : > { %v4870_v56 = vadd.f32 %v4869_v35, %v9378_v45  ;;  %v4871_v32 = vpop.f32.mrb[234].mxu0  ;;  %v7072_v35 = vld [vmem:[%s9870_s13 + $0xd0] ss:$8 sps:$4 sm:$0xff]  }
 0x63e   : > { %v5168_v13 = vmax.f32 %v4868_v47, 0.0  ;;  %v4872_v34 = vadd.f32 %v4871_v32, %v9369_v2  ;;  %v4873_v33 = vpop.f32.mrb[235].mxu0 }
 0x63f   : > { %v5169_v17 = vmax.f32 %v4870_v56, 0.0  ;;  %v4874_v51 = vadd.f32 %v4873_v33, %v9378_v45  ;;  %v7074_v56 = vld [vmem:[%s9870_s13 + $0xd4] ss:$8 sps:$4 sm:$0xff]  }
 0x640   : > { %v5293_v26 = vadd.f32 %v5292_v49, %v5168_v13  ;;  %v5170_v46 = vmax.f32 %v4872_v34, 0.0  ;;  %5665 = vmatprep.subr.bf16.mxu1 %v7074_v56 }
 0x641   : > { %v5379_v1 = vadd.f32 %v5378_v55, %v5169_v17  ;;  %v5171_v5 = vmax.f32 %v4874_v51, 0.0  ;;  %5666 = vmatpush1.bf16.msra.mxu1 %v7072_v35 }
 0x642   : > { %v5294_v50 = vadd.f32 %v5293_v26, %v5170_v46 }
 0x643   : > { %v5380_v14 = vadd.f32 %v5379_v1, %v5171_v5  ;;  %v4877_v53 = vpop.f32.mrb[236].mxu0 }
 0x644   : > { %v4878_v22 = vadd.f32 %v4877_v53, %v9369_v2  ;;  %v4879_v60 = vpop.f32.mrb[237].mxu0 }
 0x645   : > { %v4880_v29 = vadd.f32 %v4879_v60, %v9378_v45  ;;  %v4881_v43 = vpop.f32.mrb[238].mxu0 }
 0x646   : > { %v5172_v3 = vmax.f32 %v4878_v22, 0.0  ;;  %v4882_v21 = vadd.f32 %v4881_v43, %v9369_v2  ;;  %v4883_v10 = vpop.f32.mrb[239].mxu0 }
 0x647   : > { %v5173_v54 = vmax.f32 %v4880_v29, 0.0  ;;  %v4884_v44 = vadd.f32 %v4883_v10, %v9378_v45 }
 0x648   : > { %v5295_v24 = vadd.f32 %v5294_v50, %v5172_v3  ;;  %v5174_v38 = vmax.f32 %v4882_v21, 0.0 }
 0x649   : > { %v5381_v15 = vadd.f32 %v5380_v14, %v5173_v54  ;;  %v5175_v30 = vmax.f32 %v4884_v44, 0.0 }
 0x64a   : > { %v5296_v23 = vadd.f32 %v5295_v24, %v5174_v38 }
 0x64b   : > { %v5382_v31 = vadd.f32 %v5381_v15, %v5175_v30  ;;  %v4887_v42 = vpop.f32.mrb[240].mxu0 }
 0x64c   : > { %v4888_v28 = vadd.f32 %v4887_v42, %v9369_v2  ;;  %v4889_v7 = vpop.f32.mrb[241].mxu0 }
 0x64d   : > { %v4890_v11 = vadd.f32 %v4889_v7, %v9378_v45  ;;  %v4891_v48 = vpop.f32.mrb[242].mxu0 }
 0x64e   : > { %v5176_v36 = vmax.f32 %v4888_v28, 0.0  ;;  %v4892_v20 = vadd.f32 %v4891_v48, %v9369_v2  ;;  %v4893_v18 = vpop.f32.mrb[243].mxu0 }
 0x64f   : > { %v5177_v57 = vmax.f32 %v4890_v11, 0.0  ;;  %v4894_v61 = vadd.f32 %v4893_v18, %v9378_v45  ;;  %v7075_v18 = vld [vmem:[%s9870_s13 + $0xe0] ss:$8 sps:$4 sm:$0xff]  }
 0x650   : > { %v5297_v6 = vadd.f32 %v5296_v23, %v5176_v36  ;;  %v5178_v19 = vmax.f32 %v4892_v20, 0.0 }
 0x651   : > { %v5383_v12 = vadd.f32 %v5382_v31, %v5177_v57  ;;  %v5179_v62 = vmax.f32 %v4894_v61, 0.0  ;;  %v7077_v57 = vld [vmem:[%s9870_s13 + $0xe4] ss:$8 sps:$4 sm:$0xff]  }
 0x652   : > { %v5298_v16 = vadd.f32 %v5297_v6, %v5178_v19  ;;  %5667 = vmatprep.subr.bf16.mxu1 %v7077_v57 }
 0x653   : > { %v5384_v0 = vadd.f32 %v5383_v12, %v5179_v62  ;;  %v4897_v4 = vpop.f32.mrb[244].mxu0  ;;  %5668 = vmatpush1.bf16.msra.mxu1 %v7075_v18 }
 0x654   : > { %v4898_v8 = vadd.f32 %v4897_v4, %v9369_v2  ;;  %v4899_v41 = vpop.f32.mrb[245].mxu0 }
 0x655   : > { %v4900_v63 = vadd.f32 %v4899_v41, %v9378_v45  ;;  %v4901_v39 = vpop.f32.mrb[246].mxu0 }
 0x656   : > { %v5180_v58 = vmax.f32 %v4898_v8, 0.0  ;;  %v4902_v27 = vadd.f32 %v4901_v39, %v9369_v2  ;;  %v4903_v37 = vpop.f32.mrb[247].mxu0 }
 0x657   : > { %v5181_v49 = vmax.f32 %v4900_v63, 0.0  ;;  %v4904_v55 = vadd.f32 %v4903_v37, %v9378_v45 }
 0x658   : > { %v5299_v40 = vadd.f32 %v5298_v16, %v5180_v58  ;;  %v5182_v47 = vmax.f32 %v4902_v27, 0.0 }
 0x659   : > { %v5385_v32 = vadd.f32 %v5384_v0, %v5181_v49  ;;  %v5183_v13 = vmax.f32 %v4904_v55, 0.0 }
 0x65a   : > { %v5300_v34 = vadd.f32 %v5299_v40, %v5182_v47 }
 0x65b   : > { %v5386_v33 = vadd.f32 %v5385_v32, %v5183_v13  ;;  %v4907_v17 = vpop.f32.mrb[248].mxu0 }
 0x65c   : > { %v4908_v51 = vadd.f32 %v4907_v17, %v9369_v2  ;;  %v4909_v26 = vpop.f32.mrb[249].mxu0 }
 0x65d   : > { %v4910_v46 = vadd.f32 %v4909_v26, %v9378_v45  ;;  %v4911_v1 = vpop.f32.mrb[250].mxu0 }
 0x65e   : > { %v5184_v5 = vmax.f32 %v4908_v51, 0.0  ;;  %v4912_v50 = vadd.f32 %v4911_v1, %v9369_v2  ;;  %v4913_v14 = vpop.f32.mrb[251].mxu0 }
 0x65f   : > { %v5185_v53 = vmax.f32 %v4910_v46, 0.0  ;;  %v4914_v52 = vadd.f32 %v4913_v14, %v9378_v45 }
 0x660   : > { %v5301_v59 = vadd.f32 %v5300_v34, %v5184_v5  ;;  %v5186_v22 = vmax.f32 %v4912_v50, 0.0 }
 0x661   : > { %v5387_v60 = vadd.f32 %v5386_v33, %v5185_v53  ;;  %v5187_v29 = vmax.f32 %v4914_v52, 0.0 }
 0x662   : > { %v5302_v43 = vadd.f32 %v5301_v59, %v5186_v22 }
 0x663   : > { %v5388_v3 = vadd.f32 %v5387_v60, %v5187_v29  ;;  %v4917_v21 = vpop.f32.mrb[252].mxu0 }
 0x664   : > { %v4918_v10 = vadd.f32 %v4917_v21, %v9369_v2  ;;  %v4919_v54 = vpop.f32.mrb[253].mxu0 }
 0x665   : > { %v4920_v44 = vadd.f32 %v4919_v54, %v9378_v45  ;;  %v4921_v24 = vpop.f32.mrb[254].mxu0 }
 0x666   : > { %v5188_v38 = vmax.f32 %v4918_v10, 0.0  ;;  %v4922_v15 = vadd.f32 %v4921_v24, %v9369_v2  ;;  %v4923_v30 = vpop.f32.mrb[255].mxu0 }
 0x667   : > { %v5189_v23 = vmax.f32 %v4920_v44, 0.0  ;;  %v4924_v31 = vadd.f32 %v4923_v30, %v9378_v45 }
 0x668   : > { %v5303_v42 = vadd.f32 %v5302_v43, %v5188_v38  ;;  %v5190_v28 = vmax.f32 %v4922_v15, 0.0 }
 0x669   : > { %v5389_v7 = vadd.f32 %v5388_v3, %v5189_v23  ;;  %v5191_v11 = vmax.f32 %v4924_v31, 0.0 }
 0x66a   : > { %v5304_v48 = vadd.f32 %v5303_v42, %v5190_v28  ;;  %v7080_v28 = vld [vmem:[%s9870_s13 + $0xf4] ss:$8 sps:$4 sm:$0xff]  }
 0x66b   : > { %v5390_v36 = vadd.f32 %v5389_v7, %v5191_v11  ;;  %v4927_v20 = vpop.f32.mrb[0].mxu0  ;;  %5669 = vmatprep.subr.bf16.mxu1 %v7080_v28 }
 0x66c   : > { %v4928_v61 = vadd.f32 %v4927_v20, %v9369_v2  ;;  %v4929_v6 = vpop.f32.mrb[1].mxu0 }
 0x66d   : > { %v4930_v19 = vadd.f32 %v4929_v6, %v9378_v45  ;;  %v4931_v12 = vpop.f32.mrb[2].mxu0 }
 0x66e   : > { %v5192_v62 = vmax.f32 %v4928_v61, 0.0  ;;  %v4932_v16 = vadd.f32 %v4931_v12, %v9369_v2  ;;  %v4933_v0 = vpop.f32.mrb[3].mxu0 }
 0x66f   : > { %v5193_v4 = vmax.f32 %v4930_v19, 0.0  ;;  %v4934_v8 = vadd.f32 %v4933_v0, %v9378_v45  ;;  %v7083_v0 = vld [vmem:[%s9872_s15 + $0x4] ss:$8 sps:$4 sm:$0xff]  }
 0x670   : > { %v5305_v41 = vadd.f32 %v5304_v48, %v5192_v62  ;;  %v5194_v63 = vmax.f32 %v4932_v16, 0.0 }
 0x671   : > { %v5391_v39 = vadd.f32 %v5390_v36, %v5193_v4  ;;  %v5195_v58 = vmax.f32 %v4934_v8, 0.0  ;;  %v7078_v36 = vld [vmem:[%s9870_s13 + $0xf0] ss:$8 sps:$4 sm:$0xff]  }
 0x672   : > { %v5306_v27 = vadd.f32 %v5305_v41, %v5194_v63  ;;  %5670 = vmatpush1.bf16.msra.mxu1 %v7078_v36 }
 0x673   : > { %v5392_v37 = vadd.f32 %v5391_v39, %v5195_v58  ;;  %v4937_v49 = vpop.f32.mrb[4].mxu0  ;;  %5888 = vmatprep.subr.bf16.mxu1 %v7083_v0 }
 0x674   : > { %v4938_v55 = vadd.f32 %v4937_v49, %v9369_v2  ;;  %v4939_v40 = vpop.f32.mrb[5].mxu0 }
 0x675   : > { %v4940_v47 = vadd.f32 %v4939_v40, %v9378_v45  ;;  %v4941_v35 = vpop.f32.mrb[6].mxu0 }
 0x676   : > { %v5196_v56 = vmax.f32 %v4938_v55, 0.0  ;;  %v4942_v32 = vadd.f32 %v4941_v35, %v9369_v2  ;;  %v4943_v13 = vpop.f32.mrb[7].mxu0 }
 0x677   : > { %v5197_v34 = vmax.f32 %v4940_v47, 0.0  ;;  %v4944_v33 = vadd.f32 %v4943_v13, %v9378_v45 }
 0x678   : > { %v5307_v17 = vadd.f32 %v5306_v27, %v5196_v56  ;;  %v5198_v51 = vmax.f32 %v4942_v32, 0.0 }
 0x679   : > { %v5393_v26 = vadd.f32 %v5392_v37, %v5197_v34  ;;  %v5199_v46 = vmax.f32 %v4944_v33, 0.0 }
 0x67a   : > { %v5308_v1 = vadd.f32 %v5307_v17, %v5198_v51 }
 0x67b   : > { %v5394_v5 = vadd.f32 %v5393_v26, %v5199_v46  ;;  %v4947_v50 = vpop.f32.mrb[8].mxu0 }
 0x67c   : > { %v4948_v14 = vadd.f32 %v4947_v50, %v9369_v2  ;;  %v4949_v53 = vpop.f32.mrb[9].mxu0 }
 0x67d   : > { %v4950_v52 = vadd.f32 %v4949_v53, %v9378_v45  ;;  %v4951_v59 = vpop.f32.mrb[10].mxu0 }
 0x67e   : > { %v5200_v22 = vmax.f32 %v4948_v14, 0.0  ;;  %v4952_v60 = vadd.f32 %v4951_v59, %v9369_v2  ;;  %v4953_v29 = vpop.f32.mrb[11].mxu0 }
 0x67f   : > { %v5201_v43 = vmax.f32 %v4950_v52, 0.0  ;;  %v4954_v3 = vadd.f32 %v4953_v29, %v9378_v45 }
 0x680   : > { %v5309_v21 = vadd.f32 %v5308_v1, %v5200_v22  ;;  %v5202_v10 = vmax.f32 %v4952_v60, 0.0 }
 0x681   : > { %v5395_v54 = vadd.f32 %v5394_v5, %v5201_v43  ;;  %v5203_v44 = vmax.f32 %v4954_v3, 0.0 }
 0x682   : > { %v5310_v24 = vadd.f32 %v5309_v21, %v5202_v10 }
 0x683   : > { %v5396_v38 = vadd.f32 %v5395_v54, %v5203_v44  ;;  %v4957_v15 = vpop.f32.mrb[12].mxu0 }
 0x684   : > { %v4958_v30 = vadd.f32 %v4957_v15, %v9369_v2  ;;  %v4959_v23 = vpop.f32.mrb[13].mxu0 }
 0x685   : > { %v4960_v31 = vadd.f32 %v4959_v23, %v9378_v45  ;;  %v4961_v42 = vpop.f32.mrb[14].mxu0 }
 0x686   : > { %v5204_v7 = vmax.f32 %v4958_v30, 0.0  ;;  %v4962_v11 = vadd.f32 %v4961_v42, %v9369_v2  ;;  %v4963_v48 = vpop.f32.mrb[15].mxu0 }
 0x687   : > { %v5205_v20 = vmax.f32 %v4960_v31, 0.0  ;;  %v4964_v18 = vadd.f32 %v4963_v48, %v9378_v45 }
 0x688   : > { %v5311_v57 = vadd.f32 %v5310_v24, %v5204_v7  ;;  %v5206_v61 = vmax.f32 %v4962_v11, 0.0 }
 0x689   : > { %v5397_v6 = vadd.f32 %v5396_v38, %v5205_v20  ;;  %v5207_v19 = vmax.f32 %v4964_v18, 0.0 }
 0x68a   : > { %v5312_v12 = vadd.f32 %v5311_v57, %v5206_v61 }
 0x68b   : > { %v5398_v62 = vadd.f32 %v5397_v6, %v5207_v19  ;;  %v4967_v16 = vpop.f32.mrb[16].mxu0 }
 0x68c   : > { %v4968_v4 = vadd.f32 %v4967_v16, %v9369_v2  ;;  %v4969_v8 = vpop.f32.mrb[17].mxu0 }
 0x68d   : > { %v4970_v41 = vadd.f32 %v4969_v8, %v9378_v45  ;;  %v4971_v63 = vpop.f32.mrb[18].mxu0 }
 0x68e   : > { %v5208_v39 = vmax.f32 %v4968_v4, 0.0  ;;  %v4972_v58 = vadd.f32 %v4971_v63, %v9369_v2  ;;  %v4973_v27 = vpop.f32.mrb[19].mxu0 }
 0x68f   : > { %v5209_v37 = vmax.f32 %v4970_v41, 0.0  ;;  %v4974_v49 = vadd.f32 %v4973_v27, %v9378_v45 }
 0x690   : > { %v5313_v55 = vadd.f32 %v5312_v12, %v5208_v39  ;;  %v5210_v40 = vmax.f32 %v4972_v58, 0.0 }
 0x691   : > { %v5399_v47 = vadd.f32 %v5398_v62, %v5209_v37  ;;  %v5211_v35 = vmax.f32 %v4974_v49, 0.0 }
 0x692   : > { %v5314_v56 = vadd.f32 %v5313_v55, %v5210_v40 }
 0x693   : > { %v5400_v32 = vadd.f32 %v5399_v47, %v5211_v35  ;;  %v4977_v13 = vpop.f32.mrb[20].mxu0 }
 0x694   : > { %v4978_v34 = vadd.f32 %v4977_v13, %v9369_v2  ;;  %v4979_v33 = vpop.f32.mrb[21].mxu0 }
 0x695   : > { %v4980_v17 = vadd.f32 %v4979_v33, %v9378_v45  ;;  %v4981_v51 = vpop.f32.mrb[22].mxu0 }
 0x696   : > { %v5212_v26 = vmax.f32 %v4978_v34, 0.0  ;;  %v4982_v46 = vadd.f32 %v4981_v51, %v9369_v2  ;;  %v4983_v1 = vpop.f32.mrb[23].mxu0 }
 0x697   : > { %v5213_v5 = vmax.f32 %v4980_v17, 0.0  ;;  %v4984_v50 = vadd.f32 %v4983_v1, %v9378_v45 }
 0x698   : > { %v5315_v14 = vadd.f32 %v5314_v56, %v5212_v26  ;;  %v5214_v53 = vmax.f32 %v4982_v46, 0.0 }
 0x699   : > { %v5401_v52 = vadd.f32 %v5400_v32, %v5213_v5  ;;  %v5215_v59 = vmax.f32 %v4984_v50, 0.0 }
 0x69a   : > { %v5316_v22 = vadd.f32 %v5315_v14, %v5214_v53 }
 0x69b   : > { %v5402_v60 = vadd.f32 %v5401_v52, %v5215_v59  ;;  %v4987_v29 = vpop.f32.mrb[24].mxu0 }
 0x69c   : > { %v4988_v43 = vadd.f32 %v4987_v29, %v9369_v2  ;;  %v4989_v3 = vpop.f32.mrb[25].mxu0 }
 0x69d   : > { %v4990_v21 = vadd.f32 %v4989_v3, %v9378_v45  ;;  %v4991_v10 = vpop.f32.mrb[26].mxu0 }
 0x69e   : > { %v5216_v54 = vmax.f32 %v4988_v43, 0.0  ;;  %v4992_v44 = vadd.f32 %v4991_v10, %v9369_v2  ;;  %v4993_v24 = vpop.f32.mrb[27].mxu0 }
 0x69f   : > { %v5217_v38 = vmax.f32 %v4990_v21, 0.0  ;;  %v4994_v15 = vadd.f32 %v4993_v24, %v9378_v45 }
 0x6a0   : > { %v5317_v30 = vadd.f32 %v5316_v22, %v5216_v54  ;;  %v5218_v23 = vmax.f32 %v4992_v44, 0.0 }
 0x6a1   : > { %v5403_v31 = vadd.f32 %v5402_v60, %v5217_v38  ;;  %v5219_v42 = vmax.f32 %v4994_v15, 0.0 }
 0x6a2   : > { %v5318_v28 = vadd.f32 %v5317_v30, %v5218_v23 }
 0x6a3   : > { %v5404_v7 = vadd.f32 %v5403_v31, %v5219_v42  ;;  %v4997_v11 = vpop.f32.mrb[28].mxu0 }
 0x6a4   : > { %v4998_v48 = vadd.f32 %v4997_v11, %v9369_v2  ;;  %v4999_v36 = vpop.f32.mrb[29].mxu0 }
 0x6a5   : > { %v5000_v20 = vadd.f32 %v4999_v36, %v9378_v45  ;;  %v5001_v18 = vpop.f32.mrb[30].mxu0 }
 0x6a6   : > { %v5220_v57 = vmax.f32 %v4998_v48, 0.0  ;;  %v5002_v61 = vadd.f32 %v5001_v18, %v9369_v2  ;;  %v5003_v6 = vpop.f32.mrb[31].mxu0 }
 0x6a7   : > { %v5221_v19 = vmax.f32 %v5000_v20, 0.0  ;;  %v5004_v12 = vadd.f32 %v5003_v6, %v9378_v45 }
 0x6a8   : > { %v5319_v62 = vadd.f32 %v5318_v28, %v5220_v57  ;;  %v5222_v16 = vmax.f32 %v5002_v61, 0.0 }
 0x6a9   : > { %v5405_v0 = vadd.f32 %v5404_v7, %v5221_v19  ;;  %v5223_v4 = vmax.f32 %v5004_v12, 0.0 }
 0x6aa   : > { %v5320_v8 = vadd.f32 %v5319_v62, %v5222_v16 }
 0x6ab   : > { %v5406_v41 = vadd.f32 %v5405_v0, %v5223_v4  ;;  %v5007_v63 = vpop.f32.mrb[32].mxu0 }
 0x6ac   : > { %v5008_v39 = vadd.f32 %v5007_v63, %v9369_v2  ;;  %v5009_v58 = vpop.f32.mrb[33].mxu0 }
 0x6ad   : > { %v5010_v27 = vadd.f32 %v5009_v58, %v9378_v45  ;;  %v5011_v37 = vpop.f32.mrb[34].mxu0 }
 0x6ae   : > { %v5224_v49 = vmax.f32 %v5008_v39, 0.0  ;;  %v5012_v55 = vadd.f32 %v5011_v37, %v9369_v2  ;;  %v5013_v40 = vpop.f32.mrb[35].mxu0 }
 0x6af   : > { %v5225_v47 = vmax.f32 %v5010_v27, 0.0  ;;  %v5014_v35 = vadd.f32 %v5013_v40, %v9378_v45 }
 0x6b0   : > { %v5321_v56 = vadd.f32 %v5320_v8, %v5224_v49  ;;  %v5226_v32 = vmax.f32 %v5012_v55, 0.0 }
 0x6b1   : > { %v5407_v13 = vadd.f32 %v5406_v41, %v5225_v47  ;;  %v5227_v34 = vmax.f32 %v5014_v35, 0.0 }
 0x6b2   : > { %v5322_v33 = vadd.f32 %v5321_v56, %v5226_v32 }
 0x6b3   : > { %v5408_v17 = vadd.f32 %v5407_v13, %v5227_v34  ;;  %v5017_v51 = vpop.f32.mrb[36].mxu0 }
 0x6b4   : > { %v5018_v26 = vadd.f32 %v5017_v51, %v9369_v2  ;;  %v5019_v46 = vpop.f32.mrb[37].mxu0 }
 0x6b5   : > { %v5020_v1 = vadd.f32 %v5019_v46, %v9378_v45  ;;  %v5021_v5 = vpop.f32.mrb[38].mxu0 }
 0x6b6   : > { %v5228_v50 = vmax.f32 %v5018_v26, 0.0  ;;  %v5022_v14 = vadd.f32 %v5021_v5, %v9369_v2  ;;  %v5023_v53 = vpop.f32.mrb[39].mxu0 }
 0x6b7   : > { %v5229_v52 = vmax.f32 %v5020_v1, 0.0  ;;  %v5024_v59 = vadd.f32 %v5023_v53, %v9378_v45 }
 0x6b8   : > { %v5323_v22 = vadd.f32 %v5322_v33, %v5228_v50  ;;  %v5230_v60 = vmax.f32 %v5022_v14, 0.0 }
 0x6b9   : > { %v5409_v29 = vadd.f32 %v5408_v17, %v5229_v52  ;;  %v5231_v43 = vmax.f32 %v5024_v59, 0.0 }
 0x6ba   : > { %v5324_v3 = vadd.f32 %v5323_v22, %v5230_v60 }
 0x6bb   : > { %v5410_v21 = vadd.f32 %v5409_v29, %v5231_v43  ;;  %v5027_v10 = vpop.f32.mrb[40].mxu0 }
 0x6bc   : > { %v5028_v54 = vadd.f32 %v5027_v10, %v9369_v2  ;;  %v5029_v44 = vpop.f32.mrb[41].mxu0 }
 0x6bd   : > { %v5030_v24 = vadd.f32 %v5029_v44, %v9378_v45  ;;  %v5031_v38 = vpop.f32.mrb[42].mxu0 }
 0x6be   : > { %v5232_v15 = vmax.f32 %v5028_v54, 0.0  ;;  %v5032_v30 = vadd.f32 %v5031_v38, %v9369_v2  ;;  %v5033_v23 = vpop.f32.mrb[43].mxu0 }
 0x6bf   : > { %v5233_v31 = vmax.f32 %v5030_v24, 0.0  ;;  %v5034_v42 = vadd.f32 %v5033_v23, %v9378_v45 }
 0x6c0   : > { %v5325_v28 = vadd.f32 %v5324_v3, %v5232_v15  ;;  %v5234_v7 = vmax.f32 %v5032_v30, 0.0 }
 0x6c1   : > { %v5411_v11 = vadd.f32 %v5410_v21, %v5233_v31  ;;  %v5235_v48 = vmax.f32 %v5034_v42, 0.0 }
 0x6c2   : > { %v5326_v36 = vadd.f32 %v5325_v28, %v5234_v7 }
 0x6c3   : > { %v5412_v20 = vadd.f32 %v5411_v11, %v5235_v48  ;;  %v5037_v18 = vpop.f32.mrb[44].mxu0 }
 0x6c4   : > { %v5038_v57 = vadd.f32 %v5037_v18, %v9369_v2  ;;  %v5039_v61 = vpop.f32.mrb[45].mxu0 }
 0x6c5   : > { %v5040_v6 = vadd.f32 %v5039_v61, %v9378_v45  ;;  %v5041_v19 = vpop.f32.mrb[46].mxu0 }
 0x6c6   : > { %v5236_v12 = vmax.f32 %v5038_v57, 0.0  ;;  %v5042_v62 = vadd.f32 %v5041_v19, %v9369_v2  ;;  %v5043_v16 = vpop.f32.mrb[47].mxu0 }
 0x6c7   : > { %v5237_v0 = vmax.f32 %v5040_v6, 0.0  ;;  %v5044_v4 = vadd.f32 %v5043_v16, %v9378_v45 }
 0x6c8   : > { %v5327_v8 = vadd.f32 %v5326_v36, %v5236_v12  ;;  %v5238_v41 = vmax.f32 %v5042_v62, 0.0 }
 0x6c9   : > { %v5413_v63 = vadd.f32 %v5412_v20, %v5237_v0  ;;  %v5239_v39 = vmax.f32 %v5044_v4, 0.0 }
 0x6ca   : > { %v5328_v58 = vadd.f32 %v5327_v8, %v5238_v41 }
 0x6cb   : > { %v5414_v27 = vadd.f32 %v5413_v63, %v5239_v39  ;;  %v5047_v37 = vpop.f32.mrb[48].mxu0 }
 0x6cc   : > { %v5048_v49 = vadd.f32 %v5047_v37, %v9369_v2  ;;  %v5049_v55 = vpop.f32.mrb[49].mxu0 }
 0x6cd   : > { %v5050_v40 = vadd.f32 %v5049_v55, %v9378_v45  ;;  %v5051_v47 = vpop.f32.mrb[50].mxu0 }
 0x6ce   : > { %v5240_v35 = vmax.f32 %v5048_v49, 0.0  ;;  %v5052_v56 = vadd.f32 %v5051_v47, %v9369_v2  ;;  %v5053_v32 = vpop.f32.mrb[51].mxu0 }
 0x6cf   : > { %v5241_v13 = vmax.f32 %v5050_v40, 0.0  ;;  %v5054_v34 = vadd.f32 %v5053_v32, %v9378_v45 }
 0x6d0   : > { %v5329_v33 = vadd.f32 %v5328_v58, %v5240_v35  ;;  %v5242_v17 = vmax.f32 %v5052_v56, 0.0 }
 0x6d1   : > { %v5415_v51 = vadd.f32 %v5414_v27, %v5241_v13  ;;  %v5243_v26 = vmax.f32 %v5054_v34, 0.0 }
 0x6d2   : > { %v5330_v46 = vadd.f32 %v5329_v33, %v5242_v17 }
 0x6d3   : > { %v5416_v1 = vadd.f32 %v5415_v51, %v5243_v26  ;;  %v5057_v5 = vpop.f32.mrb[52].mxu0 }
 0x6d4   : > { %v5058_v50 = vadd.f32 %v5057_v5, %v9369_v2  ;;  %v5059_v14 = vpop.f32.mrb[53].mxu0 }
 0x6d5   : > { %v5060_v53 = vadd.f32 %v5059_v14, %v9378_v45  ;;  %v5061_v52 = vpop.f32.mrb[54].mxu0 }
 0x6d6   : > { %v5244_v59 = vmax.f32 %v5058_v50, 0.0  ;;  %v5062_v22 = vadd.f32 %v5061_v52, %v9369_v2  ;;  %v5063_v60 = vpop.f32.mrb[55].mxu0 }
 0x6d7   : > { %v5245_v29 = vmax.f32 %v5060_v53, 0.0  ;;  %v5064_v43 = vadd.f32 %v5063_v60, %v9378_v45 }
 0x6d8   : > { %v5331_v3 = vadd.f32 %v5330_v46, %v5244_v59  ;;  %v5246_v21 = vmax.f32 %v5062_v22, 0.0 }
 0x6d9   : > { %v5417_v10 = vadd.f32 %v5416_v1, %v5245_v29  ;;  %v5247_v54 = vmax.f32 %v5064_v43, 0.0 }
 0x6da   : > { %v5332_v44 = vadd.f32 %v5331_v3, %v5246_v21 }
 0x6db   : > { %v5418_v24 = vadd.f32 %v5417_v10, %v5247_v54  ;;  %v5067_v38 = vpop.f32.mrb[56].mxu0 }
 0x6dc   : > { %v5068_v15 = vadd.f32 %v5067_v38, %v9369_v2  ;;  %v5069_v30 = vpop.f32.mrb[57].mxu0 }
 0x6dd   : > { %v5070_v23 = vadd.f32 %v5069_v30, %v9378_v45  ;;  %v5071_v31 = vpop.f32.mrb[58].mxu0 }
 0x6de   : > { %v5248_v42 = vmax.f32 %v5068_v15, 0.0  ;;  %v5072_v28 = vadd.f32 %v5071_v31, %v9369_v2  ;;  %v5073_v7 = vpop.f32.mrb[59].mxu0 }
 0x6df   : > { %v5249_v11 = vmax.f32 %v5070_v23, 0.0  ;;  %v5074_v48 = vadd.f32 %v5073_v7, %v9378_v45 }
 0x6e0   : > { %v5333_v36 = vadd.f32 %v5332_v44, %v5248_v42  ;;  %v5250_v20 = vmax.f32 %v5072_v28, 0.0 }
 0x6e1   : > { %v5419_v18 = vadd.f32 %v5418_v24, %v5249_v11  ;;  %v5251_v57 = vmax.f32 %v5074_v48, 0.0 }
 0x6e2   : > { %v5334_v61 = vadd.f32 %v5333_v36, %v5250_v20  ;;  %v7081_v20 = vld [vmem:[%s9872_s15] ss:$8 sps:$4 sm:$0xff]  }
 0x6e3   : > { %v5420_v6 = vadd.f32 %v5419_v18, %v5251_v57  ;;  %v5077_v19 = vpop.f32.mrb[60].mxu0  ;;  %v7086_v57 = vld [vmem:[%s9872_s15 + $0x14] ss:$8 sps:$4 sm:$0xff]  }
 0x6e4   : > { %v5078_v12 = vadd.f32 %v5077_v19, %v9369_v2  ;;  %v5079_v62 = vpop.f32.mrb[61].mxu0  ;;  %v7087_v19 = vld [vmem:[%s9872_s15 + $0x20] ss:$8 sps:$4 sm:$0xff]  }
 0x6e5   : > { %v5080_v16 = vadd.f32 %v5079_v62, %v9378_v45  ;;  %v5081_v0 = vpop.f32.mrb[62].mxu0  ;;  %v7090_v62 = vld [vmem:[%s9872_s15 + $0x30] ss:$8 sps:$4 sm:$0xff]  }
 0x6e6   : > { %v5252_v4 = vmax.f32 %v5078_v12, 0.0  ;;  %v5082_v8 = vadd.f32 %v5081_v0, %v9369_v2  ;;  %v5083_v41 = vpop.f32.mrb[63].mxu0  ;;  %v7092_v12 = vld [vmem:[%s9872_s15 + $0x34] ss:$8 sps:$4 sm:$0xff]   ;;  %v7093_v0 = vld [vmem:[%s9872_s15 + $0x40] ss:$8 sps:$4 sm:$0xff]  }
 0x6e7   : > { %v5253_v63 = vmax.f32 %v5080_v16, 0.0  ;;  %v5084_v39 = vadd.f32 %v5083_v41, %v9378_v45  ;;  %v7095_v16 = vld [vmem:[%s9872_s15 + $0x44] ss:$8 sps:$4 sm:$0xff]  }
 0x6e8   : > { %v5335_v58 = vadd.f32 %v5334_v61, %v5252_v4  ;;  %v5254_v27 = vmax.f32 %v5082_v8, 0.0  ;;  %v7084_v61 = vld [vmem:[%s9872_s15 + $0x10] ss:$8 sps:$4 sm:$0xff]   ;;  %v7098_v4 = vld [vmem:[%s9872_s15 + $0x54] ss:$8 sps:$4 sm:$0xff]  }
 0x6e9   : > { %v5421_v37 = vadd.f32 %v5420_v6, %v5253_v63  ;;  %v5255_v49 = vmax.f32 %v5084_v39, 0.0  ;;  %v7089_v6 = vld [vmem:[%s9872_s15 + $0x24] ss:$8 sps:$4 sm:$0xff]   ;;  %v7096_v8 = vld [vmem:[%s9872_s15 + $0x50] ss:$8 sps:$4 sm:$0xff]  }
 0x6ea   : > { %v5336_v55 = vadd.f32 %v5335_v58, %v5254_v27  ;;  %v7101_v41 = vld [vmem:[%s9872_s15 + $0x64] ss:$8 sps:$4 sm:$0xff]   ;;  %v7099_v63 = vld [vmem:[%s9872_s15 + $0x60] ss:$8 sps:$4 sm:$0xff]   ;;  %v7104_v39 = vld [vmem:[%s9872_s15 + $0x74] ss:$8 sps:$4 sm:$0xff]  }
 0x6eb   : > { %v5422_v40 = vadd.f32 %v5421_v37, %v5255_v49  ;;  %v5087_v47 = vpop.f32.mrb[64].mxu0  ;;  %v7102_v58 = vld [vmem:[%s9872_s15 + $0x70] ss:$8 sps:$4 sm:$0xff]   ;;  %v7107_v27 = vld [vmem:[%s9872_s15 + $0x84] ss:$8 sps:$4 sm:$0xff]  }
 0x6ec   : > { %v5088_v35 = vadd.f32 %v5087_v47, %v9369_v2  ;;  %v5089_v56 = vpop.f32.mrb[65].mxu0  ;;  %v7105_v37 = vld [vmem:[%s9872_s15 + $0x80] ss:$8 sps:$4 sm:$0xff]   ;;  %v7110_v49 = vld [vmem:[%s9872_s15 + $0x94] ss:$8 sps:$4 sm:$0xff]  }
 0x6ed   : > { %v5090_v32 = vadd.f32 %v5089_v56, %v9378_v45  ;;  %v5091_v13 = vpop.f32.mrb[66].mxu0  ;;  %v7111_v47 = vld [vmem:[%s9872_s15 + $0xa0] ss:$8 sps:$4 sm:$0xff]   ;;  %v7114_v56 = vld [vmem:[%s9872_s15 + $0xb0] ss:$8 sps:$4 sm:$0xff]  }
 0x6ee   : > { %v5256_v34 = vmax.f32 %v5088_v35, 0.0  ;;  %v5092_v33 = vadd.f32 %v5091_v13, %v9369_v2  ;;  %v5093_v17 = vpop.f32.mrb[67].mxu0  ;;  %v7116_v35 = vld [vmem:[%s9872_s15 + $0xb4] ss:$8 sps:$4 sm:$0xff]   ;;  %v7117_v13 = vld [vmem:[%s9872_s15 + $0xc0] ss:$8 sps:$4 sm:$0xff]  }
 0x6ef   : > { %v5257_v51 = vmax.f32 %v5090_v32, 0.0  ;;  %v5094_v26 = vadd.f32 %v5093_v17, %v9378_v45  ;;  %v7119_v32 = vld [vmem:[%s9872_s15 + $0xc4] ss:$8 sps:$4 sm:$0xff]  }
 0x6f0   : > { %v5337_v46 = vadd.f32 %v5336_v55, %v5256_v34  ;;  %v5258_v1 = vmax.f32 %v5092_v33, 0.0  ;;  %v7108_v55 = vld [vmem:[%s9872_s15 + $0x90] ss:$8 sps:$4 sm:$0xff]   ;;  %v7122_v34 = vld [vmem:[%s9872_s15 + $0xd4] ss:$8 sps:$4 sm:$0xff]  }
 0x6f1   : > { %v5423_v5 = vadd.f32 %v5422_v40, %v5257_v51  ;;  %v5259_v50 = vmax.f32 %v5094_v26, 0.0  ;;  %v7113_v40 = vld [vmem:[%s9872_s15 + $0xa4] ss:$8 sps:$4 sm:$0xff]   ;;  %v7120_v33 = vld [vmem:[%s9872_s15 + $0xd0] ss:$8 sps:$4 sm:$0xff]  }
 0x6f2   : > { %v5338_v14 = vadd.f32 %v5337_v46, %v5258_v1  ;;  %v7125_v17 = vld [vmem:[%s9872_s15 + $0xe4] ss:$8 sps:$4 sm:$0xff]   ;;  %v7123_v51 = vld [vmem:[%s9872_s15 + $0xe0] ss:$8 sps:$4 sm:$0xff]   ;;  %v7128_v26 = vld [vmem:[%s9872_s15 + $0xf4] ss:$8 sps:$4 sm:$0xff]  }
 0x6f3   : > { %v5424_v53 = vadd.f32 %v5423_v5, %v5259_v50  ;;  %v5097_v52 = vpop.f32.mrb[68].mxu0  ;;  %v7126_v46 = vld [vmem:[%s9872_s15 + $0xf0] ss:$8 sps:$4 sm:$0xff]   ;;  %v7129_v1 = vld [vmem:[%s9874_s17 + $0x40] sm:$0xff]  }
 0x6f4   : > { %v5098_v59 = vadd.f32 %v5097_v52, %v9369_v2  ;;  %v5099_v22 = vpop.f32.mrb[69].mxu0  ;;  %v5467_v5 = vld [vmem:[%s9871_s14] sm:$0x3] }
 0x6f5   : > { %v5100_v60 = vadd.f32 %v5099_v22, %v9378_v45  ;;  %v5101_v29 = vpop.f32.mrb[70].mxu0  ;;  %v5632_v50 = vrot.slane %v5467_v5, %v10002_v25 }
 0x6f6   : > { %v5260_v43 = vmax.f32 %v5098_v59, 0.0  ;;  %v5102_v3 = vpop.f32.mrb[71].mxu0 }
 0x6f7   : > { %v5261_v21 = vmax.f32 %v5100_v60, 0.0 }
 0x6f8   : > { %v5340_v10 = vsel %vm5339_vm6, %v5260_v43, 0.0 }
 0x6f9   : > { %v5341_v54 = vadd.f32 %v5340_v10, %v5338_v14  ;;  %v5425_v44 = vsel %vm5339_vm6, %v5261_v21, 0.0  ;;  %v5636_v14 = vrot.slane %v5467_v5, %v10033_v9  ;;  %v7130_v10 = vld [vmem:[%s9874_s17] sm:$0xff]  }
 0x6fa   : > { %v5426_v24 = vadd.f32 %v5425_v44, %v5424_v53  ;;  %v7131_v44 = vld [vmem:[%s9874_s17 + $0x48] sm:$0xff]  }
 0x6fb   : > { %v5342_v38 = vrot.slane %v5341_v54, 4 }
 0x6fc   : > { %v5427_v15 = vrot.slane %v5426_v24, 4 }
 0x6fd   : > { %v5343_v30 = vadd.f32 %v5342_v38, %v5341_v54  ;;  %v7133_v38 = vld [vmem:[%s9874_s17 + $0x50] sm:$0xff]  }
 0x6fe   : > { %v5428_v23 = vadd.f32 %v5427_v15, %v5426_v24  ;;  %v7132_v24 = vld [vmem:[%s9874_s17 + $0x8] sm:$0xff]   ;;  %v7134_v15 = vld [vmem:[%s9874_s17 + $0x10] sm:$0xff]  }
 0x6ff   : > { %v5344_v31 = vrot.slane %v5343_v30, 2 }
 0x700   : > { %v5429_v42 = vrot.slane %v5428_v23, 2 }
 0x701   : > { %v5345_v28 = vadd.f32 %v5344_v31, %v5343_v30  ;;  %v7135_v30 = vld [vmem:[%s9874_s17 + $0x58] sm:$0xff]   ;;  %v7137_v31 = vld [vmem:[%s9874_s17 + $0x60] sm:$0xff]  }
 0x702   : > { %v5430_v2 = vadd.f32 %v5429_v42, %v5428_v23  ;;  %v7136_v23 = vld [vmem:[%s9874_s17 + $0x18] sm:$0xff]   ;;  %v7138_v42 = vld [vmem:[%s9874_s17 + $0x20] sm:$0xff]  }
 0x703   : > { %v5346_v7 = vrot.slane %v5345_v28, 1 }
 0x704   : > { %v5431_v11 = vrot.slane %v5430_v2, 1 }
 0x705   : > { %v5347_v48 = vadd.f32 %v5346_v7, %v5345_v28  ;;  %v7139_v28 = vld [vmem:[%s9874_s17 + $0x68] sm:$0xff]   ;;  %v7141_v7 = vld [vmem:[%s9874_s17 + $0x70] sm:$0xff]  }
 0x706   : > { %v5432_v45 = vadd.f32 %v5431_v11, %v5430_v2  ;;  %v7140_v2 = vld [vmem:[%s9874_s17 + $0x28] sm:$0xff]   ;;  %v7142_v11 = vld [vmem:[%s9874_s17 + $0x30] sm:$0xff]  }
 0x707   : > { %v5433_v18 = vpack.c.bf16 %v5347_v48, %v5347_v48  ;;  %v7143_v48 = vld [vmem:[%s9874_s17 + $0x78] sm:$0xff]  }
 0x708   : > { %v5434_v36 = vpack.c.bf16 %v5432_v45, %v5432_v45  ;;  %v7144_v45 = vld [vmem:[%s9874_s17 + $0x38] sm:$0xff]  }
 0x70a   : > { %5671 = vmatprep.mubr.bf16.mxu1 %v5434_v36  ;;  %v5716_v36 = vld [vmem:[%s9873_s16] sm:$0x3] }
 0x70b   : > { %5672 = vmatmul.mubr.bf16.vlgmr.msra.gmra.mrb[124].mxu1 %v5433_v18  ;;  %v5885_v18 = vrot.slane %v5716_v36, %v10033_v9 }
 0x70c   : > { %5889 = vmatpush1.bf16.msra.mxu1 %v7081_v20  ;;  %v5881_v20 = vrot.slane %v5716_v36, %v10002_v25 }
 0x70d   : > { %5890 = vmatprep.subr.bf16.mxu1 %v7086_v57 }
 0x710   : > { %5891 = vmatpush1.bf16.msra.mxu1 %v7084_v61 }
 0x711   : > { %5892 = vmatprep.subr.bf16.mxu1 %v7089_v6 }
 0x714   : > { %5893 = vmatpush1.bf16.msra.mxu1 %v7087_v19 }
 0x715   : > { %5894 = vmatprep.subr.bf16.mxu1 %v7092_v12 }
 0x718   : > { %5895 = vmatpush1.bf16.msra.mxu1 %v7090_v62 }
 0x719   : > { %5896 = vmatprep.subr.bf16.mxu1 %v7095_v16 }
 0x71c   : > { %5897 = vmatpush1.bf16.msra.mxu1 %v7093_v0 }
 0x71d   : > { %5898 = vmatprep.subr.bf16.mxu1 %v7098_v4 }
 0x720   : > { %5899 = vmatpush1.bf16.msra.mxu1 %v7096_v8 }
 0x721   : > { %5900 = vmatprep.subr.bf16.mxu1 %v7101_v41 }
 0x724   : > { %5901 = vmatpush1.bf16.msra.mxu1 %v7099_v63  ;;  %v5965_v63 = vld [vmem:[%s9875_s18] sm:$0x1] }
 0x725   : > { %5902 = vmatprep.subr.bf16.mxu1 %v7104_v39 }
 0x728   : > { %5903 = vmatpush1.bf16.msra.mxu1 %v7102_v58 }
 0x729   : > { %5904 = vmatprep.subr.bf16.mxu1 %v7107_v27 }
 0x72c   : > { %5905 = vmatpush1.bf16.msra.mxu1 %v7105_v37 }
 0x72d   : > { %5906 = vmatprep.subr.bf16.mxu1 %v7110_v49 }
 0x730   : > { %5907 = vmatpush1.bf16.msra.mxu1 %v7108_v55 }
 0x731   : > { %5908 = vmatprep.subr.bf16.mxu1 %v7113_v40 }
 0x734   : > { %5909 = vmatpush1.bf16.msra.mxu1 %v7111_v47 }
 0x735   : > { %5910 = vmatprep.subr.bf16.mxu1 %v7116_v35 }
 0x738   : > { %5911 = vmatpush1.bf16.msra.mxu1 %v7114_v56 }
 0x739   : > { %5912 = vmatprep.subr.bf16.mxu1 %v7119_v32 }
 0x73c   : > { %5913 = vmatpush1.bf16.msra.mxu1 %v7117_v13 }
 0x73d   : > { %5914 = vmatprep.subr.bf16.mxu1 %v7122_v34 }
 0x740   : > { %5915 = vmatpush1.bf16.msra.mxu1 %v7120_v33 }
 0x741   : > { %5916 = vmatprep.subr.bf16.mxu1 %v7125_v17 }
 0x744   : > { %5917 = vmatpush1.bf16.msra.mxu1 %v7123_v51 }
 0x745   : > { %5918 = vmatprep.subr.bf16.mxu1 %v7128_v26 }
 0x748   : > { %5919 = vmatpush1.bf16.msra.mxu1 %v7126_v46 }
 0x749   : > { %6566 = vmatprep.subr.bf16.mxu1 %v7129_v1 }
 0x7de   : > { %v5673_v53 = vpop.f32.mrb[124].mxu1 }
 0x7df   : > { %v5674_v52 = vadd.f32 %v5673_v53, %v5632_v50  ;;  %v5675_v59 = vpop.f32.mrb[125].mxu1 }
 0x7e0   : > { %v5676_v22 = vadd.f32 %v5675_v59, %v5636_v14  ;;  %v5677_v60 = vpop.f32.mrb[126].mxu1 }
 0x7e1   : > { %v5680_v29 = vmax.f32 %v5674_v52, 0.0  ;;  %v5678_v43 = vpop.f32.mrb[127].mxu1 }
 0x7e2   : > { %v5681_v3 = vmax.f32 %v5676_v22, 0.0 }
 0x7e3   : > { %v5682_v54 = vpack.c.bf16 %v5680_v29, %v5680_v29 }
 0x7e4   : > { %v5683_v21 = vpack.c.bf16 %v5681_v3, %v5681_v3 }
 0x7e6   : > { %5920 = vmatprep.mubr.bf16.mxu1 %v5683_v21 }
 0x7e7   : > { %5921 = vmatmul.mubr.bf16.vlgmr.msra.gmra.mrb[128].mxu1 %v5682_v54 }
 0x7e8   : > { %6567 = vmatpush3.bf16.msra.mxu1 %v7130_v10 }
 0x7e9   : > { %6568 = vmatprep.subr.bf16.mxu1 %v7131_v44 }
 0x7ec   : > { %6569 = vmatpush3.bf16.msra.mxu1 %v7132_v24 }
 0x7ed   : > { %6570 = vmatprep.subr.bf16.mxu1 %v7133_v38 }
 0x7f0   : > { %6571 = vmatpush3.bf16.msra.mxu1 %v7134_v15 }
 0x7f1   : > { %6572 = vmatprep.subr.bf16.mxu1 %v7135_v30 }
 0x7f4   : > { %6573 = vmatpush3.bf16.msra.mxu1 %v7136_v23 }
 0x7f5   : > { %6574 = vmatprep.subr.bf16.mxu1 %v7137_v31 }
 0x7f8   : > { %6575 = vmatpush3.bf16.msra.mxu1 %v7138_v42 }
 0x7f9   : > { %6576 = vmatprep.subr.bf16.mxu1 %v7139_v28 }
 0x7fc   : > { %6577 = vmatpush3.bf16.msra.mxu1 %v7140_v2 }
 0x7fd   : > { %6578 = vmatprep.subr.bf16.mxu1 %v7141_v7 }
 0x800   : > { %6579 = vmatpush3.bf16.msra.mxu1 %v7142_v11 }
 0x801   : > { %6580 = vmatprep.subr.bf16.mxu1 %v7143_v48 }
 0x804   : > { %6581 = vmatpush3.bf16.msra.mxu1 %v7144_v45 }
 0x8ba   : > { %v5922_v57 = vpop.f32.mrb[128].mxu1 }
 0x8bb   : > { %v5923_v61 = vadd.f32 %v5922_v57, %v5881_v20  ;;  %v5924_v6 = vpop.f32.mrb[129].mxu1 }
 0x8bc   : > { %v5925_v19 = vadd.f32 %v5924_v6, %v5885_v18  ;;  %v5926_v12 = vpop.f32.mrb[130].mxu1 }
 0x8bd   : > { %v5929_v62 = vmax.f32 %v5923_v61, 0.0  ;;  %v5927_v16 = vpop.f32.mrb[131].mxu1 }
 0x8be   : > { %v5930_v0 = vmax.f32 %v5925_v19, 0.0 }
 0x8bf   : > { %v5931_v8 = vpack.c.bf16 %v5929_v62, %v5929_v62 }
 0x8c0   : > { %v5932_v4 = vpack.c.bf16 %v5930_v0, %v5930_v0 }
 0x8c2   : > { %6094 = vmatprep.mubr.bf16.mxu1 %v5932_v4 }
 0x8c3   : > { %6095 = vmatmul.mubr.bf16.vlgmr.msra.gmra.mrb[132].mxu1 %v5931_v8 }
 0x996   : > { %v6582_v41 = vpop.f32.mrb[132].mxu1 }
 0x997   : > { %v6583_v25 = vpop.f32.mrb[133].mxu1 }
 0x998   : > { %v6584_v39 = vadd.f32 %v6583_v25, %v6582_v41  ;;  %v6585_v9 = vpop.f32.mrb[134].mxu1 }
 0x999   : > { %v6586_v58 = vpop.f32.mrb[135].mxu1 }
 0x99a   : > { %v6097_v27 = vadd.f32 %v6584_v39, %v5965_v63 }
 0x99c   : > { %v6103_v37 = vsel %vm6102_vm7, %v6097_v27, -inf }
 0x99d   : > { %6104 = vmax.xlane.f32.xlu0 %v6103_v37 }
 0xa2a   : > { %v6105_v49 = vpop.xlane.xlu0 %6104 }
 0xa2b   : > { %v6106_v55 = vsub.f32 %v6097_v27, %v6105_v49 }
 0xa2d   : > { %v6107_v40 = vmul.f32 1.442695, %v6106_v55 }
 0xa2f   : > { %7145 = vpow2.f32 %v6107_v40 }
 0xa39   : > { %v7146_v47 = vpop.eup %7145 }
 0xa3a   : > { %v6109_v35 = vsel %vm6102_vm7, %v7146_v47, 0.0 }
 0xa3b   : > { %6110 = vadd.xlane.f32.xlu0 %v6109_v35 }
 0xac8   : > { %v6111_v56 = vpop.xlane.xlu0 %6110 }
 0xac9   : > { %7147 = vlog2.f32 %v6111_v56 }
 0xad3   : > { %v7148_v32 = vpop.eup %7147 }
 0xad4   : > { %v6113_v13 = vmul.f32 0.6931472, %v7148_v32 }
 0xad6   : > { %v6114_v34 = vadd.f32 %v6113_v13, %v6105_v49 }
 0xad8   : > { %v6115_v33 = vsub.f32 %v6097_v27, %v6114_v34 }
 0xada   : > { %6116 = vst.msk [vmem:[%s609_s23] sm:$0x1] %vm6102_vm7, %v6115_v33 }
 0xadb   : > { %7162 = shalt.err (!%p7159_p3)
}
 0xadc   : > { %s7163_s4 = scalar_lea.hbm %s9814_s2, 16  ;;  %s7167_s24 = scalar_lea.hbm %s9876_s19, 32 }
 0xadd   : > { %p7164_p4 = scmp.ne.s32.totalorder %s9814_s2, %s7163_s4  ;;  %p7168_p9 = scmp.lt.u32.totalorder %s9814_s2, %s9876_s19 }
 0xade   : > { %p7169_p10 = scmp.lt.u32.totalorder %s7167_s24, %s7163_s4  ;;  %p7171_p12 = scmp.lt.u32.totalorder %s7163_s4, %s9814_s2 }
 0xadf   : > { %p7165_p7 = pnand %p7164_p4, %p7354_p5 }
 0xae0   : > { %p7170_p11 = por %p7169_p10, %p7168_p9 }
 0xae1   : > { %p7166_p8 = pneg %p7165_p7 }
 0xae2   : > { %p7172_p13 = por %p7171_p12, %p7170_p11 }
 0xae4   : > { %p7173_p0 = pnand %p7172_p13, %p7166_p8 }
 0xae6   : > { %7176 = shalt.err (!%p7173_p0)
}
 0xae7   : > { %6750 = dma.vmem_to_hbm [thread:$0]  (%p7354_p5), %s9816_s5, 16, %s9814_s2, %s6118_s22  }
 0xae8 PF: > { %s10034_s27 = sld [smem:[#allocation5_spill]]  ;;  %p6756_p1 = scmp.ge.s32.totalorder %s7211_s21, 2 }
 0xaea   : > { %p6753_p2 = pnand %p6756_p1, %p7358_p6 }
 0xaee   : > { %s6142_s25 = sand.u32 1, %s10034_s27  }
 0xaef   : > { %s6143_s0 = scalar_lea.sflag [#allocation3], %s6142_s25 }
 0xaf0   : > { %7194 = dma.done.wait (!%p6753_p2), %s6143_s0, 16  }
 0xaf1   : > { %7196 = vsyncadd (!%p6753_p2), %s6143_s0, 4294967280  ;;  %s10036_s21 = sld [smem:[#allocation7_spill]]  ;;  %s10037_s4 = sld [smem:[#allocation6_spill]] }
 0xaf2   : > { %s10038_s20 = sld [smem:[#allocation8_spill]]  ;;  %s10039_s0 = smov %s7203_s30 }
 0xaf7   : > { %p29_p3 = scmp.ge.s32.totalorder %s10036_s21, 4   ;;  %s10040_s30 = smov %s10037_s4 }
 0xaf9   :  { %31 = sbr.rel (!%p29_p3) target bundleno = 10 (0xa), region = 134 }
 0xb00   :  { %6147 = vsyncpa [#allocation3], 1 }
 0xb01   :  { %6149 = vsyncpa [#allocation3 + $0x1], 1 }

</bundles_post_ra>
